<compile_context>
chip_gen: v5e
topology: v5e:2x2
jax: 0.10.0
libtpu: 0.0.40
codegen_flags: <defaults>
</compile_context>

<pallas_src>
import functools

import jax
import jax.numpy as jnp
from jax.experimental import pallas as pl
from jax.experimental.pallas import tpu as pltpu

EPS = 1e-5                     # nn.BatchNorm2d eps
LEAK = 0.2                     # LeakyReLU negative_slope
VMEM_LIMIT = 32 * 1024 * 1024  # scoped-VMEM budget, safe on v5e / v6e / v7x


# --------------------------------------------------------------------------------------
# helpers
# --------------------------------------------------------------------------------------
def _choose_ptile(P):
    """Largest preferred lane tile dividing P.  One big block beats forced double
    buffering at these sizes (~0.35us/grid step; 512+ lanes to reach HBM roofline)."""
    for t in (2048, 1024, 512, 256, 128):
        if P % t == 0:
            return t
    return P


def _apply_act(y, act):
    if act == "leaky":
        return jnp.where(y >= 0, y, LEAK * y)
    if act == "tanh":
        return jnp.tanh(y)
    return y


def _cparams(semantics):
    return pltpu.CompilerParams(dimension_semantics=semantics,
                                vmem_limit_bytes=VMEM_LIMIT)


# --------------------------------------------------------------------------------------
# fused conv + BatchNorm(train) + activation kernel  (2-pass grid, y resident in VMEM)
# --------------------------------------------------------------------------------------
def _fused_conv_bn_kernel(p_ref, w_ref, g_ref, be_ref, o_ref,
                          y_scr, s_scr, ss_scr, sc_scr, sh_scr,
                          *, act, inv_count, pt, n_tiles):
    """grid = (2, Q, nT):
         axis 0 (b): 0 = conv + stats accumulate (pass A), 1 = BN apply + act (pass B)
         axis 1 (q): sub-pixel phase (1 for Conv2d, 4 for the stride-2 ConvTranspose)
         axis 2 (i): pixel tile
       p: (K, Pt) bf16; w: (1, Cout, K) bf16 (phase-selected); g/be: (Cout, 1) f32
       o: (Cout, Pt) bf16; y_scr: (Cout, Q*P) f32 resident; s/ss/sc/sh: (Cout, 1) f32."""
    b = pl.program_id(0)
    q = pl.program_id(1)
    i = pl.program_id(2)
    col = q * n_tiles + i
    start = pl.multiple_of(col * pt, pt)

    @pl.when(b == 0)
    def _pass_a():
        @pl.when(col == 0)
        def _init():
            s_scr[...] = jnp.zeros_like(s_scr)
            ss_scr[...] = jnp.zeros_like(ss_scr)

        y = jnp.dot(w_ref[0], p_ref[...], preferred_element_type=jnp.float32)
        y_scr[:, pl.ds(start, pt)] = y
        s_scr[...] += jnp.sum(y, axis=1, keepdims=True)
        ss_scr[...] += jnp.sum(y * y, axis=1, keepdims=True)

    @pl.when(b == 1)
    def _pass_b():
        @pl.when(col == 0)
        def _finalize():
            mean = s_scr[...] * inv_count
            var = jnp.maximum(ss_scr[...] * inv_count - mean * mean, 0.0)
            scale = g_ref[...] * jax.lax.rsqrt(var + EPS)
            sc_scr[...] = scale
            sh_scr[...] = be_ref[...] - mean * scale

        y = y_scr[:, pl.ds(start, pt)]
        o_ref[...] = _apply_act(y * sc_scr[...] + sh_scr[...], act).astype(o_ref.dtype)


def _call_fused_conv_bn(patches, w_q, g_col, be_col, act):
    """patches: (K, P) bf16; w_q: (Q, Cout, K) bf16; g/be: (Cout, 1) f32.
    Returns the bf16 post-BN activation (Cout, Q*P), phase-major along columns."""
    K, P = patches.shape
    Q, cout, _ = w_q.shape
    pt = _choose_ptile(P)
    nt = P // pt
    kern = functools.partial(_fused_conv_bn_kernel, act=act,
                             inv_count=1.0 / float(Q * P), pt=pt, n_tiles=nt)
    return pl.pallas_call(
        kern,
        grid_spec=pltpu.PrefetchScalarGridSpec(
            num_scalar_prefetch=0,
            grid=(2, Q, nt),
            in_specs=[
                # freeze input blocks during pass B (no re-fetch of patch tiles)
                pl.BlockSpec((K, pt), lambda b, q, i: (0, i * (1 - b))),
                pl.BlockSpec((1, cout, K), lambda b, q, i: (q * (1 - b), 0, 0)),
                pl.BlockSpec((cout, 1), lambda b, q, i: (0, 0)),
                pl.BlockSpec((cout, 1), lambda b, q, i: (0, 0)),
            ],
            # output blocks are only walked (and written) during pass B
            out_specs=pl.BlockSpec((cout, pt), lambda b, q, i: (0, (q * nt + i) * b)),
            scratch_shapes=[
                pltpu.VMEM((cout, Q * P), jnp.float32),   # resident pre-BN y
                pltpu.VMEM((cout, 1), jnp.float32),       # sum
                pltpu.VMEM((cout, 1), jnp.float32),       # sum of squares
                pltpu.VMEM((cout, 1), jnp.float32),       # scale
                pltpu.VMEM((cout, 1), jnp.float32),       # shift
            ]),
        out_shape=jax.ShapeDtypeStruct((cout, Q * P), jnp.bfloat16),
        compiler_params=_cparams(("arbitrary", "arbitrary", "arbitrary")),
    )(patches, w_q, g_col, be_col)


# --------------------------------------------------------------------------------------
# conv + bias + activation (no BN)  -- the 'last' layer
# --------------------------------------------------------------------------------------
def _conv_bias_act_kernel(p_ref, w_ref, b_ref, o_ref, *, act):
    y = jnp.dot(w_ref[...], p_ref[...], preferred_element_type=jnp.float32)
    o_ref[...] = _apply_act(y + b_ref[...], act)


def _call_conv_bias_act(patches, w_mat, b_col, act):
    K, P = patches.shape
    cout = w_mat.shape[0]
    pt = _choose_ptile(P)
    kern = functools.partial(_conv_bias_act_kernel, act=act)
    return pl.pallas_call(
        kern,
        grid=(P // pt,),
        in_specs=[
            pl.BlockSpec((K, pt), lambda i: (0, i)),
            pl.BlockSpec((cout, K), lambda i: (0, 0)),
            pl.BlockSpec((cout, 1), lambda i: (0, 0)),
        ],
        out_specs=pl.BlockSpec((cout, pt), lambda i: (0, i)),
        out_shape=jax.ShapeDtypeStruct((cout, P), jnp.float32),
        compiler_params=_cparams(("parallel",)),
    )(patches, w_mat, b_col)


# --------------------------------------------------------------------------------------
# 2x2 / stride-2 max pool
# --------------------------------------------------------------------------------------
def _max4_kernel(a_ref, b_ref, c_ref, d_ref, o_ref):
    o_ref[...] = jnp.maximum(jnp.maximum(a_ref[...], b_ref[...]),
                             jnp.maximum(c_ref[...], d_ref[...]))


def maxpool2x2(x):
    """x: (C, N, H, W) bf16 -> (C, N, H/2, W/2) bf16."""
    C, N, H, W = x.shape
    Ho, Wo = H // 2, W // 2
    P = N * Ho * Wo
    taps = [x[:, :, dh::2, dw::2].reshape(C, P) for dh in range(2) for dw in range(2)]
    pt = _choose_ptile(P)
    out = pl.pallas_call(
        _max4_kernel,
        grid=(P // pt,),
        in_specs=[pl.BlockSpec((C, pt), lambda i: (0, i))] * 4,
        out_specs=pl.BlockSpec((C, pt), lambda i: (0, i)),
        out_shape=jax.ShapeDtypeStruct((C, P), x.dtype),
        compiler_params=_cparams(("parallel",)),
    )(*taps)
    return out.reshape(C, N, Ho, Wo)


# --------------------------------------------------------------------------------------
# layer glue (bf16 im2col, ConvTranspose 4-phase decomposition)
# --------------------------------------------------------------------------------------
def _im2col_3x3(x):
    """x: (C, N, H, W) bf16 -> (9*C, N*H*W) tap-major patch matrix (pad=1, stride=1)."""
    C, N, H, W = x.shape
    xp = jnp.pad(x, ((0, 0), (0, 0), (1, 1), (1, 1)))
    taps = [xp[:, :, dh:dh + H, dw:dw + W].reshape(C, N * H * W)
            for dh in range(3) for dw in range(3)]
    return jnp.concatenate(taps, axis=0)


def _taps_2x2(x):
    """x: (C, N, H, W) bf16 -> (4*C, N*H*W) patches for the ConvTranspose 2x2 input
    window {x[i+di, j+dj]}, zero halo on the right/bottom (output_padding=1)."""
    C, N, H, W = x.shape
    xp = jnp.pad(x, ((0, 0), (0, 0), (0, 1), (0, 1)))
    taps = [xp[:, :, di:di + H, dj:dj + W].reshape(C, N * H * W)
            for di in range(2) for dj in range(2)]
    return jnp.concatenate(taps, axis=0)


def conv_bn_act(x, p, act):
    """Conv2d(3x3, s=1, p=1) + BatchNorm2d(train) + act.  x: (Cin, N, H, W) bf16."""
    cin, N, H, W = x.shape
    cout = p["w"].shape[1]
    out = _call_fused_conv_bn(_im2col_3x3(x), p["w"], p["g"], p["be"], act)
    return out.reshape(cout, N, H, W)


def convT_bn_act(x, p, act):
    """ConvTranspose2d(3, stride=2, padding=1, output_padding=1) + BN(train) + act
    via 4 sub-pixel phases (one matmul per phase on the un-dilated input)."""
    cin, N, H, W = x.shape
    cout = p["w"].shape[1]
    y = _call_fused_conv_bn(_taps_2x2(x), p["w"], p["g"], p["be"], act)  # (Cout, 4*N*H*W)
    # interleave phases (ph, pw) into the 2x-upsampled grid (tiny bf16 glue)
    y = (y.reshape(cout, 2, 2, N, H, W)
          .transpose(0, 3, 4, 1, 5, 2)
          .reshape(cout, N, 2 * H, 2 * W))
    return y


def conv_act_last(x, p, act):
    """Conv2d(3x3, s=1, p=1) + activation (no BN) -- f32 output."""
    cin, N, H, W = x.shape
    cout = p["w"].shape[0]
    out = _call_conv_bias_act(_im2col_3x3(x), p["w"], p["b"], act)
    return out.reshape(cout, N, H, W)


# --------------------------------------------------------------------------------------
# TestGen forward
# --------------------------------------------------------------------------------------
def conv_block(x, p):
    """conv(dimIn, dimOut): Conv->BN->LeakyReLU(0.2)->Conv->BN."""
    h = conv_bn_act(x, p["c1"], act="leaky")
    return conv_bn_act(h, p["c2"], act="none")


def test_gen_forward(img_nchw, packed):
    x = jnp.transpose(img_nchw, (1, 0, 2, 3)).astype(jnp.bfloat16)   # NCHW -> CNHW bf16
    c1 = conv_block(x, packed["conv1"])                              # (F,  N, H,   W)
    p1 = maxpool2x2(c1)                                              # (F,  N, H/2, W/2)
    br = conv_block(p1, packed["bridge"])                            # (2F, N, H/2, W/2)
    iv = convT_bn_act(br, packed["inv1"], act="leaky")               # (F,  N, H,   W)
    j = jnp.concatenate([iv, c1], axis=0)                            # (2F, N, H,   W)
    u1 = conv_block(j, packed["up1"])                                # (F,  N, H,   W)
    res = conv_act_last(u1, packed["last"], act="tanh")              # (3,  N, H,   W)  f32
    return jnp.transpose(res, (1, 0, 2, 3))                          # CNHW -> NCHW


# --------------------------------------------------------------------------------------
# parameters: PyTorch-layout init + one-time packing (hoisted out of the forward)
# --------------------------------------------------------------------------------------
def init_params(key, nfilters):
    F = nfilters
    keys = iter(jax.random.split(key, 32))

    def conv_p(cin, cout):   # PyTorch Conv2d layout (Cout, Cin, 3, 3)
        w = jax.random.normal(next(keys), (cout, cin, 3, 3), jnp.float32) / jnp.sqrt(9.0 * cin)
        b = 0.01 * jax.random.normal(next(keys), (cout,), jnp.float32)
        return w, b

    def bn_p(c):
        g = 1.0 + 0.1 * jax.random.normal(next(keys), (c,), jnp.float32)
        be = 0.1 * jax.random.normal(next(keys), (c,), jnp.float32)
        return g, be

    def block(cin, cout):
        w1, b1 = conv_p(cin, cout)
        g1, be1 = bn_p(cout)
        w2, b2 = conv_p(cout, cout)
        g2, be2 = bn_p(cout)
        return dict(w1=w1, b1=b1, g1=g1, be1=be1, w2=w2, b2=b2, g2=g2, be2=be2)

    params = {"conv1": block(3, F), "bridge": block(F, 2 * F), "up1": block(2 * F, F)}
    # PyTorch ConvTranspose2d layout (Cin, Cout, 3, 3)
    wt = jax.random.normal(next(keys), (2 * F, F, 3, 3), jnp.float32) / jnp.sqrt(9.0 * 2 * F)
    bt = 0.01 * jax.random.normal(next(keys), (F,), jnp.float32)
    gt, bet = bn_p(F)
    params["inv1"] = dict(w=wt, b=bt, g=gt, be=bet)
    wl, bl = conv_p(F, 3)
    params["last"] = dict(w=wl, b=bl)
    return params


def pack_params(params):
    """One-time repack into kernel-ready layouts.  Conv biases that feed train-mode BN
    are dropped (a per-channel constant cancels exactly in y - mean(y))."""
    def pack_conv(w, g, be):
        cout, cin = w.shape[0], w.shape[1]
        wq = jnp.transpose(w, (0, 2, 3, 1)).reshape(1, cout, 9 * cin).astype(jnp.bfloat16)
        return dict(w=wq, g=g.reshape(cout, 1).astype(jnp.float32),
                    be=be.reshape(cout, 1).astype(jnp.float32))

    def pack_block(p):
        return dict(c1=pack_conv(p["w1"], p["g1"], p["be1"]),
                    c2=pack_conv(p["w2"], p["g2"], p["be2"]))

    def pack_convT(wt, g, be):
        """4-phase combined weight for ConvTranspose2d(k=3, s=2, p=1, op=1):
        tap t = di*2+dj over the 2x2 input window, phase q = ph*2+pw over output sub-pixels."""
        cin, cout = wt.shape[0], wt.shape[1]

        def ws(kh, kw):                       # (Cout, Cin)
            return jnp.transpose(wt[:, :, kh, kw], (1, 0))

        Wc = jnp.zeros((4, cout, 4, cin), jnp.float32)
        Wc = Wc.at[0, :, 0, :].set(ws(1, 1))              # out[2i,   2j  ]
        Wc = Wc.at[1, :, 0, :].set(ws(1, 2))              # out[2i,   2j+1]
        Wc = Wc.at[1, :, 1, :].set(ws(1, 0))
        Wc = Wc.at[2, :, 0, :].set(ws(2, 1))              # out[2i+1, 2j  ]
        Wc = Wc.at[2, :, 2, :].set(ws(0, 1))
        Wc = Wc.at[3, :, 0, :].set(ws(2, 2))              # out[2i+1, 2j+1]
        Wc = Wc.at[3, :, 1, :].set(ws(2, 0))
        Wc = Wc.at[3, :, 2, :].set(ws(0, 2))
        Wc = Wc.at[3, :, 3, :].set(ws(0, 0))
        wq = Wc.reshape(4, cout, 4 * cin).astype(jnp.bfloat16)
        return dict(w=wq, g=g.reshape(cout, 1).astype(jnp.float32),
                    be=be.reshape(cout, 1).astype(jnp.float32))

    def pack_last(w, b):
        cout, cin = w.shape[0], w.shape[1]
        wm = jnp.transpose(w, (0, 2, 3, 1)).reshape(cout, 9 * cin).astype(jnp.bfloat16)
        return dict(w=wm, b=b.reshape(cout, 1).astype(jnp.float32))

    return {
        "conv1": pack_block(params["conv1"]),
        "bridge": pack_block(params["bridge"]),
        "up1": pack_block(params["up1"]),
        "inv1": pack_convT(params["inv1"]["w"], params["inv1"]["g"], params["inv1"]["be"]),
        "last": pack_last(params["last"]["w"], params["last"]["b"]),
    }


if __name__ == "__main__":
    key = jax.random.PRNGKey(0)
    kp, kx = jax.random.split(key)

    nfilters = 4                                                   # TestGen(nFilters=4)
    params = init_params(kp, nfilters)
    packed = pack_params(params)                                   # hoisted: done once
    img = jax.random.normal(kx, (2, 3, 16, 16), jnp.float32)       # NCHW, like PyTorch

    fwd = jax.jit(test_gen_forward)
    out = fwd(img, packed)
    jax.block_until_ready(out)

    assert out.shape == (2, 3, 16, 16)
    assert bool(jnp.all(jnp.isfinite(out)))
    assert bool(jnp.all(jnp.abs(out) <= 1.0 + 1e-6))               # tanh output range
    print("KERNEL_OK")
</pallas_src>

<mosaic_0001>
module attributes {stable_mosaic.version = 11 : i64} {
  func.func @_fused_conv_bn_kernel(%arg0: i32, %arg1: i32, %arg2: i32, %arg3: memref<27x512xbf16, #tpu.memory_space<vmem>>, %arg4: memref<1x4x27xbf16, #tpu.memory_space<vmem>>, %arg5: memref<4x1xf32, #tpu.memory_space<vmem>>, %arg6: memref<4x1xf32, #tpu.memory_space<vmem>>, %arg7: memref<4x512xbf16, #tpu.memory_space<vmem>>, %arg8: memref<4x512xf32, #tpu.memory_space<vmem>>, %arg9: memref<4x1xf32, #tpu.memory_space<vmem>>, %arg10: memref<4x1xf32, #tpu.memory_space<vmem>>, %arg11: memref<4x1xf32, #tpu.memory_space<vmem>>, %arg12: memref<4x1xf32, #tpu.memory_space<vmem>>) attributes {dimension_semantics = [#tpu.dimension_semantics<arbitrary>, #tpu.dimension_semantics<arbitrary>, #tpu.dimension_semantics<arbitrary>], iteration_bounds = array<i64: 2, 1, 1>, scalar_prefetch = 0 : i64, scratch_operands = 5 : i64, tpu.core_type = #tpu.core_type<tc>, window_params = [{transform_indices = @transform_0, window_bounds = array<i64: 27, 512>}, {transform_indices = @transform_1, window_bounds = array<i64: 1, 4, 27>}, {pipeline_mode = #tpu.pipeline_mode<synchronous>, transform_indices = @transform_2, window_bounds = array<i64: 4, 1>}, {pipeline_mode = #tpu.pipeline_mode<synchronous>, transform_indices = @transform_3, window_bounds = array<i64: 4, 1>}, {transform_indices = @transform_4, window_bounds = array<i64: 4, 512>}]} {
    %c1_i32 = arith.constant 1 : i32
    %0 = arith.muli %arg1, %c1_i32 : i32
    %1 = arith.addi %0, %arg2 : i32
    %c512_i32 = arith.constant 512 : i32
    %2 = arith.muli %1, %c512_i32 : i32
    %3 = tpu.assume_multiple %2, 512 : i32
    %c0_i32 = arith.constant 0 : i32
    %4 = arith.cmpi eq, %arg0, %c0_i32 : i32
    %5 = arith.extui %4 : i1 to i32
    %c0_i32_0 = arith.constant 0 : i32
    %6 = arith.cmpi ne, %5, %c0_i32_0 : i32
    scf.if %6 {
      %c0_i32_3 = arith.constant 0 : i32
      %10 = arith.cmpi eq, %1, %c0_i32_3 : i32
      %11 = arith.extui %10 : i1 to i32
      %c0_i32_4 = arith.constant 0 : i32
      %12 = arith.cmpi ne, %11, %c0_i32_4 : i32
      scf.if %12 {
        %cst_20 = arith.constant 0.000000e+00 : f32
        %30 = vector.broadcast %cst_20 : f32 to vector<4x1xf32>
        %c0_21 = arith.constant 0 : index
        %c0_22 = arith.constant 0 : index
        %31 = vector.load %arg9[%c0_21, %c0_22] : memref<4x1xf32, #tpu.memory_space<vmem>>, vector<4x1xf32>
        tpu.vector_store %arg9[%c0_21, %c0_22], %30 {strides = array<i32>} : memref<4x1xf32, #tpu.memory_space<vmem>>, vector<4x1xf32>,
        %cst_23 = arith.constant 0.000000e+00 : f32
        %32 = vector.broadcast %cst_23 : f32 to vector<4x1xf32>
        %c0_24 = arith.constant 0 : index
        %c0_25 = arith.constant 0 : index
        %33 = vector.load %arg10[%c0_24, %c0_25] : memref<4x1xf32, #tpu.memory_space<vmem>>, vector<4x1xf32>
        tpu.vector_store %arg10[%c0_24, %c0_25], %32 {strides = array<i32>} : memref<4x1xf32, #tpu.memory_space<vmem>>, vector<4x1xf32>,
      } else {
      }
      %c0 = arith.constant 0 : index
      %c0_5 = arith.constant 0 : index
      %c0_6 = arith.constant 0 : index
      %13 = vector.load %arg4[%c0, %c0_5, %c0_6] : memref<1x4x27xbf16, #tpu.memory_space<vmem>>, vector<1x4x27xbf16>
      %14 = vector.shape_cast %13 : vector<1x4x27xbf16> to vector<4x27xbf16>
      %c0_7 = arith.constant 0 : index
      %c0_8 = arith.constant 0 : index
      %15 = vector.load %arg3[%c0_7, %c0_8] : memref<27x512xbf16, #tpu.memory_space<vmem>>, vector<27x512xbf16>
      %cst = arith.constant dense<0.000000e+00> : vector<4x512xf32>
      %16 = tpu.matmul %14, %15, %cst {dimension_numbers = #tpu.dot_dimension_numbers<[1], [0], [0], [1], [0, 0, 1, 1], [], []>} : vector<4x27xbf16>, vector<27x512xbf16>, vector<4x512xf32> -> vector<4x512xf32>
      %c0_9 = arith.constant 0 : index
      %17 = arith.index_cast %3 : i32 to index
      %18 = vector.load %arg8[%c0_9, %17] : memref<4x512xf32, #tpu.memory_space<vmem>>, vector<4x512xf32>
      tpu.vector_store %arg8[%c0_9, %17], %16 {strides = array<i32>} : memref<4x512xf32, #tpu.memory_space<vmem>>, vector<4x512xf32>,
      %c0_10 = arith.constant 0 : index
      %c0_11 = arith.constant 0 : index
      %19 = vector.load %arg9[%c0_10, %c0_11] : memref<4x1xf32, #tpu.memory_space<vmem>>, vector<4x1xf32>
      %cst_12 = arith.constant dense<0.000000e+00> : vector<4xf32>
      %20 = vector.multi_reduction <add>, %16, %cst_12 [1] : vector<4x512xf32> to vector<4xf32>
      %21 = vector.shape_cast %20 : vector<4xf32> to vector<4x1xf32>
      %22 = arith.addf %19, %21 : vector<4x1xf32>
      %c0_13 = arith.constant 0 : index
      %c0_14 = arith.constant 0 : index
      %23 = vector.load %arg9[%c0_13, %c0_14] : memref<4x1xf32, #tpu.memory_space<vmem>>, vector<4x1xf32>
      tpu.vector_store %arg9[%c0_13, %c0_14], %22 {strides = array<i32>} : memref<4x1xf32, #tpu.memory_space<vmem>>, vector<4x1xf32>,
      %c0_15 = arith.constant 0 : index
      %c0_16 = arith.constant 0 : index
      %24 = vector.load %arg10[%c0_15, %c0_16] : memref<4x1xf32, #tpu.memory_space<vmem>>, vector<4x1xf32>
      %25 = arith.mulf %16, %16 : vector<4x512xf32>
      %cst_17 = arith.constant dense<0.000000e+00> : vector<4xf32>
      %26 = vector.multi_reduction <add>, %25, %cst_17 [1] : vector<4x512xf32> to vector<4xf32>
      %27 = vector.shape_cast %26 : vector<4xf32> to vector<4x1xf32>
      %28 = arith.addf %24, %27 : vector<4x1xf32>
      %c0_18 = arith.constant 0 : index
      %c0_19 = arith.constant 0 : index
      %29 = vector.load %arg10[%c0_18, %c0_19] : memref<4x1xf32, #tpu.memory_space<vmem>>, vector<4x1xf32>
      tpu.vector_store %arg10[%c0_18, %c0_19], %28 {strides = array<i32>} : memref<4x1xf32, #tpu.memory_space<vmem>>, vector<4x1xf32>,
    } else {
    }
    %c1_i32_1 = arith.constant 1 : i32
    %7 = arith.cmpi eq, %arg0, %c1_i32_1 : i32
    %8 = arith.extui %7 : i1 to i32
    %c0_i32_2 = arith.constant 0 : i32
    %9 = arith.cmpi ne, %8, %c0_i32_2 : i32
    scf.if %9 {
      %c0_i32_3 = arith.constant 0 : i32
      %10 = arith.cmpi eq, %1, %c0_i32_3 : i32
      %11 = arith.extui %10 : i1 to i32
      %c0_i32_4 = arith.constant 0 : i32
      %12 = arith.cmpi ne, %11, %c0_i32_4 : i32
      scf.if %12 {
        %c0_12 = arith.constant 0 : index
        %c0_13 = arith.constant 0 : index
        %28 = vector.load %arg9[%c0_12, %c0_13] : memref<4x1xf32, #tpu.memory_space<vmem>>, vector<4x1xf32>
        %cst_14 = arith.constant 0.001953125 : f32
        %29 = vector.broadcast %cst_14 : f32 to vector<4x1xf32>
        %30 = arith.mulf %28, %29 : vector<4x1xf32>
        %c0_15 = arith.constant 0 : index
        %c0_16 = arith.constant 0 : index
        %31 = vector.load %arg10[%c0_15, %c0_16] : memref<4x1xf32, #tpu.memory_space<vmem>>, vector<4x1xf32>
        %cst_17 = arith.constant 0.001953125 : f32
        %32 = vector.broadcast %cst_17 : f32 to vector<4x1xf32>
        %33 = arith.mulf %31, %32 : vector<4x1xf32>
        %34 = arith.mulf %30, %30 : vector<4x1xf32>
        %35 = arith.subf %33, %34 : vector<4x1xf32>
        %cst_18 = arith.constant 0.000000e+00 : f32
        %36 = vector.broadcast %cst_18 : f32 to vector<4x1xf32>
        %37 = arith.maximumf %35, %36 : vector<4x1xf32>
        %c0_19 = arith.constant 0 : index
        %c0_20 = arith.constant 0 : index
        %38 = vector.load %arg5[%c0_19, %c0_20] : memref<4x1xf32, #tpu.memory_space<vmem>>, vector<4x1xf32>
        %cst_21 = arith.constant 9.99999974E-6 : f32
        %39 = vector.broadcast %cst_21 : f32 to vector<4x1xf32>
        %40 = arith.addf %37, %39 : vector<4x1xf32>
        %41 = math.rsqrt %40 : vector<4x1xf32>
        %42 = arith.mulf %38, %41 : vector<4x1xf32>
        %c0_22 = arith.constant 0 : index
        %c0_23 = arith.constant 0 : index
        %43 = vector.load %arg11[%c0_22, %c0_23] : memref<4x1xf32, #tpu.memory_space<vmem>>, vector<4x1xf32>
        tpu.vector_store %arg11[%c0_22, %c0_23], %42 {strides = array<i32>} : memref<4x1xf32, #tpu.memory_space<vmem>>, vector<4x1xf32>,
        %c0_24 = arith.constant 0 : index
        %c0_25 = arith.constant 0 : index
        %44 = vector.load %arg6[%c0_24, %c0_25] : memref<4x1xf32, #tpu.memory_space<vmem>>, vector<4x1xf32>
        %45 = arith.mulf %30, %42 : vector<4x1xf32>
        %46 = arith.subf %44, %45 : vector<4x1xf32>
        %c0_26 = arith.constant 0 : index
        %c0_27 = arith.constant 0 : index
        %47 = vector.load %arg12[%c0_26, %c0_27] : memref<4x1xf32, #tpu.memory_space<vmem>>, vector<4x1xf32>
        tpu.vector_store %arg12[%c0_26, %c0_27], %46 {strides = array<i32>} : memref<4x1xf32, #tpu.memory_space<vmem>>, vector<4x1xf32>,
      } else {
      }
      %c0 = arith.constant 0 : index
      %13 = arith.index_cast %3 : i32 to index
      %14 = vector.load %arg8[%c0, %13] : memref<4x512xf32, #tpu.memory_space<vmem>>, vector<4x512xf32>
      %c0_5 = arith.constant 0 : index
      %c0_6 = arith.constant 0 : index
      %15 = vector.load %arg11[%c0_5, %c0_6] : memref<4x1xf32, #tpu.memory_space<vmem>>, vector<4x1xf32>
      %16 = vector.broadcast %15 : vector<4x1xf32> to vector<4x512xf32>
      %17 = arith.mulf %14, %16 : vector<4x512xf32>
      %c0_7 = arith.constant 0 : index
      %c0_8 = arith.constant 0 : index
      %18 = vector.load %arg12[%c0_7, %c0_8] : memref<4x1xf32, #tpu.memory_space<vmem>>, vector<4x1xf32>
      %19 = vector.broadcast %18 : vector<4x1xf32> to vector<4x512xf32>
      %20 = arith.addf %17, %19 : vector<4x512xf32>
      %cst = arith.constant 0.000000e+00 : f32
      %21 = vector.broadcast %cst : f32 to vector<4x512xf32>
      %22 = arith.cmpf oge, %20, %21 : vector<4x512xf32>
      %cst_9 = arith.constant 2.000000e-01 : f32
      %23 = vector.broadcast %cst_9 : f32 to vector<4x512xf32>
      %24 = arith.mulf %23, %20 : vector<4x512xf32>
      %25 = arith.select %22, %20, %24 : vector<4x512xi1>, vector<4x512xf32>
      %26 = arith.truncf %25 : vector<4x512xf32> to vector<4x512xbf16>
      %c0_10 = arith.constant 0 : index
      %c0_11 = arith.constant 0 : index
      %27 = vector.load %arg7[%c0_10, %c0_11] : memref<4x512xbf16, #tpu.memory_space<vmem>>, vector<4x512xbf16>
      tpu.vector_store %arg7[%c0_10, %c0_11], %26 {strides = array<i32>} : memref<4x512xbf16, #tpu.memory_space<vmem>>, vector<4x512xbf16>,
    } else {
    }
    return
  }
  func.func @transform_0(%arg0: i32, %arg1: i32, %arg2: i32) -> (i32, i32) {
    %c1_i32 = arith.constant 1 : i32
    %0 = arith.subi %c1_i32, %arg0 : i32
    %1 = arith.muli %arg2, %0 : i32
    %c0_i32 = arith.constant 0 : i32
    %c0_i32_0 = arith.constant 0 : i32
    return %c0_i32, %1 : i32, i32
  }
  func.func @transform_1(%arg0: i32, %arg1: i32, %arg2: i32) -> (i32, i32, i32) {
    %c1_i32 = arith.constant 1 : i32
    %0 = arith.subi %c1_i32, %arg0 : i32
    %1 = arith.muli %arg1, %0 : i32
    %c0_i32 = arith.constant 0 : i32
    %c0_i32_0 = arith.constant 0 : i32
    %c0_i32_1 = arith.constant 0 : i32
    return %1, %c0_i32, %c0_i32_0 : i32, i32, i32
  }
  func.func @transform_2(%arg0: i32, %arg1: i32, %arg2: i32) -> (i32, i32) {
    %c0_i32 = arith.constant 0 : i32
    %c0_i32_0 = arith.constant 0 : i32
    %c0_i32_1 = arith.constant 0 : i32
    return %c0_i32, %c0_i32_0 : i32, i32
  }
  func.func @transform_3(%arg0: i32, %arg1: i32, %arg2: i32) -> (i32, i32) {
    %c0_i32 = arith.constant 0 : i32
    %c0_i32_0 = arith.constant 0 : i32
    %c0_i32_1 = arith.constant 0 : i32
    return %c0_i32, %c0_i32_0 : i32, i32
  }
  func.func @transform_4(%arg0: i32, %arg1: i32, %arg2: i32) -> (i32, i32) {
    %c1_i32 = arith.constant 1 : i32
    %0 = arith.muli %arg1, %c1_i32 : i32
    %1 = arith.addi %0, %arg2 : i32
    %2 = arith.muli %1, %arg0 : i32
    %c0_i32 = arith.constant 0 : i32
    %c0_i32_0 = arith.constant 0 : i32
    return %c0_i32, %2 : i32, i32
  }
}

module attributes {stable_mosaic.version = 11 : i64} {
  func.func @_fused_conv_bn_kernel(%arg0: i32, %arg1: i32, %arg2: i32, %arg3: memref<36x512xbf16, #tpu.memory_space<vmem>>, %arg4: memref<1x4x36xbf16, #tpu.memory_space<vmem>>, %arg5: memref<4x1xf32, #tpu.memory_space<vmem>>, %arg6: memref<4x1xf32, #tpu.memory_space<vmem>>, %arg7: memref<4x512xbf16, #tpu.memory_space<vmem>>, %arg8: memref<4x512xf32, #tpu.memory_space<vmem>>, %arg9: memref<4x1xf32, #tpu.memory_space<vmem>>, %arg10: memref<4x1xf32, #tpu.memory_space<vmem>>, %arg11: memref<4x1xf32, #tpu.memory_space<vmem>>, %arg12: memref<4x1xf32, #tpu.memory_space<vmem>>) attributes {dimension_semantics = [#tpu.dimension_semantics<arbitrary>, #tpu.dimension_semantics<arbitrary>, #tpu.dimension_semantics<arbitrary>], iteration_bounds = array<i64: 2, 1, 1>, scalar_prefetch = 0 : i64, scratch_operands = 5 : i64, tpu.core_type = #tpu.core_type<tc>, window_params = [{transform_indices = @transform_0, window_bounds = array<i64: 36, 512>}, {transform_indices = @transform_1, window_bounds = array<i64: 1, 4, 36>}, {pipeline_mode = #tpu.pipeline_mode<synchronous>, transform_indices = @transform_2, window_bounds = array<i64: 4, 1>}, {pipeline_mode = #tpu.pipeline_mode<synchronous>, transform_indices = @transform_3, window_bounds = array<i64: 4, 1>}, {transform_indices = @transform_4, window_bounds = array<i64: 4, 512>}]} {
    %c1_i32 = arith.constant 1 : i32
    %0 = arith.muli %arg1, %c1_i32 : i32
    %1 = arith.addi %0, %arg2 : i32
    %c512_i32 = arith.constant 512 : i32
    %2 = arith.muli %1, %c512_i32 : i32
    %3 = tpu.assume_multiple %2, 512 : i32
    %c0_i32 = arith.constant 0 : i32
    %4 = arith.cmpi eq, %arg0, %c0_i32 : i32
    %5 = arith.extui %4 : i1 to i32
    %c0_i32_0 = arith.constant 0 : i32
    %6 = arith.cmpi ne, %5, %c0_i32_0 : i32
    scf.if %6 {
      %c0_i32_3 = arith.constant 0 : i32
      %10 = arith.cmpi eq, %1, %c0_i32_3 : i32
      %11 = arith.extui %10 : i1 to i32
      %c0_i32_4 = arith.constant 0 : i32
      %12 = arith.cmpi ne, %11, %c0_i32_4 : i32
      scf.if %12 {
        %cst_20 = arith.constant 0.000000e+00 : f32
        %30 = vector.broadcast %cst_20 : f32 to vector<4x1xf32>
        %c0_21 = arith.constant 0 : index
        %c0_22 = arith.constant 0 : index
        %31 = vector.load %arg9[%c0_21, %c0_22] : memref<4x1xf32, #tpu.memory_space<vmem>>, vector<4x1xf32>
        tpu.vector_store %arg9[%c0_21, %c0_22], %30 {strides = array<i32>} : memref<4x1xf32, #tpu.memory_space<vmem>>, vector<4x1xf32>,
        %cst_23 = arith.constant 0.000000e+00 : f32
        %32 = vector.broadcast %cst_23 : f32 to vector<4x1xf32>
        %c0_24 = arith.constant 0 : index
        %c0_25 = arith.constant 0 : index
        %33 = vector.load %arg10[%c0_24, %c0_25] : memref<4x1xf32, #tpu.memory_space<vmem>>, vector<4x1xf32>
        tpu.vector_store %arg10[%c0_24, %c0_25], %32 {strides = array<i32>} : memref<4x1xf32, #tpu.memory_space<vmem>>, vector<4x1xf32>,
      } else {
      }
      %c0 = arith.constant 0 : index
      %c0_5 = arith.constant 0 : index
      %c0_6 = arith.constant 0 : index
      %13 = vector.load %arg4[%c0, %c0_5, %c0_6] : memref<1x4x36xbf16, #tpu.memory_space<vmem>>, vector<1x4x36xbf16>
      %14 = vector.shape_cast %13 : vector<1x4x36xbf16> to vector<4x36xbf16>
      %c0_7 = arith.constant 0 : index
      %c0_8 = arith.constant 0 : index
      %15 = vector.load %arg3[%c0_7, %c0_8] : memref<36x512xbf16, #tpu.memory_space<vmem>>, vector<36x512xbf16>
      %cst = arith.constant dense<0.000000e+00> : vector<4x512xf32>
      %16 = tpu.matmul %14, %15, %cst {dimension_numbers = #tpu.dot_dimension_numbers<[1], [0], [0], [1], [0, 0, 1, 1], [], []>} : vector<4x36xbf16>, vector<36x512xbf16>, vector<4x512xf32> -> vector<4x512xf32>
      %c0_9 = arith.constant 0 : index
      %17 = arith.index_cast %3 : i32 to index
      %18 = vector.load %arg8[%c0_9, %17] : memref<4x512xf32, #tpu.memory_space<vmem>>, vector<4x512xf32>
      tpu.vector_store %arg8[%c0_9, %17], %16 {strides = array<i32>} : memref<4x512xf32, #tpu.memory_space<vmem>>, vector<4x512xf32>,
      %c0_10 = arith.constant 0 : index
      %c0_11 = arith.constant 0 : index
      %19 = vector.load %arg9[%c0_10, %c0_11] : memref<4x1xf32, #tpu.memory_space<vmem>>, vector<4x1xf32>
      %cst_12 = arith.constant dense<0.000000e+00> : vector<4xf32>
      %20 = vector.multi_reduction <add>, %16, %cst_12 [1] : vector<4x512xf32> to vector<4xf32>
      %21 = vector.shape_cast %20 : vector<4xf32> to vector<4x1xf32>
      %22 = arith.addf %19, %21 : vector<4x1xf32>
      %c0_13 = arith.constant 0 : index
      %c0_14 = arith.constant 0 : index
      %23 = vector.load %arg9[%c0_13, %c0_14] : memref<4x1xf32, #tpu.memory_space<vmem>>, vector<4x1xf32>
      tpu.vector_store %arg9[%c0_13, %c0_14], %22 {strides = array<i32>} : memref<4x1xf32, #tpu.memory_space<vmem>>, vector<4x1xf32>,
      %c0_15 = arith.constant 0 : index
      %c0_16 = arith.constant 0 : index
      %24 = vector.load %arg10[%c0_15, %c0_16] : memref<4x1xf32, #tpu.memory_space<vmem>>, vector<4x1xf32>
      %25 = arith.mulf %16, %16 : vector<4x512xf32>
      %cst_17 = arith.constant dense<0.000000e+00> : vector<4xf32>
      %26 = vector.multi_reduction <add>, %25, %cst_17 [1] : vector<4x512xf32> to vector<4xf32>
      %27 = vector.shape_cast %26 : vector<4xf32> to vector<4x1xf32>
      %28 = arith.addf %24, %27 : vector<4x1xf32>
      %c0_18 = arith.constant 0 : index
      %c0_19 = arith.constant 0 : index
      %29 = vector.load %arg10[%c0_18, %c0_19] : memref<4x1xf32, #tpu.memory_space<vmem>>, vector<4x1xf32>
      tpu.vector_store %arg10[%c0_18, %c0_19], %28 {strides = array<i32>} : memref<4x1xf32, #tpu.memory_space<vmem>>, vector<4x1xf32>,
    } else {
    }
    %c1_i32_1 = arith.constant 1 : i32
    %7 = arith.cmpi eq, %arg0, %c1_i32_1 : i32
    %8 = arith.extui %7 : i1 to i32
    %c0_i32_2 = arith.constant 0 : i32
    %9 = arith.cmpi ne, %8, %c0_i32_2 : i32
    scf.if %9 {
      %c0_i32_3 = arith.constant 0 : i32
      %10 = arith.cmpi eq, %1, %c0_i32_3 : i32
      %11 = arith.extui %10 : i1 to i32
      %c0_i32_4 = arith.constant 0 : i32
      %12 = arith.cmpi ne, %11, %c0_i32_4 : i32
      scf.if %12 {
        %c0_11 = arith.constant 0 : index
        %c0_12 = arith.constant 0 : index
        %23 = vector.load %arg9[%c0_11, %c0_12] : memref<4x1xf32, #tpu.memory_space<vmem>>, vector<4x1xf32>
        %cst = arith.constant 0.001953125 : f32
        %24 = vector.broadcast %cst : f32 to vector<4x1xf32>
        %25 = arith.mulf %23, %24 : vector<4x1xf32>
        %c0_13 = arith.constant 0 : index
        %c0_14 = arith.constant 0 : index
        %26 = vector.load %arg10[%c0_13, %c0_14] : memref<4x1xf32, #tpu.memory_space<vmem>>, vector<4x1xf32>
        %cst_15 = arith.constant 0.001953125 : f32
        %27 = vector.broadcast %cst_15 : f32 to vector<4x1xf32>
        %28 = arith.mulf %26, %27 : vector<4x1xf32>
        %29 = arith.mulf %25, %25 : vector<4x1xf32>
        %30 = arith.subf %28, %29 : vector<4x1xf32>
        %cst_16 = arith.constant 0.000000e+00 : f32
        %31 = vector.broadcast %cst_16 : f32 to vector<4x1xf32>
        %32 = arith.maximumf %30, %31 : vector<4x1xf32>
        %c0_17 = arith.constant 0 : index
        %c0_18 = arith.constant 0 : index
        %33 = vector.load %arg5[%c0_17, %c0_18] : memref<4x1xf32, #tpu.memory_space<vmem>>, vector<4x1xf32>
        %cst_19 = arith.constant 9.99999974E-6 : f32
        %34 = vector.broadcast %cst_19 : f32 to vector<4x1xf32>
        %35 = arith.addf %32, %34 : vector<4x1xf32>
        %36 = math.rsqrt %35 : vector<4x1xf32>
        %37 = arith.mulf %33, %36 : vector<4x1xf32>
        %c0_20 = arith.constant 0 : index
        %c0_21 = arith.constant 0 : index
        %38 = vector.load %arg11[%c0_20, %c0_21] : memref<4x1xf32, #tpu.memory_space<vmem>>, vector<4x1xf32>
        tpu.vector_store %arg11[%c0_20, %c0_21], %37 {strides = array<i32>} : memref<4x1xf32, #tpu.memory_space<vmem>>, vector<4x1xf32>,
        %c0_22 = arith.constant 0 : index
        %c0_23 = arith.constant 0 : index
        %39 = vector.load %arg6[%c0_22, %c0_23] : memref<4x1xf32, #tpu.memory_space<vmem>>, vector<4x1xf32>
        %40 = arith.mulf %25, %37 : vector<4x1xf32>
        %41 = arith.subf %39, %40 : vector<4x1xf32>
        %c0_24 = arith.constant 0 : index
        %c0_25 = arith.constant 0 : index
        %42 = vector.load %arg12[%c0_24, %c0_25] : memref<4x1xf32, #tpu.memory_space<vmem>>, vector<4x1xf32>
        tpu.vector_store %arg12[%c0_24, %c0_25], %41 {strides = array<i32>} : memref<4x1xf32, #tpu.memory_space<vmem>>, vector<4x1xf32>,
      } else {
      }
      %c0 = arith.constant 0 : index
      %13 = arith.index_cast %3 : i32 to index
      %14 = vector.load %arg8[%c0, %13] : memref<4x512xf32, #tpu.memory_space<vmem>>, vector<4x512xf32>
      %c0_5 = arith.constant 0 : index
      %c0_6 = arith.constant 0 : index
      %15 = vector.load %arg11[%c0_5, %c0_6] : memref<4x1xf32, #tpu.memory_space<vmem>>, vector<4x1xf32>
      %16 = vector.broadcast %15 : vector<4x1xf32> to vector<4x512xf32>
      %17 = arith.mulf %14, %16 : vector<4x512xf32>
      %c0_7 = arith.constant 0 : index
      %c0_8 = arith.constant 0 : index
      %18 = vector.load %arg12[%c0_7, %c0_8] : memref<4x1xf32, #tpu.memory_space<vmem>>, vector<4x1xf32>
      %19 = vector.broadcast %18 : vector<4x1xf32> to vector<4x512xf32>
      %20 = arith.addf %17, %19 : vector<4x512xf32>
      %21 = arith.truncf %20 : vector<4x512xf32> to vector<4x512xbf16>
      %c0_9 = arith.constant 0 : index
      %c0_10 = arith.constant 0 : index
      %22 = vector.load %arg7[%c0_9, %c0_10] : memref<4x512xbf16, #tpu.memory_space<vmem>>, vector<4x512xbf16>
      tpu.vector_store %arg7[%c0_9, %c0_10], %21 {strides = array<i32>} : memref<4x512xbf16, #tpu.memory_space<vmem>>, vector<4x512xbf16>,
    } else {
    }
    return
  }
  func.func @transform_0(%arg0: i32, %arg1: i32, %arg2: i32) -> (i32, i32) {
    %c1_i32 = arith.constant 1 : i32
    %0 = arith.subi %c1_i32, %arg0 : i32
    %1 = arith.muli %arg2, %0 : i32
    %c0_i32 = arith.constant 0 : i32
    %c0_i32_0 = arith.constant 0 : i32
    return %c0_i32, %1 : i32, i32
  }
  func.func @transform_1(%arg0: i32, %arg1: i32, %arg2: i32) -> (i32, i32, i32) {
    %c1_i32 = arith.constant 1 : i32
    %0 = arith.subi %c1_i32, %arg0 : i32
    %1 = arith.muli %arg1, %0 : i32
    %c0_i32 = arith.constant 0 : i32
    %c0_i32_0 = arith.constant 0 : i32
    %c0_i32_1 = arith.constant 0 : i32
    return %1, %c0_i32, %c0_i32_0 : i32, i32, i32
  }
  func.func @transform_2(%arg0: i32, %arg1: i32, %arg2: i32) -> (i32, i32) {
    %c0_i32 = arith.constant 0 : i32
    %c0_i32_0 = arith.constant 0 : i32
    %c0_i32_1 = arith.constant 0 : i32
    return %c0_i32, %c0_i32_0 : i32, i32
  }
  func.func @transform_3(%arg0: i32, %arg1: i32, %arg2: i32) -> (i32, i32) {
    %c0_i32 = arith.constant 0 : i32
    %c0_i32_0 = arith.constant 0 : i32
    %c0_i32_1 = arith.constant 0 : i32
    return %c0_i32, %c0_i32_0 : i32, i32
  }
  func.func @transform_4(%arg0: i32, %arg1: i32, %arg2: i32) -> (i32, i32) {
    %c1_i32 = arith.constant 1 : i32
    %0 = arith.muli %arg1, %c1_i32 : i32
    %1 = arith.addi %0, %arg2 : i32
    %2 = arith.muli %1, %arg0 : i32
    %c0_i32 = arith.constant 0 : i32
    %c0_i32_0 = arith.constant 0 : i32
    return %c0_i32, %2 : i32, i32
  }
}

module attributes {stable_mosaic.version = 11 : i64} {
  func.func @_max4_kernel(%arg0: i32, %arg1: memref<4x128xbf16, #tpu.memory_space<vmem>>, %arg2: memref<4x128xbf16, #tpu.memory_space<vmem>>, %arg3: memref<4x128xbf16, #tpu.memory_space<vmem>>, %arg4: memref<4x128xbf16, #tpu.memory_space<vmem>>, %arg5: memref<4x128xbf16, #tpu.memory_space<vmem>>) attributes {dimension_semantics = [#tpu.dimension_semantics<parallel>], iteration_bounds = array<i64: 1>, scalar_prefetch = 0 : i64, scratch_operands = 0 : i64, tpu.core_type = #tpu.core_type<tc>, window_params = [{transform_indices = @transform_0, window_bounds = array<i64: 4, 128>}, {transform_indices = @transform_1, window_bounds = array<i64: 4, 128>}, {transform_indices = @transform_2, window_bounds = array<i64: 4, 128>}, {transform_indices = @transform_3, window_bounds = array<i64: 4, 128>}, {transform_indices = @transform_4, window_bounds = array<i64: 4, 128>}]} {
    %c0 = arith.constant 0 : index
    %c0_0 = arith.constant 0 : index
    %0 = vector.load %arg1[%c0, %c0_0] : memref<4x128xbf16, #tpu.memory_space<vmem>>, vector<4x128xbf16>
    %c0_1 = arith.constant 0 : index
    %c0_2 = arith.constant 0 : index
    %1 = vector.load %arg2[%c0_1, %c0_2] : memref<4x128xbf16, #tpu.memory_space<vmem>>, vector<4x128xbf16>
    %2 = arith.maximumf %0, %1 : vector<4x128xbf16>
    %c0_3 = arith.constant 0 : index
    %c0_4 = arith.constant 0 : index
    %3 = vector.load %arg3[%c0_3, %c0_4] : memref<4x128xbf16, #tpu.memory_space<vmem>>, vector<4x128xbf16>
    %c0_5 = arith.constant 0 : index
    %c0_6 = arith.constant 0 : index
    %4 = vector.load %arg4[%c0_5, %c0_6] : memref<4x128xbf16, #tpu.memory_space<vmem>>, vector<4x128xbf16>
    %5 = arith.maximumf %3, %4 : vector<4x128xbf16>
    %6 = arith.maximumf %2, %5 : vector<4x128xbf16>
    %c0_7 = arith.constant 0 : index
    %c0_8 = arith.constant 0 : index
    %7 = vector.load %arg5[%c0_7, %c0_8] : memref<4x128xbf16, #tpu.memory_space<vmem>>, vector<4x128xbf16>
    tpu.vector_store %arg5[%c0_7, %c0_8], %6 {strides = array<i32>} : memref<4x128xbf16, #tpu.memory_space<vmem>>, vector<4x128xbf16>,
    return
  }
  func.func @transform_0(%arg0: i32) -> (i32, i32) {
    %c0_i32 = arith.constant 0 : i32
    %c0_i32_0 = arith.constant 0 : i32
    return %c0_i32, %arg0 : i32, i32
  }
  func.func @transform_1(%arg0: i32) -> (i32, i32) {
    %c0_i32 = arith.constant 0 : i32
    %c0_i32_0 = arith.constant 0 : i32
    return %c0_i32, %arg0 : i32, i32
  }
  func.func @transform_2(%arg0: i32) -> (i32, i32) {
    %c0_i32 = arith.constant 0 : i32
    %c0_i32_0 = arith.constant 0 : i32
    return %c0_i32, %arg0 : i32, i32
  }
  func.func @transform_3(%arg0: i32) -> (i32, i32) {
    %c0_i32 = arith.constant 0 : i32
    %c0_i32_0 = arith.constant 0 : i32
    return %c0_i32, %arg0 : i32, i32
  }
  func.func @transform_4(%arg0: i32) -> (i32, i32) {
    %c0_i32 = arith.constant 0 : i32
    %c0_i32_0 = arith.constant 0 : i32
    return %c0_i32, %arg0 : i32, i32
  }
}

module attributes {stable_mosaic.version = 11 : i64} {
  func.func @_fused_conv_bn_kernel(%arg0: i32, %arg1: i32, %arg2: i32, %arg3: memref<36x128xbf16, #tpu.memory_space<vmem>>, %arg4: memref<1x8x36xbf16, #tpu.memory_space<vmem>>, %arg5: memref<8x1xf32, #tpu.memory_space<vmem>>, %arg6: memref<8x1xf32, #tpu.memory_space<vmem>>, %arg7: memref<8x128xbf16, #tpu.memory_space<vmem>>, %arg8: memref<8x128xf32, #tpu.memory_space<vmem>>, %arg9: memref<8x1xf32, #tpu.memory_space<vmem>>, %arg10: memref<8x1xf32, #tpu.memory_space<vmem>>, %arg11: memref<8x1xf32, #tpu.memory_space<vmem>>, %arg12: memref<8x1xf32, #tpu.memory_space<vmem>>) attributes {dimension_semantics = [#tpu.dimension_semantics<arbitrary>, #tpu.dimension_semantics<arbitrary>, #tpu.dimension_semantics<arbitrary>], iteration_bounds = array<i64: 2, 1, 1>, scalar_prefetch = 0 : i64, scratch_operands = 5 : i64, tpu.core_type = #tpu.core_type<tc>, window_params = [{transform_indices = @transform_0, window_bounds = array<i64: 36, 128>}, {transform_indices = @transform_1, window_bounds = array<i64: 1, 8, 36>}, {pipeline_mode = #tpu.pipeline_mode<synchronous>, transform_indices = @transform_2, window_bounds = array<i64: 8, 1>}, {pipeline_mode = #tpu.pipeline_mode<synchronous>, transform_indices = @transform_3, window_bounds = array<i64: 8, 1>}, {transform_indices = @transform_4, window_bounds = array<i64: 8, 128>}]} {
    %c1_i32 = arith.constant 1 : i32
    %0 = arith.muli %arg1, %c1_i32 : i32
    %1 = arith.addi %0, %arg2 : i32
    %c128_i32 = arith.constant 128 : i32
    %2 = arith.muli %1, %c128_i32 : i32
    %3 = tpu.assume_multiple %2, 128 : i32
    %c0_i32 = arith.constant 0 : i32
    %4 = arith.cmpi eq, %arg0, %c0_i32 : i32
    %5 = arith.extui %4 : i1 to i32
    %c0_i32_0 = arith.constant 0 : i32
    %6 = arith.cmpi ne, %5, %c0_i32_0 : i32
    scf.if %6 {
      %c0_i32_3 = arith.constant 0 : i32
      %10 = arith.cmpi eq, %1, %c0_i32_3 : i32
      %11 = arith.extui %10 : i1 to i32
      %c0_i32_4 = arith.constant 0 : i32
      %12 = arith.cmpi ne, %11, %c0_i32_4 : i32
      scf.if %12 {
        %cst_20 = arith.constant 0.000000e+00 : f32
        %30 = vector.broadcast %cst_20 : f32 to vector<8x1xf32>
        %c0_21 = arith.constant 0 : index
        %c0_22 = arith.constant 0 : index
        %31 = vector.load %arg9[%c0_21, %c0_22] : memref<8x1xf32, #tpu.memory_space<vmem>>, vector<8x1xf32>
        tpu.vector_store %arg9[%c0_21, %c0_22], %30 {strides = array<i32>} : memref<8x1xf32, #tpu.memory_space<vmem>>, vector<8x1xf32>,
        %cst_23 = arith.constant 0.000000e+00 : f32
        %32 = vector.broadcast %cst_23 : f32 to vector<8x1xf32>
        %c0_24 = arith.constant 0 : index
        %c0_25 = arith.constant 0 : index
        %33 = vector.load %arg10[%c0_24, %c0_25] : memref<8x1xf32, #tpu.memory_space<vmem>>, vector<8x1xf32>
        tpu.vector_store %arg10[%c0_24, %c0_25], %32 {strides = array<i32>} : memref<8x1xf32, #tpu.memory_space<vmem>>, vector<8x1xf32>,
      } else {
      }
      %c0 = arith.constant 0 : index
      %c0_5 = arith.constant 0 : index
      %c0_6 = arith.constant 0 : index
      %13 = vector.load %arg4[%c0, %c0_5, %c0_6] : memref<1x8x36xbf16, #tpu.memory_space<vmem>>, vector<1x8x36xbf16>
      %14 = vector.shape_cast %13 : vector<1x8x36xbf16> to vector<8x36xbf16>
      %c0_7 = arith.constant 0 : index
      %c0_8 = arith.constant 0 : index
      %15 = vector.load %arg3[%c0_7, %c0_8] : memref<36x128xbf16, #tpu.memory_space<vmem>>, vector<36x128xbf16>
      %cst = arith.constant dense<0.000000e+00> : vector<8x128xf32>
      %16 = tpu.matmul %14, %15, %cst {dimension_numbers = #tpu.dot_dimension_numbers<[1], [0], [0], [1], [0, 0, 1, 1], [], []>} : vector<8x36xbf16>, vector<36x128xbf16>, vector<8x128xf32> -> vector<8x128xf32>
      %c0_9 = arith.constant 0 : index
      %17 = arith.index_cast %3 : i32 to index
      %18 = vector.load %arg8[%c0_9, %17] : memref<8x128xf32, #tpu.memory_space<vmem>>, vector<8x128xf32>
      tpu.vector_store %arg8[%c0_9, %17], %16 {strides = array<i32>} : memref<8x128xf32, #tpu.memory_space<vmem>>, vector<8x128xf32>,
      %c0_10 = arith.constant 0 : index
      %c0_11 = arith.constant 0 : index
      %19 = vector.load %arg9[%c0_10, %c0_11] : memref<8x1xf32, #tpu.memory_space<vmem>>, vector<8x1xf32>
      %cst_12 = arith.constant dense<0.000000e+00> : vector<8xf32>
      %20 = vector.multi_reduction <add>, %16, %cst_12 [1] : vector<8x128xf32> to vector<8xf32>
      %21 = vector.shape_cast %20 : vector<8xf32> to vector<8x1xf32>
      %22 = arith.addf %19, %21 : vector<8x1xf32>
      %c0_13 = arith.constant 0 : index
      %c0_14 = arith.constant 0 : index
      %23 = vector.load %arg9[%c0_13, %c0_14] : memref<8x1xf32, #tpu.memory_space<vmem>>, vector<8x1xf32>
      tpu.vector_store %arg9[%c0_13, %c0_14], %22 {strides = array<i32>} : memref<8x1xf32, #tpu.memory_space<vmem>>, vector<8x1xf32>,
      %c0_15 = arith.constant 0 : index
      %c0_16 = arith.constant 0 : index
      %24 = vector.load %arg10[%c0_15, %c0_16] : memref<8x1xf32, #tpu.memory_space<vmem>>, vector<8x1xf32>
      %25 = arith.mulf %16, %16 : vector<8x128xf32>
      %cst_17 = arith.constant dense<0.000000e+00> : vector<8xf32>
      %26 = vector.multi_reduction <add>, %25, %cst_17 [1] : vector<8x128xf32> to vector<8xf32>
      %27 = vector.shape_cast %26 : vector<8xf32> to vector<8x1xf32>
      %28 = arith.addf %24, %27 : vector<8x1xf32>
      %c0_18 = arith.constant 0 : index
      %c0_19 = arith.constant 0 : index
      %29 = vector.load %arg10[%c0_18, %c0_19] : memref<8x1xf32, #tpu.memory_space<vmem>>, vector<8x1xf32>
      tpu.vector_store %arg10[%c0_18, %c0_19], %28 {strides = array<i32>} : memref<8x1xf32, #tpu.memory_space<vmem>>, vector<8x1xf32>,
    } else {
    }
    %c1_i32_1 = arith.constant 1 : i32
    %7 = arith.cmpi eq, %arg0, %c1_i32_1 : i32
    %8 = arith.extui %7 : i1 to i32
    %c0_i32_2 = arith.constant 0 : i32
    %9 = arith.cmpi ne, %8, %c0_i32_2 : i32
    scf.if %9 {
      %c0_i32_3 = arith.constant 0 : i32
      %10 = arith.cmpi eq, %1, %c0_i32_3 : i32
      %11 = arith.extui %10 : i1 to i32
      %c0_i32_4 = arith.constant 0 : i32
      %12 = arith.cmpi ne, %11, %c0_i32_4 : i32
      scf.if %12 {
        %c0_12 = arith.constant 0 : index
        %c0_13 = arith.constant 0 : index
        %28 = vector.load %arg9[%c0_12, %c0_13] : memref<8x1xf32, #tpu.memory_space<vmem>>, vector<8x1xf32>
        %cst_14 = arith.constant 7.812500e-03 : f32
        %29 = vector.broadcast %cst_14 : f32 to vector<8x1xf32>
        %30 = arith.mulf %28, %29 : vector<8x1xf32>
        %c0_15 = arith.constant 0 : index
        %c0_16 = arith.constant 0 : index
        %31 = vector.load %arg10[%c0_15, %c0_16] : memref<8x1xf32, #tpu.memory_space<vmem>>, vector<8x1xf32>
        %cst_17 = arith.constant 7.812500e-03 : f32
        %32 = vector.broadcast %cst_17 : f32 to vector<8x1xf32>
        %33 = arith.mulf %31, %32 : vector<8x1xf32>
        %34 = arith.mulf %30, %30 : vector<8x1xf32>
        %35 = arith.subf %33, %34 : vector<8x1xf32>
        %cst_18 = arith.constant 0.000000e+00 : f32
        %36 = vector.broadcast %cst_18 : f32 to vector<8x1xf32>
        %37 = arith.maximumf %35, %36 : vector<8x1xf32>
        %c0_19 = arith.constant 0 : index
        %c0_20 = arith.constant 0 : index
        %38 = vector.load %arg5[%c0_19, %c0_20] : memref<8x1xf32, #tpu.memory_space<vmem>>, vector<8x1xf32>
        %cst_21 = arith.constant 9.99999974E-6 : f32
        %39 = vector.broadcast %cst_21 : f32 to vector<8x1xf32>
        %40 = arith.addf %37, %39 : vector<8x1xf32>
        %41 = math.rsqrt %40 : vector<8x1xf32>
        %42 = arith.mulf %38, %41 : vector<8x1xf32>
        %c0_22 = arith.constant 0 : index
        %c0_23 = arith.constant 0 : index
        %43 = vector.load %arg11[%c0_22, %c0_23] : memref<8x1xf32, #tpu.memory_space<vmem>>, vector<8x1xf32>
        tpu.vector_store %arg11[%c0_22, %c0_23], %42 {strides = array<i32>} : memref<8x1xf32, #tpu.memory_space<vmem>>, vector<8x1xf32>,
        %c0_24 = arith.constant 0 : index
        %c0_25 = arith.constant 0 : index
        %44 = vector.load %arg6[%c0_24, %c0_25] : memref<8x1xf32, #tpu.memory_space<vmem>>, vector<8x1xf32>
        %45 = arith.mulf %30, %42 : vector<8x1xf32>
        %46 = arith.subf %44, %45 : vector<8x1xf32>
        %c0_26 = arith.constant 0 : index
        %c0_27 = arith.constant 0 : index
        %47 = vector.load %arg12[%c0_26, %c0_27] : memref<8x1xf32, #tpu.memory_space<vmem>>, vector<8x1xf32>
        tpu.vector_store %arg12[%c0_26, %c0_27], %46 {strides = array<i32>} : memref<8x1xf32, #tpu.memory_space<vmem>>, vector<8x1xf32>,
      } else {
      }
      %c0 = arith.constant 0 : index
      %13 = arith.index_cast %3 : i32 to index
      %14 = vector.load %arg8[%c0, %13] : memref<8x128xf32, #tpu.memory_space<vmem>>, vector<8x128xf32>
      %c0_5 = arith.constant 0 : index
      %c0_6 = arith.constant 0 : index
      %15 = vector.load %arg11[%c0_5, %c0_6] : memref<8x1xf32, #tpu.memory_space<vmem>>, vector<8x1xf32>
      %16 = vector.broadcast %15 : vector<8x1xf32> to vector<8x128xf32>
      %17 = arith.mulf %14, %16 : vector<8x128xf32>
      %c0_7 = arith.constant 0 : index
      %c0_8 = arith.constant 0 : index
      %18 = vector.load %arg12[%c0_7, %c0_8] : memref<8x1xf32, #tpu.memory_space<vmem>>, vector<8x1xf32>
      %19 = vector.broadcast %18 : vector<8x1xf32> to vector<8x128xf32>
      %20 = arith.addf %17, %19 : vector<8x128xf32>
      %cst = arith.constant 0.000000e+00 : f32
      %21 = vector.broadcast %cst : f32 to vector<8x128xf32>
      %22 = arith.cmpf oge, %20, %21 : vector<8x128xf32>
      %cst_9 = arith.constant 2.000000e-01 : f32
      %23 = vector.broadcast %cst_9 : f32 to vector<8x128xf32>
      %24 = arith.mulf %23, %20 : vector<8x128xf32>
      %25 = arith.select %22, %20, %24 : vector<8x128xi1>, vector<8x128xf32>
      %26 = arith.truncf %25 : vector<8x128xf32> to vector<8x128xbf16>
      %c0_10 = arith.constant 0 : index
      %c0_11 = arith.constant 0 : index
      %27 = vector.load %arg7[%c0_10, %c0_11] : memref<8x128xbf16, #tpu.memory_space<vmem>>, vector<8x128xbf16>
      tpu.vector_store %arg7[%c0_10, %c0_11], %26 {strides = array<i32>} : memref<8x128xbf16, #tpu.memory_space<vmem>>, vector<8x128xbf16>,
    } else {
    }
    return
  }
  func.func @transform_0(%arg0: i32, %arg1: i32, %arg2: i32) -> (i32, i32) {
    %c1_i32 = arith.constant 1 : i32
    %0 = arith.subi %c1_i32, %arg0 : i32
    %1 = arith.muli %arg2, %0 : i32
    %c0_i32 = arith.constant 0 : i32
    %c0_i32_0 = arith.constant 0 : i32
    return %c0_i32, %1 : i32, i32
  }
  func.func @transform_1(%arg0: i32, %arg1: i32, %arg2: i32) -> (i32, i32, i32) {
    %c1_i32 = arith.constant 1 : i32
    %0 = arith.subi %c1_i32, %arg0 : i32
    %1 = arith.muli %arg1, %0 : i32
    %c0_i32 = arith.constant 0 : i32
    %c0_i32_0 = arith.constant 0 : i32
    %c0_i32_1 = arith.constant 0 : i32
    return %1, %c0_i32, %c0_i32_0 : i32, i32, i32
  }
  func.func @transform_2(%arg0: i32, %arg1: i32, %arg2: i32) -> (i32, i32) {
    %c0_i32 = arith.constant 0 : i32
    %c0_i32_0 = arith.constant 0 : i32
    %c0_i32_1 = arith.constant 0 : i32
    return %c0_i32, %c0_i32_0 : i32, i32
  }
  func.func @transform_3(%arg0: i32, %arg1: i32, %arg2: i32) -> (i32, i32) {
    %c0_i32 = arith.constant 0 : i32
    %c0_i32_0 = arith.constant 0 : i32
    %c0_i32_1 = arith.constant 0 : i32
    return %c0_i32, %c0_i32_0 : i32, i32
  }
  func.func @transform_4(%arg0: i32, %arg1: i32, %arg2: i32) -> (i32, i32) {
    %c1_i32 = arith.constant 1 : i32
    %0 = arith.muli %arg1, %c1_i32 : i32
    %1 = arith.addi %0, %arg2 : i32
    %2 = arith.muli %1, %arg0 : i32
    %c0_i32 = arith.constant 0 : i32
    %c0_i32_0 = arith.constant 0 : i32
    return %c0_i32, %2 : i32, i32
  }
}

module attributes {stable_mosaic.version = 11 : i64} {
  func.func @_fused_conv_bn_kernel(%arg0: i32, %arg1: i32, %arg2: i32, %arg3: memref<72x128xbf16, #tpu.memory_space<vmem>>, %arg4: memref<1x8x72xbf16, #tpu.memory_space<vmem>>, %arg5: memref<8x1xf32, #tpu.memory_space<vmem>>, %arg6: memref<8x1xf32, #tpu.memory_space<vmem>>, %arg7: memref<8x128xbf16, #tpu.memory_space<vmem>>, %arg8: memref<8x128xf32, #tpu.memory_space<vmem>>, %arg9: memref<8x1xf32, #tpu.memory_space<vmem>>, %arg10: memref<8x1xf32, #tpu.memory_space<vmem>>, %arg11: memref<8x1xf32, #tpu.memory_space<vmem>>, %arg12: memref<8x1xf32, #tpu.memory_space<vmem>>) attributes {dimension_semantics = [#tpu.dimension_semantics<arbitrary>, #tpu.dimension_semantics<arbitrary>, #tpu.dimension_semantics<arbitrary>], iteration_bounds = array<i64: 2, 1, 1>, scalar_prefetch = 0 : i64, scratch_operands = 5 : i64, tpu.core_type = #tpu.core_type<tc>, window_params = [{transform_indices = @transform_0, window_bounds = array<i64: 72, 128>}, {transform_indices = @transform_1, window_bounds = array<i64: 1, 8, 72>}, {pipeline_mode = #tpu.pipeline_mode<synchronous>, transform_indices = @transform_2, window_bounds = array<i64: 8, 1>}, {pipeline_mode = #tpu.pipeline_mode<synchronous>, transform_indices = @transform_3, window_bounds = array<i64: 8, 1>}, {transform_indices = @transform_4, window_bounds = array<i64: 8, 128>}]} {
    %c1_i32 = arith.constant 1 : i32
    %0 = arith.muli %arg1, %c1_i32 : i32
    %1 = arith.addi %0, %arg2 : i32
    %c128_i32 = arith.constant 128 : i32
    %2 = arith.muli %1, %c128_i32 : i32
    %3 = tpu.assume_multiple %2, 128 : i32
    %c0_i32 = arith.constant 0 : i32
    %4 = arith.cmpi eq, %arg0, %c0_i32 : i32
    %5 = arith.extui %4 : i1 to i32
    %c0_i32_0 = arith.constant 0 : i32
    %6 = arith.cmpi ne, %5, %c0_i32_0 : i32
    scf.if %6 {
      %c0_i32_3 = arith.constant 0 : i32
      %10 = arith.cmpi eq, %1, %c0_i32_3 : i32
      %11 = arith.extui %10 : i1 to i32
      %c0_i32_4 = arith.constant 0 : i32
      %12 = arith.cmpi ne, %11, %c0_i32_4 : i32
      scf.if %12 {
        %cst_20 = arith.constant 0.000000e+00 : f32
        %30 = vector.broadcast %cst_20 : f32 to vector<8x1xf32>
        %c0_21 = arith.constant 0 : index
        %c0_22 = arith.constant 0 : index
        %31 = vector.load %arg9[%c0_21, %c0_22] : memref<8x1xf32, #tpu.memory_space<vmem>>, vector<8x1xf32>
        tpu.vector_store %arg9[%c0_21, %c0_22], %30 {strides = array<i32>} : memref<8x1xf32, #tpu.memory_space<vmem>>, vector<8x1xf32>,
        %cst_23 = arith.constant 0.000000e+00 : f32
        %32 = vector.broadcast %cst_23 : f32 to vector<8x1xf32>
        %c0_24 = arith.constant 0 : index
        %c0_25 = arith.constant 0 : index
        %33 = vector.load %arg10[%c0_24, %c0_25] : memref<8x1xf32, #tpu.memory_space<vmem>>, vector<8x1xf32>
        tpu.vector_store %arg10[%c0_24, %c0_25], %32 {strides = array<i32>} : memref<8x1xf32, #tpu.memory_space<vmem>>, vector<8x1xf32>,
      } else {
      }
      %c0 = arith.constant 0 : index
      %c0_5 = arith.constant 0 : index
      %c0_6 = arith.constant 0 : index
      %13 = vector.load %arg4[%c0, %c0_5, %c0_6] : memref<1x8x72xbf16, #tpu.memory_space<vmem>>, vector<1x8x72xbf16>
      %14 = vector.shape_cast %13 : vector<1x8x72xbf16> to vector<8x72xbf16>
      %c0_7 = arith.constant 0 : index
      %c0_8 = arith.constant 0 : index
      %15 = vector.load %arg3[%c0_7, %c0_8] : memref<72x128xbf16, #tpu.memory_space<vmem>>, vector<72x128xbf16>
      %cst = arith.constant dense<0.000000e+00> : vector<8x128xf32>
      %16 = tpu.matmul %14, %15, %cst {dimension_numbers = #tpu.dot_dimension_numbers<[1], [0], [0], [1], [0, 0, 1, 1], [], []>} : vector<8x72xbf16>, vector<72x128xbf16>, vector<8x128xf32> -> vector<8x128xf32>
      %c0_9 = arith.constant 0 : index
      %17 = arith.index_cast %3 : i32 to index
      %18 = vector.load %arg8[%c0_9, %17] : memref<8x128xf32, #tpu.memory_space<vmem>>, vector<8x128xf32>
      tpu.vector_store %arg8[%c0_9, %17], %16 {strides = array<i32>} : memref<8x128xf32, #tpu.memory_space<vmem>>, vector<8x128xf32>,
      %c0_10 = arith.constant 0 : index
      %c0_11 = arith.constant 0 : index
      %19 = vector.load %arg9[%c0_10, %c0_11] : memref<8x1xf32, #tpu.memory_space<vmem>>, vector<8x1xf32>
      %cst_12 = arith.constant dense<0.000000e+00> : vector<8xf32>
      %20 = vector.multi_reduction <add>, %16, %cst_12 [1] : vector<8x128xf32> to vector<8xf32>
      %21 = vector.shape_cast %20 : vector<8xf32> to vector<8x1xf32>
      %22 = arith.addf %19, %21 : vector<8x1xf32>
      %c0_13 = arith.constant 0 : index
      %c0_14 = arith.constant 0 : index
      %23 = vector.load %arg9[%c0_13, %c0_14] : memref<8x1xf32, #tpu.memory_space<vmem>>, vector<8x1xf32>
      tpu.vector_store %arg9[%c0_13, %c0_14], %22 {strides = array<i32>} : memref<8x1xf32, #tpu.memory_space<vmem>>, vector<8x1xf32>,
      %c0_15 = arith.constant 0 : index
      %c0_16 = arith.constant 0 : index
      %24 = vector.load %arg10[%c0_15, %c0_16] : memref<8x1xf32, #tpu.memory_space<vmem>>, vector<8x1xf32>
      %25 = arith.mulf %16, %16 : vector<8x128xf32>
      %cst_17 = arith.constant dense<0.000000e+00> : vector<8xf32>
      %26 = vector.multi_reduction <add>, %25, %cst_17 [1] : vector<8x128xf32> to vector<8xf32>
      %27 = vector.shape_cast %26 : vector<8xf32> to vector<8x1xf32>
      %28 = arith.addf %24, %27 : vector<8x1xf32>
      %c0_18 = arith.constant 0 : index
      %c0_19 = arith.constant 0 : index
      %29 = vector.load %arg10[%c0_18, %c0_19] : memref<8x1xf32, #tpu.memory_space<vmem>>, vector<8x1xf32>
      tpu.vector_store %arg10[%c0_18, %c0_19], %28 {strides = array<i32>} : memref<8x1xf32, #tpu.memory_space<vmem>>, vector<8x1xf32>,
    } else {
    }
    %c1_i32_1 = arith.constant 1 : i32
    %7 = arith.cmpi eq, %arg0, %c1_i32_1 : i32
    %8 = arith.extui %7 : i1 to i32
    %c0_i32_2 = arith.constant 0 : i32
    %9 = arith.cmpi ne, %8, %c0_i32_2 : i32
    scf.if %9 {
      %c0_i32_3 = arith.constant 0 : i32
      %10 = arith.cmpi eq, %1, %c0_i32_3 : i32
      %11 = arith.extui %10 : i1 to i32
      %c0_i32_4 = arith.constant 0 : i32
      %12 = arith.cmpi ne, %11, %c0_i32_4 : i32
      scf.if %12 {
        %c0_11 = arith.constant 0 : index
        %c0_12 = arith.constant 0 : index
        %23 = vector.load %arg9[%c0_11, %c0_12] : memref<8x1xf32, #tpu.memory_space<vmem>>, vector<8x1xf32>
        %cst = arith.constant 7.812500e-03 : f32
        %24 = vector.broadcast %cst : f32 to vector<8x1xf32>
        %25 = arith.mulf %23, %24 : vector<8x1xf32>
        %c0_13 = arith.constant 0 : index
        %c0_14 = arith.constant 0 : index
        %26 = vector.load %arg10[%c0_13, %c0_14] : memref<8x1xf32, #tpu.memory_space<vmem>>, vector<8x1xf32>
        %cst_15 = arith.constant 7.812500e-03 : f32
        %27 = vector.broadcast %cst_15 : f32 to vector<8x1xf32>
        %28 = arith.mulf %26, %27 : vector<8x1xf32>
        %29 = arith.mulf %25, %25 : vector<8x1xf32>
        %30 = arith.subf %28, %29 : vector<8x1xf32>
        %cst_16 = arith.constant 0.000000e+00 : f32
        %31 = vector.broadcast %cst_16 : f32 to vector<8x1xf32>
        %32 = arith.maximumf %30, %31 : vector<8x1xf32>
        %c0_17 = arith.constant 0 : index
        %c0_18 = arith.constant 0 : index
        %33 = vector.load %arg5[%c0_17, %c0_18] : memref<8x1xf32, #tpu.memory_space<vmem>>, vector<8x1xf32>
        %cst_19 = arith.constant 9.99999974E-6 : f32
        %34 = vector.broadcast %cst_19 : f32 to vector<8x1xf32>
        %35 = arith.addf %32, %34 : vector<8x1xf32>
        %36 = math.rsqrt %35 : vector<8x1xf32>
        %37 = arith.mulf %33, %36 : vector<8x1xf32>
        %c0_20 = arith.constant 0 : index
        %c0_21 = arith.constant 0 : index
        %38 = vector.load %arg11[%c0_20, %c0_21] : memref<8x1xf32, #tpu.memory_space<vmem>>, vector<8x1xf32>
        tpu.vector_store %arg11[%c0_20, %c0_21], %37 {strides = array<i32>} : memref<8x1xf32, #tpu.memory_space<vmem>>, vector<8x1xf32>,
        %c0_22 = arith.constant 0 : index
        %c0_23 = arith.constant 0 : index
        %39 = vector.load %arg6[%c0_22, %c0_23] : memref<8x1xf32, #tpu.memory_space<vmem>>, vector<8x1xf32>
        %40 = arith.mulf %25, %37 : vector<8x1xf32>
        %41 = arith.subf %39, %40 : vector<8x1xf32>
        %c0_24 = arith.constant 0 : index
        %c0_25 = arith.constant 0 : index
        %42 = vector.load %arg12[%c0_24, %c0_25] : memref<8x1xf32, #tpu.memory_space<vmem>>, vector<8x1xf32>
        tpu.vector_store %arg12[%c0_24, %c0_25], %41 {strides = array<i32>} : memref<8x1xf32, #tpu.memory_space<vmem>>, vector<8x1xf32>,
      } else {
      }
      %c0 = arith.constant 0 : index
      %13 = arith.index_cast %3 : i32 to index
      %14 = vector.load %arg8[%c0, %13] : memref<8x128xf32, #tpu.memory_space<vmem>>, vector<8x128xf32>
      %c0_5 = arith.constant 0 : index
      %c0_6 = arith.constant 0 : index
      %15 = vector.load %arg11[%c0_5, %c0_6] : memref<8x1xf32, #tpu.memory_space<vmem>>, vector<8x1xf32>
      %16 = vector.broadcast %15 : vector<8x1xf32> to vector<8x128xf32>
      %17 = arith.mulf %14, %16 : vector<8x128xf32>
      %c0_7 = arith.constant 0 : index
      %c0_8 = arith.constant 0 : index
      %18 = vector.load %arg12[%c0_7, %c0_8] : memref<8x1xf32, #tpu.memory_space<vmem>>, vector<8x1xf32>
      %19 = vector.broadcast %18 : vector<8x1xf32> to vector<8x128xf32>
      %20 = arith.addf %17, %19 : vector<8x128xf32>
      %21 = arith.truncf %20 : vector<8x128xf32> to vector<8x128xbf16>
      %c0_9 = arith.constant 0 : index
      %c0_10 = arith.constant 0 : index
      %22 = vector.load %arg7[%c0_9, %c0_10] : memref<8x128xbf16, #tpu.memory_space<vmem>>, vector<8x128xbf16>
      tpu.vector_store %arg7[%c0_9, %c0_10], %21 {strides = array<i32>} : memref<8x128xbf16, #tpu.memory_space<vmem>>, vector<8x128xbf16>,
    } else {
    }
    return
  }
  func.func @transform_0(%arg0: i32, %arg1: i32, %arg2: i32) -> (i32, i32) {
    %c1_i32 = arith.constant 1 : i32
    %0 = arith.subi %c1_i32, %arg0 : i32
    %1 = arith.muli %arg2, %0 : i32
    %c0_i32 = arith.constant 0 : i32
    %c0_i32_0 = arith.constant 0 : i32
    return %c0_i32, %1 : i32, i32
  }
  func.func @transform_1(%arg0: i32, %arg1: i32, %arg2: i32) -> (i32, i32, i32) {
    %c1_i32 = arith.constant 1 : i32
    %0 = arith.subi %c1_i32, %arg0 : i32
    %1 = arith.muli %arg1, %0 : i32
    %c0_i32 = arith.constant 0 : i32
    %c0_i32_0 = arith.constant 0 : i32
    %c0_i32_1 = arith.constant 0 : i32
    return %1, %c0_i32, %c0_i32_0 : i32, i32, i32
  }
  func.func @transform_2(%arg0: i32, %arg1: i32, %arg2: i32) -> (i32, i32) {
    %c0_i32 = arith.constant 0 : i32
    %c0_i32_0 = arith.constant 0 : i32
    %c0_i32_1 = arith.constant 0 : i32
    return %c0_i32, %c0_i32_0 : i32, i32
  }
  func.func @transform_3(%arg0: i32, %arg1: i32, %arg2: i32) -> (i32, i32) {
    %c0_i32 = arith.constant 0 : i32
    %c0_i32_0 = arith.constant 0 : i32
    %c0_i32_1 = arith.constant 0 : i32
    return %c0_i32, %c0_i32_0 : i32, i32
  }
  func.func @transform_4(%arg0: i32, %arg1: i32, %arg2: i32) -> (i32, i32) {
    %c1_i32 = arith.constant 1 : i32
    %0 = arith.muli %arg1, %c1_i32 : i32
    %1 = arith.addi %0, %arg2 : i32
    %2 = arith.muli %1, %arg0 : i32
    %c0_i32 = arith.constant 0 : i32
    %c0_i32_0 = arith.constant 0 : i32
    return %c0_i32, %2 : i32, i32
  }
}

module attributes {stable_mosaic.version = 11 : i64} {
  func.func @_fused_conv_bn_kernel(%arg0: i32, %arg1: i32, %arg2: i32, %arg3: memref<32x128xbf16, #tpu.memory_space<vmem>>, %arg4: memref<1x4x32xbf16, #tpu.memory_space<vmem>>, %arg5: memref<4x1xf32, #tpu.memory_space<vmem>>, %arg6: memref<4x1xf32, #tpu.memory_space<vmem>>, %arg7: memref<4x128xbf16, #tpu.memory_space<vmem>>, %arg8: memref<4x512xf32, #tpu.memory_space<vmem>>, %arg9: memref<4x1xf32, #tpu.memory_space<vmem>>, %arg10: memref<4x1xf32, #tpu.memory_space<vmem>>, %arg11: memref<4x1xf32, #tpu.memory_space<vmem>>, %arg12: memref<4x1xf32, #tpu.memory_space<vmem>>) attributes {dimension_semantics = [#tpu.dimension_semantics<arbitrary>, #tpu.dimension_semantics<arbitrary>, #tpu.dimension_semantics<arbitrary>], iteration_bounds = array<i64: 2, 4, 1>, scalar_prefetch = 0 : i64, scratch_operands = 5 : i64, tpu.core_type = #tpu.core_type<tc>, window_params = [{transform_indices = @transform_0, window_bounds = array<i64: 32, 128>}, {transform_indices = @transform_1, window_bounds = array<i64: 1, 4, 32>}, {pipeline_mode = #tpu.pipeline_mode<synchronous>, transform_indices = @transform_2, window_bounds = array<i64: 4, 1>}, {pipeline_mode = #tpu.pipeline_mode<synchronous>, transform_indices = @transform_3, window_bounds = array<i64: 4, 1>}, {transform_indices = @transform_4, window_bounds = array<i64: 4, 128>}]} {
    %c1_i32 = arith.constant 1 : i32
    %0 = arith.muli %arg1, %c1_i32 : i32
    %1 = arith.addi %0, %arg2 : i32
    %c128_i32 = arith.constant 128 : i32
    %2 = arith.muli %1, %c128_i32 : i32
    %3 = tpu.assume_multiple %2, 128 : i32
    %c0_i32 = arith.constant 0 : i32
    %4 = arith.cmpi eq, %arg0, %c0_i32 : i32
    %5 = arith.extui %4 : i1 to i32
    %c0_i32_0 = arith.constant 0 : i32
    %6 = arith.cmpi ne, %5, %c0_i32_0 : i32
    scf.if %6 {
      %c0_i32_3 = arith.constant 0 : i32
      %10 = arith.cmpi eq, %1, %c0_i32_3 : i32
      %11 = arith.extui %10 : i1 to i32
      %c0_i32_4 = arith.constant 0 : i32
      %12 = arith.cmpi ne, %11, %c0_i32_4 : i32
      scf.if %12 {
        %cst_20 = arith.constant 0.000000e+00 : f32
        %30 = vector.broadcast %cst_20 : f32 to vector<4x1xf32>
        %c0_21 = arith.constant 0 : index
        %c0_22 = arith.constant 0 : index
        %31 = vector.load %arg9[%c0_21, %c0_22] : memref<4x1xf32, #tpu.memory_space<vmem>>, vector<4x1xf32>
        tpu.vector_store %arg9[%c0_21, %c0_22], %30 {strides = array<i32>} : memref<4x1xf32, #tpu.memory_space<vmem>>, vector<4x1xf32>,
        %cst_23 = arith.constant 0.000000e+00 : f32
        %32 = vector.broadcast %cst_23 : f32 to vector<4x1xf32>
        %c0_24 = arith.constant 0 : index
        %c0_25 = arith.constant 0 : index
        %33 = vector.load %arg10[%c0_24, %c0_25] : memref<4x1xf32, #tpu.memory_space<vmem>>, vector<4x1xf32>
        tpu.vector_store %arg10[%c0_24, %c0_25], %32 {strides = array<i32>} : memref<4x1xf32, #tpu.memory_space<vmem>>, vector<4x1xf32>,
      } else {
      }
      %c0 = arith.constant 0 : index
      %c0_5 = arith.constant 0 : index
      %c0_6 = arith.constant 0 : index
      %13 = vector.load %arg4[%c0, %c0_5, %c0_6] : memref<1x4x32xbf16, #tpu.memory_space<vmem>>, vector<1x4x32xbf16>
      %14 = vector.shape_cast %13 : vector<1x4x32xbf16> to vector<4x32xbf16>
      %c0_7 = arith.constant 0 : index
      %c0_8 = arith.constant 0 : index
      %15 = vector.load %arg3[%c0_7, %c0_8] : memref<32x128xbf16, #tpu.memory_space<vmem>>, vector<32x128xbf16>
      %cst = arith.constant dense<0.000000e+00> : vector<4x128xf32>
      %16 = tpu.matmul %14, %15, %cst {dimension_numbers = #tpu.dot_dimension_numbers<[1], [0], [0], [1], [0, 0, 1, 1], [], []>} : vector<4x32xbf16>, vector<32x128xbf16>, vector<4x128xf32> -> vector<4x128xf32>
      %c0_9 = arith.constant 0 : index
      %17 = arith.index_cast %3 : i32 to index
      %18 = vector.load %arg8[%c0_9, %17] : memref<4x512xf32, #tpu.memory_space<vmem>>, vector<4x128xf32>
      tpu.vector_store %arg8[%c0_9, %17], %16 {strides = array<i32>} : memref<4x512xf32, #tpu.memory_space<vmem>>, vector<4x128xf32>,
      %c0_10 = arith.constant 0 : index
      %c0_11 = arith.constant 0 : index
      %19 = vector.load %arg9[%c0_10, %c0_11] : memref<4x1xf32, #tpu.memory_space<vmem>>, vector<4x1xf32>
      %cst_12 = arith.constant dense<0.000000e+00> : vector<4xf32>
      %20 = vector.multi_reduction <add>, %16, %cst_12 [1] : vector<4x128xf32> to vector<4xf32>
      %21 = vector.shape_cast %20 : vector<4xf32> to vector<4x1xf32>
      %22 = arith.addf %19, %21 : vector<4x1xf32>
      %c0_13 = arith.constant 0 : index
      %c0_14 = arith.constant 0 : index
      %23 = vector.load %arg9[%c0_13, %c0_14] : memref<4x1xf32, #tpu.memory_space<vmem>>, vector<4x1xf32>
      tpu.vector_store %arg9[%c0_13, %c0_14], %22 {strides = array<i32>} : memref<4x1xf32, #tpu.memory_space<vmem>>, vector<4x1xf32>,
      %c0_15 = arith.constant 0 : index
      %c0_16 = arith.constant 0 : index
      %24 = vector.load %arg10[%c0_15, %c0_16] : memref<4x1xf32, #tpu.memory_space<vmem>>, vector<4x1xf32>
      %25 = arith.mulf %16, %16 : vector<4x128xf32>
      %cst_17 = arith.constant dense<0.000000e+00> : vector<4xf32>
      %26 = vector.multi_reduction <add>, %25, %cst_17 [1] : vector<4x128xf32> to vector<4xf32>
      %27 = vector.shape_cast %26 : vector<4xf32> to vector<4x1xf32>
      %28 = arith.addf %24, %27 : vector<4x1xf32>
      %c0_18 = arith.constant 0 : index
      %c0_19 = arith.constant 0 : index
      %29 = vector.load %arg10[%c0_18, %c0_19] : memref<4x1xf32, #tpu.memory_space<vmem>>, vector<4x1xf32>
      tpu.vector_store %arg10[%c0_18, %c0_19], %28 {strides = array<i32>} : memref<4x1xf32, #tpu.memory_space<vmem>>, vector<4x1xf32>,
    } else {
    }
    %c1_i32_1 = arith.constant 1 : i32
    %7 = arith.cmpi eq, %arg0, %c1_i32_1 : i32
    %8 = arith.extui %7 : i1 to i32
    %c0_i32_2 = arith.constant 0 : i32
    %9 = arith.cmpi ne, %8, %c0_i32_2 : i32
    scf.if %9 {
      %c0_i32_3 = arith.constant 0 : i32
      %10 = arith.cmpi eq, %1, %c0_i32_3 : i32
      %11 = arith.extui %10 : i1 to i32
      %c0_i32_4 = arith.constant 0 : i32
      %12 = arith.cmpi ne, %11, %c0_i32_4 : i32
      scf.if %12 {
        %c0_12 = arith.constant 0 : index
        %c0_13 = arith.constant 0 : index
        %28 = vector.load %arg9[%c0_12, %c0_13] : memref<4x1xf32, #tpu.memory_space<vmem>>, vector<4x1xf32>
        %cst_14 = arith.constant 0.001953125 : f32
        %29 = vector.broadcast %cst_14 : f32 to vector<4x1xf32>
        %30 = arith.mulf %28, %29 : vector<4x1xf32>
        %c0_15 = arith.constant 0 : index
        %c0_16 = arith.constant 0 : index
        %31 = vector.load %arg10[%c0_15, %c0_16] : memref<4x1xf32, #tpu.memory_space<vmem>>, vector<4x1xf32>
        %cst_17 = arith.constant 0.001953125 : f32
        %32 = vector.broadcast %cst_17 : f32 to vector<4x1xf32>
        %33 = arith.mulf %31, %32 : vector<4x1xf32>
        %34 = arith.mulf %30, %30 : vector<4x1xf32>
        %35 = arith.subf %33, %34 : vector<4x1xf32>
        %cst_18 = arith.constant 0.000000e+00 : f32
        %36 = vector.broadcast %cst_18 : f32 to vector<4x1xf32>
        %37 = arith.maximumf %35, %36 : vector<4x1xf32>
        %c0_19 = arith.constant 0 : index
        %c0_20 = arith.constant 0 : index
        %38 = vector.load %arg5[%c0_19, %c0_20] : memref<4x1xf32, #tpu.memory_space<vmem>>, vector<4x1xf32>
        %cst_21 = arith.constant 9.99999974E-6 : f32
        %39 = vector.broadcast %cst_21 : f32 to vector<4x1xf32>
        %40 = arith.addf %37, %39 : vector<4x1xf32>
        %41 = math.rsqrt %40 : vector<4x1xf32>
        %42 = arith.mulf %38, %41 : vector<4x1xf32>
        %c0_22 = arith.constant 0 : index
        %c0_23 = arith.constant 0 : index
        %43 = vector.load %arg11[%c0_22, %c0_23] : memref<4x1xf32, #tpu.memory_space<vmem>>, vector<4x1xf32>
        tpu.vector_store %arg11[%c0_22, %c0_23], %42 {strides = array<i32>} : memref<4x1xf32, #tpu.memory_space<vmem>>, vector<4x1xf32>,
        %c0_24 = arith.constant 0 : index
        %c0_25 = arith.constant 0 : index
        %44 = vector.load %arg6[%c0_24, %c0_25] : memref<4x1xf32, #tpu.memory_space<vmem>>, vector<4x1xf32>
        %45 = arith.mulf %30, %42 : vector<4x1xf32>
        %46 = arith.subf %44, %45 : vector<4x1xf32>
        %c0_26 = arith.constant 0 : index
        %c0_27 = arith.constant 0 : index
        %47 = vector.load %arg12[%c0_26, %c0_27] : memref<4x1xf32, #tpu.memory_space<vmem>>, vector<4x1xf32>
        tpu.vector_store %arg12[%c0_26, %c0_27], %46 {strides = array<i32>} : memref<4x1xf32, #tpu.memory_space<vmem>>, vector<4x1xf32>,
      } else {
      }
      %c0 = arith.constant 0 : index
      %13 = arith.index_cast %3 : i32 to index
      %14 = vector.load %arg8[%c0, %13] : memref<4x512xf32, #tpu.memory_space<vmem>>, vector<4x128xf32>
      %c0_5 = arith.constant 0 : index
      %c0_6 = arith.constant 0 : index
      %15 = vector.load %arg11[%c0_5, %c0_6] : memref<4x1xf32, #tpu.memory_space<vmem>>, vector<4x1xf32>
      %16 = vector.broadcast %15 : vector<4x1xf32> to vector<4x128xf32>
      %17 = arith.mulf %14, %16 : vector<4x128xf32>
      %c0_7 = arith.constant 0 : index
      %c0_8 = arith.constant 0 : index
      %18 = vector.load %arg12[%c0_7, %c0_8] : memref<4x1xf32, #tpu.memory_space<vmem>>, vector<4x1xf32>
      %19 = vector.broadcast %18 : vector<4x1xf32> to vector<4x128xf32>
      %20 = arith.addf %17, %19 : vector<4x128xf32>
      %cst = arith.constant 0.000000e+00 : f32
      %21 = vector.broadcast %cst : f32 to vector<4x128xf32>
      %22 = arith.cmpf oge, %20, %21 : vector<4x128xf32>
      %cst_9 = arith.constant 2.000000e-01 : f32
      %23 = vector.broadcast %cst_9 : f32 to vector<4x128xf32>
      %24 = arith.mulf %23, %20 : vector<4x128xf32>
      %25 = arith.select %22, %20, %24 : vector<4x128xi1>, vector<4x128xf32>
      %26 = arith.truncf %25 : vector<4x128xf32> to vector<4x128xbf16>
      %c0_10 = arith.constant 0 : index
      %c0_11 = arith.constant 0 : index
      %27 = vector.load %arg7[%c0_10, %c0_11] : memref<4x128xbf16, #tpu.memory_space<vmem>>, vector<4x128xbf16>
      tpu.vector_store %arg7[%c0_10, %c0_11], %26 {strides = array<i32>} : memref<4x128xbf16, #tpu.memory_space<vmem>>, vector<4x128xbf16>,
    } else {
    }
    return
  }
  func.func @transform_0(%arg0: i32, %arg1: i32, %arg2: i32) -> (i32, i32) {
    %c1_i32 = arith.constant 1 : i32
    %0 = arith.subi %c1_i32, %arg0 : i32
    %1 = arith.muli %arg2, %0 : i32
    %c0_i32 = arith.constant 0 : i32
    %c0_i32_0 = arith.constant 0 : i32
    return %c0_i32, %1 : i32, i32
  }
  func.func @transform_1(%arg0: i32, %arg1: i32, %arg2: i32) -> (i32, i32, i32) {
    %c1_i32 = arith.constant 1 : i32
    %0 = arith.subi %c1_i32, %arg0 : i32
    %1 = arith.muli %arg1, %0 : i32
    %c0_i32 = arith.constant 0 : i32
    %c0_i32_0 = arith.constant 0 : i32
    %c0_i32_1 = arith.constant 0 : i32
    return %1, %c0_i32, %c0_i32_0 : i32, i32, i32
  }
  func.func @transform_2(%arg0: i32, %arg1: i32, %arg2: i32) -> (i32, i32) {
    %c0_i32 = arith.constant 0 : i32
    %c0_i32_0 = arith.constant 0 : i32
    %c0_i32_1 = arith.constant 0 : i32
    return %c0_i32, %c0_i32_0 : i32, i32
  }
  func.func @transform_3(%arg0: i32, %arg1: i32, %arg2: i32) -> (i32, i32) {
    %c0_i32 = arith.constant 0 : i32
    %c0_i32_0 = arith.constant 0 : i32
    %c0_i32_1 = arith.constant 0 : i32
    return %c0_i32, %c0_i32_0 : i32, i32
  }
  func.func @transform_4(%arg0: i32, %arg1: i32, %arg2: i32) -> (i32, i32) {
    %c1_i32 = arith.constant 1 : i32
    %0 = arith.muli %arg1, %c1_i32 : i32
    %1 = arith.addi %0, %arg2 : i32
    %2 = arith.muli %1, %arg0 : i32
    %c0_i32 = arith.constant 0 : i32
    %c0_i32_0 = arith.constant 0 : i32
    return %c0_i32, %2 : i32, i32
  }
}

module attributes {stable_mosaic.version = 11 : i64} {
  func.func @_conv_bias_act_kernel(%arg0: i32, %arg1: memref<36x512xbf16, #tpu.memory_space<vmem>>, %arg2: memref<3x36xbf16, #tpu.memory_space<vmem>>, %arg3: memref<3x1xf32, #tpu.memory_space<vmem>>, %arg4: memref<3x512xf32, #tpu.memory_space<vmem>>) attributes {dimension_semantics = [#tpu.dimension_semantics<parallel>], iteration_bounds = array<i64: 1>, scalar_prefetch = 0 : i64, scratch_operands = 0 : i64, tpu.core_type = #tpu.core_type<tc>, window_params = [{transform_indices = @transform_0, window_bounds = array<i64: 36, 512>}, {pipeline_mode = #tpu.pipeline_mode<synchronous>, transform_indices = @transform_1, window_bounds = array<i64: 3, 36>}, {pipeline_mode = #tpu.pipeline_mode<synchronous>, transform_indices = @transform_2, window_bounds = array<i64: 3, 1>}, {transform_indices = @transform_3, window_bounds = array<i64: 3, 512>}]} {
    %c0 = arith.constant 0 : index
    %c0_0 = arith.constant 0 : index
    %0 = vector.load %arg2[%c0, %c0_0] : memref<3x36xbf16, #tpu.memory_space<vmem>>, vector<3x36xbf16>
    %c0_1 = arith.constant 0 : index
    %c0_2 = arith.constant 0 : index
    %1 = vector.load %arg1[%c0_1, %c0_2] : memref<36x512xbf16, #tpu.memory_space<vmem>>, vector<36x512xbf16>
    %cst = arith.constant dense<0.000000e+00> : vector<3x512xf32>
    %2 = tpu.matmul %0, %1, %cst {dimension_numbers = #tpu.dot_dimension_numbers<[1], [0], [0], [1], [0, 0, 1, 1], [], []>} : vector<3x36xbf16>, vector<36x512xbf16>, vector<3x512xf32> -> vector<3x512xf32>
    %c0_3 = arith.constant 0 : index
    %c0_4 = arith.constant 0 : index
    %3 = vector.load %arg3[%c0_3, %c0_4] : memref<3x1xf32, #tpu.memory_space<vmem>>, vector<3x1xf32>
    %4 = vector.broadcast %3 : vector<3x1xf32> to vector<3x512xf32>
    %5 = arith.addf %2, %4 : vector<3x512xf32>
    %6 = math.tanh %5 : vector<3x512xf32>
    %c0_5 = arith.constant 0 : index
    %c0_6 = arith.constant 0 : index
    %7 = vector.load %arg4[%c0_5, %c0_6] : memref<3x512xf32, #tpu.memory_space<vmem>>, vector<3x512xf32>
    tpu.vector_store %arg4[%c0_5, %c0_6], %6 {strides = array<i32>} : memref<3x512xf32, #tpu.memory_space<vmem>>, vector<3x512xf32>,
    return
  }
  func.func @transform_0(%arg0: i32) -> (i32, i32) {
    %c0_i32 = arith.constant 0 : i32
    %c0_i32_0 = arith.constant 0 : i32
    return %c0_i32, %arg0 : i32, i32
  }
  func.func @transform_1(%arg0: i32) -> (i32, i32) {
    %c0_i32 = arith.constant 0 : i32
    %c0_i32_0 = arith.constant 0 : i32
    %c0_i32_1 = arith.constant 0 : i32
    return %c0_i32, %c0_i32_0 : i32, i32
  }
  func.func @transform_2(%arg0: i32) -> (i32, i32) {
    %c0_i32 = arith.constant 0 : i32
    %c0_i32_0 = arith.constant 0 : i32
    %c0_i32_1 = arith.constant 0 : i32
    return %c0_i32, %c0_i32_0 : i32, i32
  }
  func.func @transform_3(%arg0: i32) -> (i32, i32) {
    %c0_i32 = arith.constant 0 : i32
    %c0_i32_0 = arith.constant 0 : i32
    return %c0_i32, %arg0 : i32, i32
  }
}

module attributes {stable_mosaic.version = 11 : i64} {
  func.func @_fused_conv_bn_kernel(%arg0: i32, %arg1: i32, %arg2: i32, %arg3: memref<72x512xbf16, #tpu.memory_space<vmem>>, %arg4: memref<1x4x72xbf16, #tpu.memory_space<vmem>>, %arg5: memref<4x1xf32, #tpu.memory_space<vmem>>, %arg6: memref<4x1xf32, #tpu.memory_space<vmem>>, %arg7: memref<4x512xbf16, #tpu.memory_space<vmem>>, %arg8: memref<4x512xf32, #tpu.memory_space<vmem>>, %arg9: memref<4x1xf32, #tpu.memory_space<vmem>>, %arg10: memref<4x1xf32, #tpu.memory_space<vmem>>, %arg11: memref<4x1xf32, #tpu.memory_space<vmem>>, %arg12: memref<4x1xf32, #tpu.memory_space<vmem>>) attributes {dimension_semantics = [#tpu.dimension_semantics<arbitrary>, #tpu.dimension_semantics<arbitrary>, #tpu.dimension_semantics<arbitrary>], iteration_bounds = array<i64: 2, 1, 1>, scalar_prefetch = 0 : i64, scratch_operands = 5 : i64, tpu.core_type = #tpu.core_type<tc>, window_params = [{transform_indices = @transform_0, window_bounds = array<i64: 72, 512>}, {transform_indices = @transform_1, window_bounds = array<i64: 1, 4, 72>}, {pipeline_mode = #tpu.pipeline_mode<synchronous>, transform_indices = @transform_2, window_bounds = array<i64: 4, 1>}, {pipeline_mode = #tpu.pipeline_mode<synchronous>, transform_indices = @transform_3, window_bounds = array<i64: 4, 1>}, {transform_indices = @transform_4, window_bounds = array<i64: 4, 512>}]} {
    %c1_i32 = arith.constant 1 : i32
    %0 = arith.muli %arg1, %c1_i32 : i32
    %1 = arith.addi %0, %arg2 : i32
    %c512_i32 = arith.constant 512 : i32
    %2 = arith.muli %1, %c512_i32 : i32
    %3 = tpu.assume_multiple %2, 512 : i32
    %c0_i32 = arith.constant 0 : i32
    %4 = arith.cmpi eq, %arg0, %c0_i32 : i32
    %5 = arith.extui %4 : i1 to i32
    %c0_i32_0 = arith.constant 0 : i32
    %6 = arith.cmpi ne, %5, %c0_i32_0 : i32
    scf.if %6 {
      %c0_i32_3 = arith.constant 0 : i32
      %10 = arith.cmpi eq, %1, %c0_i32_3 : i32
      %11 = arith.extui %10 : i1 to i32
      %c0_i32_4 = arith.constant 0 : i32
      %12 = arith.cmpi ne, %11, %c0_i32_4 : i32
      scf.if %12 {
        %cst_20 = arith.constant 0.000000e+00 : f32
        %30 = vector.broadcast %cst_20 : f32 to vector<4x1xf32>
        %c0_21 = arith.constant 0 : index
        %c0_22 = arith.constant 0 : index
        %31 = vector.load %arg9[%c0_21, %c0_22] : memref<4x1xf32, #tpu.memory_space<vmem>>, vector<4x1xf32>
        tpu.vector_store %arg9[%c0_21, %c0_22], %30 {strides = array<i32>} : memref<4x1xf32, #tpu.memory_space<vmem>>, vector<4x1xf32>,
        %cst_23 = arith.constant 0.000000e+00 : f32
        %32 = vector.broadcast %cst_23 : f32 to vector<4x1xf32>
        %c0_24 = arith.constant 0 : index
        %c0_25 = arith.constant 0 : index
        %33 = vector.load %arg10[%c0_24, %c0_25] : memref<4x1xf32, #tpu.memory_space<vmem>>, vector<4x1xf32>
        tpu.vector_store %arg10[%c0_24, %c0_25], %32 {strides = array<i32>} : memref<4x1xf32, #tpu.memory_space<vmem>>, vector<4x1xf32>,
      } else {
      }
      %c0 = arith.constant 0 : index
      %c0_5 = arith.constant 0 : index
      %c0_6 = arith.constant 0 : index
      %13 = vector.load %arg4[%c0, %c0_5, %c0_6] : memref<1x4x72xbf16, #tpu.memory_space<vmem>>, vector<1x4x72xbf16>
      %14 = vector.shape_cast %13 : vector<1x4x72xbf16> to vector<4x72xbf16>
      %c0_7 = arith.constant 0 : index
      %c0_8 = arith.constant 0 : index
      %15 = vector.load %arg3[%c0_7, %c0_8] : memref<72x512xbf16, #tpu.memory_space<vmem>>, vector<72x512xbf16>
      %cst = arith.constant dense<0.000000e+00> : vector<4x512xf32>
      %16 = tpu.matmul %14, %15, %cst {dimension_numbers = #tpu.dot_dimension_numbers<[1], [0], [0], [1], [0, 0, 1, 1], [], []>} : vector<4x72xbf16>, vector<72x512xbf16>, vector<4x512xf32> -> vector<4x512xf32>
      %c0_9 = arith.constant 0 : index
      %17 = arith.index_cast %3 : i32 to index
      %18 = vector.load %arg8[%c0_9, %17] : memref<4x512xf32, #tpu.memory_space<vmem>>, vector<4x512xf32>
      tpu.vector_store %arg8[%c0_9, %17], %16 {strides = array<i32>} : memref<4x512xf32, #tpu.memory_space<vmem>>, vector<4x512xf32>,
      %c0_10 = arith.constant 0 : index
      %c0_11 = arith.constant 0 : index
      %19 = vector.load %arg9[%c0_10, %c0_11] : memref<4x1xf32, #tpu.memory_space<vmem>>, vector<4x1xf32>
      %cst_12 = arith.constant dense<0.000000e+00> : vector<4xf32>
      %20 = vector.multi_reduction <add>, %16, %cst_12 [1] : vector<4x512xf32> to vector<4xf32>
      %21 = vector.shape_cast %20 : vector<4xf32> to vector<4x1xf32>
      %22 = arith.addf %19, %21 : vector<4x1xf32>
      %c0_13 = arith.constant 0 : index
      %c0_14 = arith.constant 0 : index
      %23 = vector.load %arg9[%c0_13, %c0_14] : memref<4x1xf32, #tpu.memory_space<vmem>>, vector<4x1xf32>
      tpu.vector_store %arg9[%c0_13, %c0_14], %22 {strides = array<i32>} : memref<4x1xf32, #tpu.memory_space<vmem>>, vector<4x1xf32>,
      %c0_15 = arith.constant 0 : index
      %c0_16 = arith.constant 0 : index
      %24 = vector.load %arg10[%c0_15, %c0_16] : memref<4x1xf32, #tpu.memory_space<vmem>>, vector<4x1xf32>
      %25 = arith.mulf %16, %16 : vector<4x512xf32>
      %cst_17 = arith.constant dense<0.000000e+00> : vector<4xf32>
      %26 = vector.multi_reduction <add>, %25, %cst_17 [1] : vector<4x512xf32> to vector<4xf32>
      %27 = vector.shape_cast %26 : vector<4xf32> to vector<4x1xf32>
      %28 = arith.addf %24, %27 : vector<4x1xf32>
      %c0_18 = arith.constant 0 : index
      %c0_19 = arith.constant 0 : index
      %29 = vector.load %arg10[%c0_18, %c0_19] : memref<4x1xf32, #tpu.memory_space<vmem>>, vector<4x1xf32>
      tpu.vector_store %arg10[%c0_18, %c0_19], %28 {strides = array<i32>} : memref<4x1xf32, #tpu.memory_space<vmem>>, vector<4x1xf32>,
    } else {
    }
    %c1_i32_1 = arith.constant 1 : i32
    %7 = arith.cmpi eq, %arg0, %c1_i32_1 : i32
    %8 = arith.extui %7 : i1 to i32
    %c0_i32_2 = arith.constant 0 : i32
    %9 = arith.cmpi ne, %8, %c0_i32_2 : i32
    scf.if %9 {
      %c0_i32_3 = arith.constant 0 : i32
      %10 = arith.cmpi eq, %1, %c0_i32_3 : i32
      %11 = arith.extui %10 : i1 to i32
      %c0_i32_4 = arith.constant 0 : i32
      %12 = arith.cmpi ne, %11, %c0_i32_4 : i32
      scf.if %12 {
        %c0_12 = arith.constant 0 : index
        %c0_13 = arith.constant 0 : index
        %28 = vector.load %arg9[%c0_12, %c0_13] : memref<4x1xf32, #tpu.memory_space<vmem>>, vector<4x1xf32>
        %cst_14 = arith.constant 0.001953125 : f32
        %29 = vector.broadcast %cst_14 : f32 to vector<4x1xf32>
        %30 = arith.mulf %28, %29 : vector<4x1xf32>
        %c0_15 = arith.constant 0 : index
        %c0_16 = arith.constant 0 : index
        %31 = vector.load %arg10[%c0_15, %c0_16] : memref<4x1xf32, #tpu.memory_space<vmem>>, vector<4x1xf32>
        %cst_17 = arith.constant 0.001953125 : f32
        %32 = vector.broadcast %cst_17 : f32 to vector<4x1xf32>
        %33 = arith.mulf %31, %32 : vector<4x1xf32>
        %34 = arith.mulf %30, %30 : vector<4x1xf32>
        %35 = arith.subf %33, %34 : vector<4x1xf32>
        %cst_18 = arith.constant 0.000000e+00 : f32
        %36 = vector.broadcast %cst_18 : f32 to vector<4x1xf32>
        %37 = arith.maximumf %35, %36 : vector<4x1xf32>
        %c0_19 = arith.constant 0 : index
        %c0_20 = arith.constant 0 : index
        %38 = vector.load %arg5[%c0_19, %c0_20] : memref<4x1xf32, #tpu.memory_space<vmem>>, vector<4x1xf32>
        %cst_21 = arith.constant 9.99999974E-6 : f32
        %39 = vector.broadcast %cst_21 : f32 to vector<4x1xf32>
        %40 = arith.addf %37, %39 : vector<4x1xf32>
        %41 = math.rsqrt %40 : vector<4x1xf32>
        %42 = arith.mulf %38, %41 : vector<4x1xf32>
        %c0_22 = arith.constant 0 : index
        %c0_23 = arith.constant 0 : index
        %43 = vector.load %arg11[%c0_22, %c0_23] : memref<4x1xf32, #tpu.memory_space<vmem>>, vector<4x1xf32>
        tpu.vector_store %arg11[%c0_22, %c0_23], %42 {strides = array<i32>} : memref<4x1xf32, #tpu.memory_space<vmem>>, vector<4x1xf32>,
        %c0_24 = arith.constant 0 : index
        %c0_25 = arith.constant 0 : index
        %44 = vector.load %arg6[%c0_24, %c0_25] : memref<4x1xf32, #tpu.memory_space<vmem>>, vector<4x1xf32>
        %45 = arith.mulf %30, %42 : vector<4x1xf32>
        %46 = arith.subf %44, %45 : vector<4x1xf32>
        %c0_26 = arith.constant 0 : index
        %c0_27 = arith.constant 0 : index
        %47 = vector.load %arg12[%c0_26, %c0_27] : memref<4x1xf32, #tpu.memory_space<vmem>>, vector<4x1xf32>
        tpu.vector_store %arg12[%c0_26, %c0_27], %46 {strides = array<i32>} : memref<4x1xf32, #tpu.memory_space<vmem>>, vector<4x1xf32>,
      } else {
      }
      %c0 = arith.constant 0 : index
      %13 = arith.index_cast %3 : i32 to index
      %14 = vector.load %arg8[%c0, %13] : memref<4x512xf32, #tpu.memory_space<vmem>>, vector<4x512xf32>
      %c0_5 = arith.constant 0 : index
      %c0_6 = arith.constant 0 : index
      %15 = vector.load %arg11[%c0_5, %c0_6] : memref<4x1xf32, #tpu.memory_space<vmem>>, vector<4x1xf32>
      %16 = vector.broadcast %15 : vector<4x1xf32> to vector<4x512xf32>
      %17 = arith.mulf %14, %16 : vector<4x512xf32>
      %c0_7 = arith.constant 0 : index
      %c0_8 = arith.constant 0 : index
      %18 = vector.load %arg12[%c0_7, %c0_8] : memref<4x1xf32, #tpu.memory_space<vmem>>, vector<4x1xf32>
      %19 = vector.broadcast %18 : vector<4x1xf32> to vector<4x512xf32>
      %20 = arith.addf %17, %19 : vector<4x512xf32>
      %cst = arith.constant 0.000000e+00 : f32
      %21 = vector.broadcast %cst : f32 to vector<4x512xf32>
      %22 = arith.cmpf oge, %20, %21 : vector<4x512xf32>
      %cst_9 = arith.constant 2.000000e-01 : f32
      %23 = vector.broadcast %cst_9 : f32 to vector<4x512xf32>
      %24 = arith.mulf %23, %20 : vector<4x512xf32>
      %25 = arith.select %22, %20, %24 : vector<4x512xi1>, vector<4x512xf32>
      %26 = arith.truncf %25 : vector<4x512xf32> to vector<4x512xbf16>
      %c0_10 = arith.constant 0 : index
      %c0_11 = arith.constant 0 : index
      %27 = vector.load %arg7[%c0_10, %c0_11] : memref<4x512xbf16, #tpu.memory_space<vmem>>, vector<4x512xbf16>
      tpu.vector_store %arg7[%c0_10, %c0_11], %26 {strides = array<i32>} : memref<4x512xbf16, #tpu.memory_space<vmem>>, vector<4x512xbf16>,
    } else {
    }
    return
  }
  func.func @transform_0(%arg0: i32, %arg1: i32, %arg2: i32) -> (i32, i32) {
    %c1_i32 = arith.constant 1 : i32
    %0 = arith.subi %c1_i32, %arg0 : i32
    %1 = arith.muli %arg2, %0 : i32
    %c0_i32 = arith.constant 0 : i32
    %c0_i32_0 = arith.constant 0 : i32
    return %c0_i32, %1 : i32, i32
  }
  func.func @transform_1(%arg0: i32, %arg1: i32, %arg2: i32) -> (i32, i32, i32) {
    %c1_i32 = arith.constant 1 : i32
    %0 = arith.subi %c1_i32, %arg0 : i32
    %1 = arith.muli %arg1, %0 : i32
    %c0_i32 = arith.constant 0 : i32
    %c0_i32_0 = arith.constant 0 : i32
    %c0_i32_1 = arith.constant 0 : i32
    return %1, %c0_i32, %c0_i32_0 : i32, i32, i32
  }
  func.func @transform_2(%arg0: i32, %arg1: i32, %arg2: i32) -> (i32, i32) {
    %c0_i32 = arith.constant 0 : i32
    %c0_i32_0 = arith.constant 0 : i32
    %c0_i32_1 = arith.constant 0 : i32
    return %c0_i32, %c0_i32_0 : i32, i32
  }
  func.func @transform_3(%arg0: i32, %arg1: i32, %arg2: i32) -> (i32, i32) {
    %c0_i32 = arith.constant 0 : i32
    %c0_i32_0 = arith.constant 0 : i32
    %c0_i32_1 = arith.constant 0 : i32
    return %c0_i32, %c0_i32_0 : i32, i32
  }
  func.func @transform_4(%arg0: i32, %arg1: i32, %arg2: i32) -> (i32, i32) {
    %c1_i32 = arith.constant 1 : i32
    %0 = arith.muli %arg1, %c1_i32 : i32
    %1 = arith.addi %0, %arg2 : i32
    %2 = arith.muli %1, %arg0 : i32
    %c0_i32 = arith.constant 0 : i32
    %c0_i32_0 = arith.constant 0 : i32
    return %c0_i32, %2 : i32, i32
  }
}

</mosaic_0001>

<bundles_post_ra>
// kernel: test_gen_forward.9
= control target key start
LH: loop header
LB: loop body
LE: loop exit
PB: predicated region body
PF: predicated region fallthrough
CT: control target
= control target key end

     0   :  { %s785_s15 = smov 0   ;;  %s787_s16 = smov 0   ;;  %s886_s0 = inlined_call_operand.vmem [shape: bf16[27,512], index: 0, kind: input, shape index: {}]   ;;  %s887_s1 = inlined_call_operand.vmem [shape: bf16[1,4,27], index: 1, kind: input, shape index: {}]   ;;  %s888_s2 = inlined_call_operand.vmem [shape: f32[4,1], index: 2, kind: input, shape index: {}]   ;;  %s889_s3 = inlined_call_operand.vmem [shape: f32[4,1], index: 3, kind: input, shape index: {}]   ;;  %s890_s4 = inlined_call_operand.vmem [shape: bf16[4,512], index: 4, kind: output, shape index: {}]  }
   0x1   :  { %s789_s17 = smov 0  }
   0x2 LB: > { %s33_s18 = sadd.s32 1, %s750_s16  ;;  %p650_p0 = scmp.ge.s32.totalorder %s754_s17, 1  ;;  %s754_s17 = sphi %s789_s17, %s14_s17   ;;  %s750_s16 = sphi %s787_s16, %s892_s16   ;;  %s746_s15 = sphi %s785_s15, %s891_s15  }
   0x3   : > { %p35_p1 = scmp.ge.s32.totalorder %s33_s18, 2  ;;  %p211_p2 = scmp.lt.s32.totalorder %s754_s17, 3 }
   0x5   : > { %s894_s18 = smov (%p35_p1, %s33_s18), 0  ;;  %p212_p3 = pnand %p650_p0, %p211_p2 }
   0x6   : > { %p651_p4 = scmp.ne.s32.totalorder (!%p212_p3), %s746_s15, 0 }
   0x7   : > { %215 = sbr.rel (%p212_p3) target bundleno = 487 (0x1e7), region = 36 }
   0xc   : > { %281 = sbr.rel (%p651_p4) target bundleno = 295 (0x127), region = 40 }
  0x11   : > { %v670_v0 = vld [vmem:[%s886_s0 + $0x20] sm:$0xf]  ;;  %v699_v1 = vld [vmem:[%s886_s0 + $0x2c] sm:$0x30]  ;;  %vm338_vm0 = vcmask 1044480   ;;  %vm339_vm1 = vcmask 1045504  }
  0x12   : > { %v671_v2 = vor.u32 %v699_v1, %v670_v0  ;;  %v697_v3 = vld [vmem:[%s886_s0 + $0x24] sm:$0xf]  ;;  %v672_v4 = vld [vmem:[%s886_s0 + $0x30] sm:$0x30]  ;;  %v756_v5 = vmov 65535   ;;  %vm334_vm2 = vcmask 220160  }
  0x13   : > { %v340_v6 = vsel %vm338_vm0, 4294967295, %v756_v5  ;;  %v675_v7 = vor.u32 %v697_v3, %v672_v4  ;;  %v678_v8 = vld [vmem:[%s886_s0 + $0x28] sm:$0xf]  ;;  %v700_v9 = vld [vmem:[%s886_s0 + $0x34] sm:$0x30]  ;;  %vm412_vm3 = vcmask 1043456  }
  0x14   : > { %v341_v10 = vsel %vm339_vm1, %v340_v6, 0  ;;  %v679_v11 = vor.u32 %v700_v9, %v678_v8  ;;  %v698_v12 = vld [vmem:[%s886_s0 + $0x2c] sm:$0xf]  ;;  %v680_v13 = vld [vmem:[%s886_s0 + $0x38] sm:$0x30]  ;;  %vm286_vm4 = vcmask 3072  }
  0x15   : > { %v343_v14 = vand.u32 %v671_v2, %v341_v10  ;;  %v346_v15 = vand.u32 %v675_v7, %v341_v10  ;;  %v683_v16 = vor.u32 %v698_v12, %v680_v13  ;;  %v654_v17 = vld [vmem:[%s886_s0] sm:$0xf]  ;;  %v695_v18 = vld [vmem:[%s886_s0 + $0xc] sm:$0xf0]  ;;  %v693_v19 = vld [vmem:[%s886_s0 + $0x4] sm:$0xf] }
  0x16   : > { %v349_v20 = vand.u32 %v679_v11, %v341_v10  ;;  %v656_v21 = vld [vmem:[%s886_s0 + $0x10] sm:$0xf0]  ;;  %v662_v22 = vld [vmem:[%s886_s0 + $0x8] sm:$0xf]  ;;  %v696_v23 = vld [vmem:[%s886_s0 + $0x14] sm:$0xf0]  ;;  %v655_v25 = vor.u32 %v695_v18, %v654_v17 }
  0x17   : > { %360 = vmatpush.bf16.msra.mxu0 %v343_v14  ;;  %373 = vmatpush.bf16.msra.mxu1 %v346_v15  ;;  %v352_v24 = vand.u32 %v683_v16, %v341_v10  ;;  %v659_v26 = vor.u32 %v693_v19, %v656_v21  ;;  %v694_v27 = vld [vmem:[%s886_s0 + $0xc] sm:$0xf]  ;;  %v664_v28 = vld [vmem:[%s886_s0 + $0x18] sm:$0xf0]  ;;  %v663_v29 = vor.u32 %v696_v23, %v662_v22  ;;  %v289_v31 = vld [vmem:[%s887_s1] sm:$0x3] }
  0x18   : > { %386 = vmatpush.bf16.msra.mxu2 %v349_v20  ;;  %v667_v30 = vor.u32 %v694_v27, %v664_v28  ;;  %v757_v62 = vmov 0.0  }
  0x19   : > { %399 = vmatpush.bf16.msra.mxu3 %v352_v24  ;;  %287 = vst.msk [vmem:[#allocation3] sm:$0xf] %vm286_vm4, %v757_v62 }
  0x1a   : > { %288 = vst.msk [vmem:[#allocation4] sm:$0xf] %vm286_vm4, %v757_v62 }
  0x1b   : > { %361 = vmatpush.bf16.msra.mxu0 %v655_v25  ;;  %374 = vmatpush.bf16.msra.mxu1 %v659_v26 }
  0x1c   : > { %387 = vmatpush.bf16.msra.mxu2 %v663_v29 }
  0x1d   : > { %400 = vmatpush.bf16.msra.mxu3 %v667_v30 }
  0x1e   : > { %684 = vmatmul.msk.bf16.vlgmr.msra.gmra.mxu0 %vm334_vm2, %v289_v31  ;;  %685 = vmatmul.msk.bf16.vlgmr.msra.gmra.mxu1 %vm334_vm2, %v289_v31 }
  0x1f   : > { %686 = vmatmul.msk.bf16.vlgmr.msra.gmra.mxu2 %vm334_vm2, %v289_v31 }
  0x20   : > { %687 = vmatmul.msk.bf16.vlgmr.msra.gmra.mxu3 %vm334_vm2, %v289_v31  ;;  %v423_v63 = vld [vmem:[#allocation3] sm:$0xf] }
  0x21   : > { %v436_v2 = vld [vmem:[#allocation4] sm:$0xf] }
  0x9b   : > { %v363_v32 = vpop.f32.mrf.mxu0  ;;  %v376_v33 = vpop.f32.mrf.mxu1 }
  0x9c   : > { %v410_v34 = vrot.slane %v376_v33, 4  ;;  %v424_v35 = vsel %vm412_vm3, %v363_v32, 0.0  ;;  %v425_v36 = vsel %vm412_vm3, %v376_v33, 0.0  ;;  %v437_v38 = vmul.f32 %v363_v32, %v363_v32 }
  0x9d   : > { %v438_v39 = vmul.f32 %v376_v33, %v376_v33  ;;  %v426_v40 = vadd.f32 %v425_v36, %v424_v35 }
  0x9e   : > { %v413_v37 = vsel %vm412_vm3, %v363_v32, %v410_v34  ;;  %v441_v42 = vsel %vm412_vm3, %v437_v38, 0.0 }
  0x9f   : > { %421 = vst [vmem:[#allocation2] sm:$0xff] %v413_v37  ;;  %v442_v43 = vsel %vm412_vm3, %v438_v39, 0.0 }
  0xa0   : > { %v443_v54 = vadd.f32 %v442_v43, %v441_v42 }
  0xa2   : > { %v389_v41 = vpop.f32.mrf.mxu2 }
  0xa3   : > { %v439_v44 = vmul.f32 %v389_v41, %v389_v41  ;;  %v402_v45 = vpop.f32.mrf.mxu3  ;;  %v365_v46 = vpop.f32.mrf.mxu0  ;;  %v427_v47 = vsel %vm412_vm3, %v389_v41, 0.0 }
  0xa4   : > { %v411_v48 = vrot.slane %v402_v45, 4  ;;  %v378_v49 = vpop.f32.mrf.mxu1  ;;  %v428_v50 = vadd.f32 %v427_v47, %v426_v40  ;;  %v429_v51 = vsel %vm412_vm3, %v402_v45, 0.0  ;;  %v440_v55 = vmul.f32 %v402_v45, %v402_v45 }
  0xa5   : > { %v444_v56 = vsel %vm412_vm3, %v439_v44, 0.0 }
  0xa6   : > { %v414_v52 = vsel %vm412_vm3, %v389_v41, %v411_v48  ;;  %v430_v53 = vadd.f32 %v429_v51, %v428_v50  ;;  %v445_v58 = vadd.f32 %v444_v56, %v443_v54  ;;  %v446_v60 = vsel %vm412_vm3, %v440_v55, 0.0 }
  0xa7   : > { %422 = vst [vmem:[#allocation2 + $0x8] sm:$0xff] %v414_v52 }
  0xa8   : > { %431 = vadd.xlane.f32.xlu0 %v430_v53  ;;  %v447_v61 = vadd.f32 %v446_v60, %v445_v58 }
  0xaa   : > { %v391_v57 = vpop.f32.mrf.mxu2 }
  0xab   : > { %v404_v59 = vpop.f32.mrf.mxu3 }
  0xb0   : > { %448 = vadd.xlane.f32.xlu0 %v447_v61 }
 0x11b   : > { %v432_v0 = vpop.xlane.xlu0 %431 }
 0x11c   : > { %v433_v1 = vadd.f32 %v432_v0, %v423_v63 }
 0x11e   : > { %435 = vst.msk [vmem:[#allocation3] sm:$0xf] %vm286_vm4, %v433_v1 }
 0x123   : > { %v449_v3 = vpop.xlane.xlu0 %448 }
 0x124   : > { %v450_v4 = vadd.f32 %v449_v3, %v436_v2 }
 0x126   : > { %451 = vst.msk [vmem:[#allocation4] sm:$0xf] %vm286_vm4, %v450_v4 }
 0x127 PF: > { %p688_p5 = scmp.ne.s32.totalorder %s746_s15, 1 }
 0x129   : > { %455 = sbr.rel (%p688_p5) target bundleno = 487 (0x1e7), region = 48 }
 0x12e   : > { %v460_v5 = vld [vmem:[#allocation3] sm:$0xf]  ;;  %v462_v6 = vld [vmem:[#allocation4] sm:$0xf]  ;;  %v758_v7 = vmov 0   ;;  %vm480_vm8 = vcmask 3072  }
 0x12f   : > { %729 = vset.pattern.permute.xlu0 %v758_v7  ;;  %v461_v8 = vmul.f32 0.001953125, %v460_v5  ;;  %v463_v9 = vmul.f32 0.001953125, %v462_v6  ;;  %v467_v19 = vld [vmem:[%s888_s2] sm:$0xf]  ;;  %v759_v28 = vmov 839922192  }
 0x130   : > { %v482_v23 = vld [vmem:[%s889_s3] sm:$0xf]  ;;  %v498_v29 = vunpack.c.l.s4 %v759_v28  ;;  %v490_v33 = vld [vmem:[#allocation2] sm:$0xff]  ;;  %v491_v34 = vld [vmem:[#allocation2 + $0x8] sm:$0xff]  ;;  %vm542_vm11 = vcmask 1041408   ;;  %vm546_vm12 = vcmask 1045508  }
 0x131   : > { %v464_v10 = vmul.f32 %v461_v8, %v461_v8  ;;  %vm550_vm13 = vcmask 1043456  }
 0x132   : > { %v499_v31 = vunpack.c.0.s8 %v498_v29 }
 0x133   : > { %v465_v11 = vsub.f32 %v463_v9, %v464_v10 }
 0x135   : > { %v466_v12 = vmax.f32 %v465_v11, 0.0 }
 0x137   : > { %v468_v13 = vadd.f32 1e-05, %v466_v12 }
 0x139   : > { %730 = vrsqrt.f32 %v468_v13  ;;  %vm475_vm5 = vweird.f32 %v468_v13 }
 0x13f   : > { %v731_v14 = vpop.eup %730 }
 0x140   : > { %v470_v15 = vmul.f32 %v731_v14, %v468_v13  ;;  %vm476_vm6 = vweird.f32 %v731_v14 }
 0x141   : > { %vm477_vm7 = vmor %vm475_vm5, %vm476_vm6 }
 0x142   : > { %v471_v16 = vmul.f32 %v731_v14, %v470_v15 }
 0x144   : > { %v472_v17 = vmul.f32 0.5, %v471_v16 }
 0x146   : > { %v473_v18 = vsub.f32 1.5, %v472_v17 }
 0x148   : > { %v474_v20 = vmul.f32 %v731_v14, %v473_v18 }
 0x14a   : > { %v478_v21 = vsel %vm477_vm7, %v731_v14, %v474_v20 }
 0x14b   : > { %v479_v22 = vmul.f32 %v478_v21, %v467_v19 }
 0x14d   : > { %481 = vst.msk [vmem:[#allocation5] sm:$0xf] %vm480_vm8, %v479_v22  ;;  %v483_v24 = vmul.f32 %v479_v22, %v461_v8 }
 0x14f   : > { %v484_v25 = vsub.f32 %v482_v23, %v483_v24 }
 0x151   : > { %485 = vst.msk [vmem:[#allocation6] sm:$0xf] %vm480_vm8, %v484_v25 }
 0x154   : > { %v492_v26 = vld [vmem:[#allocation5] sm:$0xf] }
 0x155   : > { %495 = vperm.xlu0 %729, %v492_v26  }
 0x158   : > { %v504_v27 = vld [vmem:[#allocation6] sm:$0xf] }
 0x15d   : > { %507 = vperm.xlu0 %729, %v504_v27  }
 0x1c7   : > { %v496_v30 = vpop.permute.xlu0 %495 }
 0x1c8   : > { %v500_v32 = vperm.slane %v496_v30, %v499_v31 }
 0x1ca   : > { %v502_v36 = vmul.f32 %v500_v32, %v490_v33  ;;  %v503_v37 = vmul.f32 %v500_v32, %v491_v34 }
 0x1cf   : > { %v508_v35 = vpop.permute.xlu0 %507 }
 0x1d0   : > { %v512_v38 = vperm.slane %v508_v35, %v499_v31 }
 0x1d2   : > { %v514_v39 = vadd.f32 %v512_v38, %v502_v36  ;;  %v515_v40 = vadd.f32 %v512_v38, %v503_v37 }
 0x1d4   : > { %vm516_vm9 = vcmp.ge.f32.partialorder %v514_v39, 0.0  ;;  %vm517_vm10 = vcmp.ge.f32.partialorder %v515_v40, 0.0  ;;  %v518_v41 = vmul.f32 0.2, %v514_v39  ;;  %v519_v42 = vmul.f32 0.2, %v515_v40 }
 0x1d6   : > { %v520_v43 = vsel %vm516_vm9, %v514_v39, %v518_v41  ;;  %v521_v44 = vsel %vm517_vm10, %v515_v40, %v519_v42 }
 0x1d7   : > { %524 = vst [vmem:[#allocation1] ss:$2 sm:$0xff] %v520_v43 }
 0x1d8   : > { %526 = vst [vmem:[#allocation1 + $0x10] ss:$2 sm:$0xff] %v521_v44 }
 0x1de   : > { %v527_v45 = vld.sshfl [vmem:[#allocation1] sm:$0xff pattern:$0x75316420]  ;;  %v528_v46 = vld.sshfl [vmem:[#allocation1 + $0x8] sm:$0xff pattern:$0x75316420] }
 0x1df   : > { %v529_v47 = vld.sshfl [vmem:[#allocation1 + $0x10] sm:$0xff pattern:$0x75316420]  ;;  %v530_v48 = vld.sshfl [vmem:[#allocation1 + $0x18] sm:$0xff pattern:$0x75316420]  ;;  %v535_v49 = vpack.c.bf16 %v528_v46, %v527_v45 }
 0x1e0   : > { %v536_v50 = vpack.c.bf16 %v530_v48, %v529_v47 }
 0x1e1   : > { %v539_v51 = vrot.slane %v535_v49, 2 }
 0x1e2   : > { %v540_v52 = vrot.slane %v536_v50, 4  ;;  %v541_v53 = vrot.slane %v536_v50, 6 }
 0x1e3   : > { %v545_v54 = vsel %vm542_vm11, %v535_v49, %v539_v51 }
 0x1e4   : > { %v549_v55 = vsel %vm546_vm12, %v540_v52, %v541_v53 }
 0x1e5   : > { %v551_v56 = vsel %vm550_vm13, %v545_v54, %v549_v55 }
 0x1e6   : > { %553 = vst [vmem:[%s890_s4] sm:$0xff] %v551_v56 }
 0x1e7 PF: > { %s14_s17 = sadd.s32 1, %s754_s17   ;;  %s891_s15 = smov %s750_s16 }
 0x1e8   : > { %p11_p6 = scmp.ge.s32.totalorder %s14_s17, 4   ;;  %s892_s16 = smov %s894_s18 }
 0x1ea   :  { %13 = sbr.rel (!%p11_p6) target bundleno = 2 (0x2), region = 88 }

// kernel: test_gen_forward.10
= control target key start
LH: loop header
LB: loop body
LE: loop exit
PB: predicated region body
PF: predicated region fallthrough
CT: control target
= control target key end

     0   :  { %s790_s15 = smov 0   ;;  %s792_s16 = smov 0   ;;  %s901_s0 = inlined_call_operand.vmem [shape: bf16[36,512], index: 0, kind: input, shape index: {}]   ;;  %s902_s1 = inlined_call_operand.vmem [shape: bf16[1,4,36], index: 1, kind: input, shape index: {}]   ;;  %s903_s2 = inlined_call_operand.vmem [shape: f32[4,1], index: 2, kind: input, shape index: {}]   ;;  %s904_s3 = inlined_call_operand.vmem [shape: f32[4,1], index: 3, kind: input, shape index: {}]   ;;  %s905_s4 = inlined_call_operand.vmem [shape: bf16[4,512], index: 4, kind: output, shape index: {}]  }
   0x1   :  { %s794_s17 = smov 0  }
   0x2 LB: > { %s33_s18 = sadd.s32 1, %s756_s16  ;;  %p657_p0 = scmp.ge.s32.totalorder %s760_s17, 1  ;;  %s760_s17 = sphi %s794_s17, %s14_s17   ;;  %s756_s16 = sphi %s792_s16, %s907_s16   ;;  %s752_s15 = sphi %s790_s15, %s906_s15  }
   0x3   : > { %p35_p1 = scmp.ge.s32.totalorder %s33_s18, 2  ;;  %p211_p2 = scmp.lt.s32.totalorder %s760_s17, 3 }
   0x5   : > { %s909_s18 = smov (%p35_p1, %s33_s18), 0  ;;  %p212_p3 = pnand %p657_p0, %p211_p2 }
   0x6   : > { %p658_p4 = scmp.ne.s32.totalorder (!%p212_p3), %s752_s15, 0 }
   0x7   : > { %215 = sbr.rel (%p212_p3) target bundleno = 488 (0x1e8), region = 36 }
   0xc   : > { %281 = sbr.rel (%p658_p4) target bundleno = 299 (0x12b), region = 40 }
  0x11   : > { %v298_v0 = vld [vmem:[%s901_s0 + $0x40] sm:$0x33]  ;;  %v299_v1 = vld [vmem:[%s901_s0 + $0x48] sm:$0x33]  ;;  %vm354_vm0 = vcmask 1041408   ;;  %vm350_vm1 = vcmask 293888  }
  0x12   : > { %v326_v2 = vunpack.c.l.b16 %v298_v0  ;;  %v327_v3 = vunpack.c.h.b16 %v298_v0  ;;  %v328_v4 = vunpack.c.l.b16 %v299_v1  ;;  %v329_v5 = vunpack.c.h.b16 %v299_v1  ;;  %v677_v6 = vld [vmem:[%s901_s0 + $0x20] sm:$0xf]  ;;  %v706_v7 = vld [vmem:[%s901_s0 + $0x2c] sm:$0xf0]  ;;  %v704_v12 = vld [vmem:[%s901_s0 + $0x24] sm:$0xf] }
  0x13   : > { %v679_v13 = vld [vmem:[%s901_s0 + $0x30] sm:$0xf0]  ;;  %v685_v14 = vld [vmem:[%s901_s0 + $0x28] sm:$0xf]  ;;  %v707_v15 = vld [vmem:[%s901_s0 + $0x34] sm:$0xf0]  ;;  %v678_v22 = vor.u32 %v706_v7, %v677_v6 }
  0x14   : > { %v338_v8 = vpack.c.b16 %v326_v2, %v326_v2  ;;  %v339_v9 = vpack.c.b16 %v327_v3, %v327_v3  ;;  %v340_v10 = vpack.c.b16 %v328_v4, %v328_v4  ;;  %v341_v11 = vpack.c.b16 %v329_v5, %v329_v5  ;;  %v705_v16 = vld [vmem:[%s901_s0 + $0x2c] sm:$0xf]  ;;  %v687_v17 = vld [vmem:[%s901_s0 + $0x38] sm:$0xf0]  ;;  %v661_v24 = vld [vmem:[%s901_s0] sm:$0xf] }
  0x15   : > { %v682_v23 = vor.u32 %v704_v12, %v679_v13  ;;  %v702_v25 = vld [vmem:[%s901_s0 + $0xc] sm:$0xf0]  ;;  %v686_v26 = vor.u32 %v707_v15, %v685_v14  ;;  %v690_v27 = vor.u32 %v705_v16, %v687_v17  ;;  %v700_v28 = vld [vmem:[%s901_s0 + $0x4] sm:$0xf]  ;;  %v663_v29 = vld [vmem:[%s901_s0 + $0x10] sm:$0xf0] }
  0x16   : > { %v356_v18 = vsel %vm354_vm0, %v338_v8, 0  ;;  %v359_v19 = vsel %vm354_vm0, %v339_v9, 0  ;;  %v362_v20 = vsel %vm354_vm0, %v340_v10, 0  ;;  %v365_v21 = vsel %vm354_vm0, %v341_v11, 0  ;;  %v669_v30 = vld [vmem:[%s901_s0 + $0x8] sm:$0xf] }
  0x17   : > { %372 = vmatpush.bf16.msra.mxu0 %v356_v18  ;;  %385 = vmatpush.bf16.msra.mxu1 %v359_v19  ;;  %v703_v31 = vld [vmem:[%s901_s0 + $0x14] sm:$0xf0]  ;;  %v701_v32 = vld [vmem:[%s901_s0 + $0xc] sm:$0xf]  ;;  %v671_v33 = vld [vmem:[%s901_s0 + $0x18] sm:$0xf0]  ;;  %v662_v34 = vor.u32 %v702_v25, %v661_v24  ;;  %v666_v35 = vor.u32 %v700_v28, %v663_v29 }
  0x18   : > { %398 = vmatpush.bf16.msra.mxu2 %v362_v20  ;;  %411 = vmatpush.bf16.msra.mxu3 %v365_v21  ;;  %v670_v36 = vor.u32 %v703_v31, %v669_v30  ;;  %v674_v37 = vor.u32 %v701_v32, %v671_v33  ;;  %v289_v38 = vld [vmem:[%s902_s1] sm:$0x3]  ;;  %vm425_vm2 = vcmask 1043456   ;;  %vm286_vm3 = vcmask 3072  }
  0x19   : > { %v762_v5 = vmov 0.0  }
  0x1a   : > { %287 = vst.msk [vmem:[#allocation3] sm:$0xf] %vm286_vm3, %v762_v5 }
  0x1b   : > { %373 = vmatpush.bf16.msra.mxu0 %v678_v22  ;;  %386 = vmatpush.bf16.msra.mxu1 %v682_v23  ;;  %288 = vst.msk [vmem:[#allocation4] sm:$0xf] %vm286_vm3, %v762_v5 }
  0x1c   : > { %399 = vmatpush.bf16.msra.mxu2 %v686_v26  ;;  %412 = vmatpush.bf16.msra.mxu3 %v690_v27 }
  0x1f   : > { %374 = vmatpush.bf16.msra.mxu0 %v662_v34  ;;  %387 = vmatpush.bf16.msra.mxu1 %v666_v35 }
  0x20   : > { %400 = vmatpush.bf16.msra.mxu2 %v670_v36  ;;  %413 = vmatpush.bf16.msra.mxu3 %v674_v37 }
  0x21   : > { %v436_v6 = vld [vmem:[#allocation3] sm:$0xf] }
  0x22   : > { %691 = vmatmul.msk.bf16.vlgmr.msra.gmra.mxu0 %vm350_vm1, %v289_v38  ;;  %692 = vmatmul.msk.bf16.vlgmr.msra.gmra.mxu1 %vm350_vm1, %v289_v38  ;;  %v449_v9 = vld [vmem:[#allocation4] sm:$0xf] }
  0x23   : > { %693 = vmatmul.msk.bf16.vlgmr.msra.gmra.mxu2 %vm350_vm1, %v289_v38  ;;  %694 = vmatmul.msk.bf16.vlgmr.msra.gmra.mxu3 %vm350_vm1, %v289_v38 }
  0x9f   : > { %v376_v39 = vpop.f32.mrf.mxu0  ;;  %v389_v40 = vpop.f32.mrf.mxu1 }
  0xa0   : > { %v423_v41 = vrot.slane %v389_v40, 4  ;;  %v437_v42 = vsel %vm425_vm2, %v376_v39, 0.0  ;;  %v438_v43 = vsel %vm425_vm2, %v389_v40, 0.0  ;;  %v450_v44 = vmul.f32 %v376_v39, %v376_v39 }
  0xa1   : > { %v451_v46 = vmul.f32 %v389_v40, %v389_v40  ;;  %v439_v47 = vadd.f32 %v438_v43, %v437_v42 }
  0xa2   : > { %v426_v45 = vsel %vm425_vm2, %v376_v39, %v423_v41  ;;  %v454_v48 = vsel %vm425_vm2, %v450_v44, 0.0 }
  0xa3   : > { %434 = vst [vmem:[#allocation2] sm:$0xff] %v426_v45  ;;  %v455_v51 = vsel %vm425_vm2, %v451_v46, 0.0 }
  0xa4   : > { %v456_v61 = vadd.f32 %v455_v51, %v454_v48 }
  0xa6   : > { %v402_v49 = vpop.f32.mrf.mxu2  ;;  %v415_v50 = vpop.f32.mrf.mxu3 }
  0xa7   : > { %v452_v52 = vmul.f32 %v402_v49, %v402_v49  ;;  %v424_v53 = vrot.slane %v415_v50, 4  ;;  %v378_v54 = vpop.f32.mrf.mxu0  ;;  %v391_v55 = vpop.f32.mrf.mxu1  ;;  %v440_v56 = vsel %vm425_vm2, %v402_v49, 0.0  ;;  %v442_v58 = vsel %vm425_vm2, %v415_v50, 0.0 }
  0xa8   : > { %v441_v57 = vadd.f32 %v440_v56, %v439_v47  ;;  %v453_v62 = vmul.f32 %v415_v50, %v415_v50 }
  0xa9   : > { %v427_v59 = vsel %vm425_vm2, %v402_v49, %v424_v53  ;;  %v457_v63 = vsel %vm425_vm2, %v452_v52, 0.0 }
  0xaa   : > { %435 = vst [vmem:[#allocation2 + $0x8] sm:$0xff] %v427_v59  ;;  %v443_v60 = vadd.f32 %v442_v58, %v441_v57  ;;  %v458_v2 = vadd.f32 %v457_v63, %v456_v61  ;;  %v459_v3 = vsel %vm425_vm2, %v453_v62, 0.0 }
  0xac   : > { %444 = vadd.xlane.f32.xlu0 %v443_v60  ;;  %v460_v4 = vadd.f32 %v459_v3, %v458_v2 }
  0xae   : > { %v404_v0 = vpop.f32.mrf.mxu2  ;;  %v417_v1 = vpop.f32.mrf.mxu3 }
  0xb4   : > { %461 = vadd.xlane.f32.xlu0 %v460_v4 }
 0x11f   : > { %v445_v7 = vpop.xlane.xlu0 %444 }
 0x120   : > { %v446_v8 = vadd.f32 %v445_v7, %v436_v6 }
 0x122   : > { %448 = vst.msk [vmem:[#allocation3] sm:$0xf] %vm286_vm3, %v446_v8 }
 0x127   : > { %v462_v10 = vpop.xlane.xlu0 %461 }
 0x128   : > { %v463_v11 = vadd.f32 %v462_v10, %v449_v9 }
 0x12a   : > { %464 = vst.msk [vmem:[#allocation4] sm:$0xf] %vm286_vm3, %v463_v11 }
 0x12b PF: > { %p695_p5 = scmp.ne.s32.totalorder %s752_s15, 1 }
 0x12d   : > { %468 = sbr.rel (%p695_p5) target bundleno = 488 (0x1e8), region = 48 }
 0x132   : > { %v473_v12 = vld [vmem:[#allocation3] sm:$0xf]  ;;  %v475_v13 = vld [vmem:[#allocation4] sm:$0xf]  ;;  %v763_v14 = vmov 0   ;;  %vm493_vm7 = vcmask 3072  }
 0x133   : > { %735 = vset.pattern.permute.xlu0 %v763_v14  ;;  %v474_v15 = vmul.f32 0.001953125, %v473_v12  ;;  %v476_v16 = vmul.f32 0.001953125, %v475_v13  ;;  %v480_v26 = vld [vmem:[%s903_s2] sm:$0xf]  ;;  %v764_v35 = vmov 839922192  }
 0x134   : > { %v495_v30 = vld [vmem:[%s904_s3] sm:$0xf]  ;;  %v511_v36 = vunpack.c.l.s4 %v764_v35  ;;  %v503_v40 = vld [vmem:[#allocation2] sm:$0xff]  ;;  %v504_v41 = vld [vmem:[#allocation2 + $0x8] sm:$0xff]  ;;  %vm549_vm8 = vcmask 1041408   ;;  %vm553_vm9 = vcmask 1045508  }
 0x135   : > { %v477_v17 = vmul.f32 %v474_v15, %v474_v15  ;;  %vm557_vm10 = vcmask 1043456  }
 0x136   : > { %v512_v38 = vunpack.c.0.s8 %v511_v36 }
 0x137   : > { %v478_v18 = vsub.f32 %v476_v16, %v477_v17 }
 0x139   : > { %v479_v19 = vmax.f32 %v478_v18, 0.0 }
 0x13b   : > { %v481_v20 = vadd.f32 1e-05, %v479_v19 }
 0x13d   : > { %736 = vrsqrt.f32 %v481_v20  ;;  %vm488_vm4 = vweird.f32 %v481_v20 }
 0x143   : > { %v737_v21 = vpop.eup %736 }
 0x144   : > { %v483_v22 = vmul.f32 %v737_v21, %v481_v20  ;;  %vm489_vm5 = vweird.f32 %v737_v21 }
 0x145   : > { %vm490_vm6 = vmor %vm488_vm4, %vm489_vm5 }
 0x146   : > { %v484_v23 = vmul.f32 %v737_v21, %v483_v22 }
 0x148   : > { %v485_v24 = vmul.f32 0.5, %v484_v23 }
 0x14a   : > { %v486_v25 = vsub.f32 1.5, %v485_v24 }
 0x14c   : > { %v487_v27 = vmul.f32 %v737_v21, %v486_v25 }
 0x14e   : > { %v491_v28 = vsel %vm490_vm6, %v737_v21, %v487_v27 }
 0x14f   : > { %v492_v29 = vmul.f32 %v491_v28, %v480_v26 }
 0x151   : > { %494 = vst.msk [vmem:[#allocation5] sm:$0xf] %vm493_vm7, %v492_v29  ;;  %v496_v31 = vmul.f32 %v492_v29, %v474_v15 }
 0x153   : > { %v497_v32 = vsub.f32 %v495_v30, %v496_v31 }
 0x155   : > { %498 = vst.msk [vmem:[#allocation6] sm:$0xf] %vm493_vm7, %v497_v32 }
 0x158   : > { %v505_v33 = vld [vmem:[#allocation5] sm:$0xf] }
 0x159   : > { %508 = vperm.xlu0 %735, %v505_v33  }
 0x15c   : > { %v517_v34 = vld [vmem:[#allocation6] sm:$0xf] }
 0x161   : > { %520 = vperm.xlu0 %735, %v517_v34  }
 0x1cb   : > { %v509_v37 = vpop.permute.xlu0 %508 }
 0x1cc   : > { %v513_v39 = vperm.slane %v509_v37, %v512_v38 }
 0x1ce   : > { %v515_v43 = vmul.f32 %v513_v39, %v503_v40  ;;  %v516_v44 = vmul.f32 %v513_v39, %v504_v41 }
 0x1d3   : > { %v521_v42 = vpop.permute.xlu0 %520 }
 0x1d4   : > { %v525_v45 = vperm.slane %v521_v42, %v512_v38 }
 0x1d6   : > { %v527_v46 = vadd.f32 %v525_v45, %v515_v43  ;;  %v528_v47 = vadd.f32 %v525_v45, %v516_v44 }
 0x1d8   : > { %531 = vst [vmem:[#allocation1] ss:$2 sm:$0xff] %v527_v46 }
 0x1d9   : > { %533 = vst [vmem:[#allocation1 + $0x10] ss:$2 sm:$0xff] %v528_v47 }
 0x1df   : > { %v534_v48 = vld.sshfl [vmem:[#allocation1] sm:$0xff pattern:$0x75316420]  ;;  %v535_v49 = vld.sshfl [vmem:[#allocation1 + $0x8] sm:$0xff pattern:$0x75316420] }
 0x1e0   : > { %v536_v50 = vld.sshfl [vmem:[#allocation1 + $0x10] sm:$0xff pattern:$0x75316420]  ;;  %v537_v51 = vld.sshfl [vmem:[#allocation1 + $0x18] sm:$0xff pattern:$0x75316420]  ;;  %v542_v52 = vpack.c.bf16 %v535_v49, %v534_v48 }
 0x1e1   : > { %v543_v53 = vpack.c.bf16 %v537_v51, %v536_v50 }
 0x1e2   : > { %v546_v54 = vrot.slane %v542_v52, 2 }
 0x1e3   : > { %v547_v55 = vrot.slane %v543_v53, 4  ;;  %v548_v56 = vrot.slane %v543_v53, 6 }
 0x1e4   : > { %v552_v57 = vsel %vm549_vm8, %v542_v52, %v546_v54 }
 0x1e5   : > { %v556_v58 = vsel %vm553_vm9, %v547_v55, %v548_v56 }
 0x1e6   : > { %v558_v59 = vsel %vm557_vm10, %v552_v57, %v556_v58 }
 0x1e7   : > { %560 = vst [vmem:[%s905_s4] sm:$0xff] %v558_v59 }
 0x1e8 PF: > { %s14_s17 = sadd.s32 1, %s760_s17   ;;  %s906_s15 = smov %s756_s16 }
 0x1e9   : > { %p11_p6 = scmp.ge.s32.totalorder %s14_s17, 4   ;;  %s907_s16 = smov %s909_s18 }
 0x1eb   :  { %13 = sbr.rel (!%p11_p6) target bundleno = 2 (0x2), region = 88 }

// kernel: test_gen_forward.11
= control target key start
LH: loop header
LB: loop body
LE: loop exit
PB: predicated region body
PF: predicated region fallthrough
CT: control target
= control target key end

     0   :  { %s78_s0 = inlined_call_operand.vmem [shape: bf16[4,128], index: 0, kind: input, shape index: {}]   ;;  %s79_s1 = inlined_call_operand.vmem [shape: bf16[4,128], index: 1, kind: input, shape index: {}]   ;;  %s80_s2 = inlined_call_operand.vmem [shape: bf16[4,128], index: 2, kind: input, shape index: {}]   ;;  %s81_s3 = inlined_call_operand.vmem [shape: bf16[4,128], index: 3, kind: input, shape index: {}]   ;;  %s82_s4 = inlined_call_operand.vmem [shape: bf16[4,128], index: 4, kind: output, shape index: {}]  }
   0x1   :  { %v17_v0 = vld [vmem:[%s78_s0] sm:$0x3] }
   0x2   :  { %v18_v1 = vld [vmem:[%s79_s1] sm:$0x3]  ;;  %v19_v3 = vunpack.c.l.bf16 %v17_v0 }
   0x3   :  { %v23_v2 = vld [vmem:[%s80_s2] sm:$0x3]  ;;  %v20_v4 = vunpack.c.l.bf16 %v18_v1 }
   0x4   :  { %v24_v5 = vld [vmem:[%s81_s3] sm:$0x3]  ;;  %v25_v6 = vunpack.c.l.bf16 %v23_v2 }
   0x5   :  { %v26_v7 = vunpack.c.l.bf16 %v24_v5  ;;  %v21_v8 = vmax.f32 %v19_v3, %v20_v4 }
   0x7   :  { %v27_v9 = vmax.f32 %v25_v6, %v26_v7 }
   0x9   :  { %v31_v10 = vmax.f32 %v21_v8, %v27_v9 }
   0xb   :  { %v32_v11 = vpack.c.bf16 %v31_v10, %v31_v10 }
   0xd   :  { %33 = vst [vmem:[%s82_s4] sm:$0x3] %v32_v11 }

// kernel: test_gen_forward.12
= control target key start
LH: loop header
LB: loop body
LE: loop exit
PB: predicated region body
PF: predicated region fallthrough
CT: control target
= control target key end

     0   :  { %s585_s15 = smov 0   ;;  %s587_s16 = smov 0   ;;  %s637_s0 = inlined_call_operand.vmem [shape: bf16[36,128], index: 0, kind: input, shape index: {}]   ;;  %s638_s1 = inlined_call_operand.vmem [shape: bf16[1,8,36], index: 1, kind: input, shape index: {}]   ;;  %s639_s2 = inlined_call_operand.vmem [shape: f32[8,1], index: 2, kind: input, shape index: {}]   ;;  %s640_s3 = inlined_call_operand.vmem [shape: f32[8,1], index: 3, kind: input, shape index: {}]   ;;  %s641_s4 = inlined_call_operand.vmem [shape: bf16[8,128], index: 4, kind: output, shape index: {}]  }
   0x1   :  { %s589_s17 = smov 0  }
   0x2 LB: > { %s33_s18 = sadd.s32 1, %s552_s16  ;;  %p487_p0 = scmp.ge.s32.totalorder %s556_s17, 1  ;;  %s556_s17 = sphi %s589_s17, %s14_s17   ;;  %s552_s16 = sphi %s587_s16, %s643_s16   ;;  %s548_s15 = sphi %s585_s15, %s642_s15  }
   0x3   : > { %p35_p1 = scmp.ge.s32.totalorder %s33_s18, 2  ;;  %p209_p2 = scmp.lt.s32.totalorder %s556_s17, 3 }
   0x5   : > { %s645_s18 = smov (%p35_p1, %s33_s18), 0  ;;  %p210_p3 = pnand %p487_p0, %p209_p2 }
   0x6   : > { %p488_p4 = scmp.ne.s32.totalorder (!%p210_p3), %s548_s15, 0 }
   0x7   : > { %213 = sbr.rel (%p210_p3) target bundleno = 464 (0x1d0), region = 36 }
   0xc   : > { %273 = sbr.rel (%p488_p4) target bundleno = 287 (0x11f), region = 40 }
  0x11   : > { %v286_v0 = vld [vmem:[%s637_s0 + $0x10] sm:$0x3]  ;;  %vm306_vm0 = vcmask 1041408   ;;  %v504_v4 = vld [vmem:[%s637_s0 + $0x8] sm:$0xff]  ;;  %v503_v5 = vld [vmem:[%s637_s0] sm:$0xff]  ;;  %vm302_vm1 = vcmask 293888  }
  0x12   : > { %v296_v1 = vunpack.c.l.b16 %v286_v0  ;;  %v281_v6 = vld [vmem:[%s638_s1] sm:$0xf]  ;;  %vm278_vm2 = vcmask 7168   ;;  %v558_v10 = vmov 0.0  }
  0x13   : > { %279 = vst.msk [vmem:[#allocation3] sm:$0xff] %vm278_vm2, %v558_v10 }
  0x14   : > { %v299_v2 = vpack.c.b16 %v296_v1, %v296_v1  ;;  %280 = vst.msk [vmem:[#allocation4] sm:$0xff] %vm278_vm2, %v558_v10 }
  0x16   : > { %v308_v3 = vsel %vm306_vm0, %v299_v2, 0 }
  0x17   : > { %315 = vmatpush.bf16.msra.mxu0 %v308_v3 }
  0x1a   : > { %v327_v11 = vld [vmem:[#allocation3] sm:$0xff] }
  0x1b   : > { %316 = vmatpush.bf16.msra.mxu0 %v504_v4  ;;  %v333_v14 = vld [vmem:[#allocation4] sm:$0xff] }
  0x1f   : > { %317 = vmatpush.bf16.msra.mxu0 %v503_v5 }
  0x22   : > { %497 = vmatmul.msk.bf16.vlgmr.msra.gmra.mxu0 %vm302_vm1, %v281_v6 }
  0x9f   : > { %v319_v7 = vpop.f32.mrf.mxu0 }
  0xa0   : > { %326 = vst [vmem:[#allocation2] sm:$0xff] %v319_v7  ;;  %328 = vadd.xlane.f32.xlu0 %v319_v7  ;;  %v334_v8 = vmul.f32 %v319_v7, %v319_v7 }
  0xa7   : > { %v321_v9 = vpop.f32.mrf.mxu0 }
  0xa8   : > { %335 = vadd.xlane.f32.xlu0 %v334_v8 }
 0x113   : > { %v329_v12 = vpop.xlane.xlu0 %328 }
 0x114   : > { %v330_v13 = vadd.f32 %v329_v12, %v327_v11 }
 0x116   : > { %332 = vst.msk [vmem:[#allocation3] sm:$0xff] %vm278_vm2, %v330_v13 }
 0x11b   : > { %v336_v15 = vpop.xlane.xlu0 %335 }
 0x11c   : > { %v337_v16 = vadd.f32 %v336_v15, %v333_v14 }
 0x11e   : > { %338 = vst.msk [vmem:[#allocation4] sm:$0xff] %vm278_vm2, %v337_v16 }
 0x11f PF: > { %p498_p5 = scmp.ne.s32.totalorder %s548_s15, 1 }
 0x121   : > { %342 = sbr.rel (%p498_p5) target bundleno = 464 (0x1d0), region = 48 }
 0x126   : > { %v347_v17 = vld [vmem:[#allocation3] sm:$0xff]  ;;  %v349_v18 = vld [vmem:[#allocation4] sm:$0xff]  ;;  %v559_v19 = vmov 0   ;;  %v354_v31 = vld [vmem:[%s639_s2] sm:$0xff]  ;;  %vm367_vm6 = vcmask 7168  }
 0x127   : > { %531 = vset.pattern.permute.xlu0 %v559_v19  ;;  %v348_v20 = vmul.f32 0.0078125, %v347_v17  ;;  %v350_v21 = vmul.f32 0.0078125, %v349_v18  ;;  %v369_v35 = vld [vmem:[%s640_s3] sm:$0xff] }
 0x128   : > { %v376_v41 = vld [vmem:[#allocation2] sm:$0xff] }
 0x129   : > { %v351_v22 = vmul.f32 %v348_v20, %v348_v20 }
 0x12b   : > { %v352_v23 = vsub.f32 %v350_v21, %v351_v22 }
 0x12d   : > { %v353_v24 = vmax.f32 %v352_v23, 0.0 }
 0x12f   : > { %v355_v25 = vadd.f32 1e-05, %v353_v24 }
 0x131   : > { %532 = vrsqrt.f32 %v355_v25  ;;  %vm362_vm3 = vweird.f32 %v355_v25 }
 0x137   : > { %v533_v26 = vpop.eup %532 }
 0x138   : > { %v357_v27 = vmul.f32 %v533_v26, %v355_v25  ;;  %vm363_vm4 = vweird.f32 %v533_v26 }
 0x139   : > { %vm364_vm5 = vmor %vm362_vm3, %vm363_vm4 }
 0x13a   : > { %v358_v28 = vmul.f32 %v533_v26, %v357_v27 }
 0x13c   : > { %v359_v29 = vmul.f32 0.5, %v358_v28 }
 0x13e   : > { %v360_v30 = vsub.f32 1.5, %v359_v29 }
 0x140   : > { %v361_v32 = vmul.f32 %v533_v26, %v360_v30 }
 0x142   : > { %v365_v33 = vsel %vm364_vm5, %v533_v26, %v361_v32 }
 0x143   : > { %v366_v34 = vmul.f32 %v365_v33, %v354_v31 }
 0x145   : > { %368 = vst.msk [vmem:[#allocation5] sm:$0xff] %vm367_vm6, %v366_v34  ;;  %v370_v36 = vmul.f32 %v366_v34, %v348_v20 }
 0x147   : > { %v371_v37 = vsub.f32 %v369_v35, %v370_v36 }
 0x149   : > { %372 = vst.msk [vmem:[#allocation6] sm:$0xff] %vm367_vm6, %v371_v37 }
 0x14c   : > { %v377_v38 = vld [vmem:[#allocation5] sm:$0xff] }
 0x14d   : > { %380 = vperm.xlu0 %531, %v377_v38  }
 0x150   : > { %v384_v39 = vld [vmem:[#allocation6] sm:$0xff] }
 0x155   : > { %387 = vperm.xlu0 %531, %v384_v39  }
 0x1bf   : > { %v381_v40 = vpop.permute.xlu0 %380 }
 0x1c0   : > { %v383_v42 = vmul.f32 %v381_v40, %v376_v41 }
 0x1c7   : > { %v388_v43 = vpop.permute.xlu0 %387 }
 0x1c8   : > { %v390_v44 = vadd.f32 %v388_v43, %v383_v42 }
 0x1ca   : > { %vm391_vm7 = vcmp.ge.f32.partialorder %v390_v44, 0.0  ;;  %v392_v45 = vmul.f32 0.2, %v390_v44 }
 0x1cc   : > { %v393_v46 = vsel %vm391_vm7, %v390_v44, %v392_v45 }
 0x1cd   : > { %v394_v47 = vpack.c.bf16 %v393_v46, %v393_v46 }
 0x1cf   : > { %395 = vst [vmem:[%s641_s4] sm:$0xf] %v394_v47 }
 0x1d0 PF: > { %s14_s17 = sadd.s32 1, %s556_s17   ;;  %s642_s15 = smov %s552_s16 }
 0x1d1   : > { %p11_p6 = scmp.ge.s32.totalorder %s14_s17, 4   ;;  %s643_s16 = smov %s645_s18 }
 0x1d3   :  { %13 = sbr.rel (!%p11_p6) target bundleno = 2 (0x2), region = 87 }

// kernel: test_gen_forward.13
= control target key start
LH: loop header
LB: loop body
LE: loop exit
PB: predicated region body
PF: predicated region fallthrough
CT: control target
= control target key end

     0   :  { %s608_s15 = smov 0   ;;  %s610_s16 = smov 0   ;;  %s666_s0 = inlined_call_operand.vmem [shape: bf16[72,128], index: 0, kind: input, shape index: {}]   ;;  %s667_s1 = inlined_call_operand.vmem [shape: bf16[1,8,72], index: 1, kind: input, shape index: {}]   ;;  %s668_s2 = inlined_call_operand.vmem [shape: f32[8,1], index: 2, kind: input, shape index: {}]   ;;  %s669_s3 = inlined_call_operand.vmem [shape: f32[8,1], index: 3, kind: input, shape index: {}]   ;;  %s670_s4 = inlined_call_operand.vmem [shape: bf16[8,128], index: 4, kind: output, shape index: {}]  }
   0x1   :  { %s612_s17 = smov 0  }
   0x2 LB: > { %s33_s18 = sadd.s32 1, %s575_s16  ;;  %p500_p0 = scmp.ge.s32.totalorder %s579_s17, 1  ;;  %s579_s17 = sphi %s612_s17, %s14_s17   ;;  %s575_s16 = sphi %s610_s16, %s672_s16   ;;  %s571_s15 = sphi %s608_s15, %s671_s15  }
   0x3   : > { %p35_p1 = scmp.ge.s32.totalorder %s33_s18, 2  ;;  %p209_p2 = scmp.lt.s32.totalorder %s579_s17, 3 }
   0x5   : > { %s674_s18 = smov (%p35_p1, %s33_s18), 0  ;;  %p210_p3 = pnand %p500_p0, %p209_p2 }
   0x6   : > { %p501_p4 = scmp.ne.s32.totalorder (!%p210_p3), %s571_s15, 0 }
   0x7   : > { %213 = sbr.rel (%p210_p3) target bundleno = 469 (0x1d5), region = 36 }
   0xc   : > { %273 = sbr.rel (%p501_p4) target bundleno = 295 (0x127), region = 40 }
  0x11   : > { %v290_v0 = vld [vmem:[%s666_s0 + $0x20] sm:$0xf]  ;;  %vm322_vm0 = vcmask 1043456   ;;  %v527_v4 = vld [vmem:[%s666_s0 + $0x18] sm:$0xff]  ;;  %v526_v5 = vld [vmem:[%s666_s0 + $0x10] sm:$0xff]  ;;  %vm318_vm1 = vcmask 588800  }
  0x12   : > { %v308_v1 = vunpack.c.l.b16 %v290_v0  ;;  %v525_v6 = vld [vmem:[%s666_s0 + $0x8] sm:$0xff]  ;;  %v524_v7 = vld [vmem:[%s666_s0] sm:$0xff]  ;;  %vm278_vm2 = vcmask 7168   ;;  %v581_v12 = vmov 0.0  }
  0x13   : > { %v281_v8 = vld [vmem:[%s667_s1] sm:$0xf]  ;;  %279 = vst.msk [vmem:[#allocation3] sm:$0xff] %vm278_vm2, %v581_v12 }
  0x14   : > { %v313_v2 = vpack.c.b16 %v308_v1, %v308_v1  ;;  %280 = vst.msk [vmem:[#allocation4] sm:$0xff] %vm278_vm2, %v581_v12 }
  0x16   : > { %v324_v3 = vsel %vm322_vm0, %v313_v2, 0 }
  0x17   : > { %329 = vmatpush.bf16.msra.mxu0 %v324_v3 }
  0x1a   : > { %v343_v13 = vld [vmem:[#allocation3] sm:$0xff] }
  0x1b   : > { %330 = vmatpush.bf16.msra.mxu0 %v527_v4  ;;  %v349_v16 = vld [vmem:[#allocation4] sm:$0xff] }
  0x1f   : > { %331 = vmatpush.bf16.msra.mxu0 %v526_v5 }
  0x23   : > { %332 = vmatpush.bf16.msra.mxu0 %v525_v6 }
  0x27   : > { %333 = vmatpush.bf16.msra.mxu0 %v524_v7 }
  0x2a   : > { %518 = vmatmul.msk.bf16.vlgmr.msra.gmra.mxu0 %vm318_vm1, %v281_v8 }
  0xa7   : > { %v335_v9 = vpop.f32.mrf.mxu0 }
  0xa8   : > { %342 = vst [vmem:[#allocation2] sm:$0xff] %v335_v9  ;;  %344 = vadd.xlane.f32.xlu0 %v335_v9  ;;  %v350_v10 = vmul.f32 %v335_v9, %v335_v9 }
  0xaf   : > { %v337_v11 = vpop.f32.mrf.mxu0 }
  0xb0   : > { %351 = vadd.xlane.f32.xlu0 %v350_v10 }
 0x11b   : > { %v345_v14 = vpop.xlane.xlu0 %344 }
 0x11c   : > { %v346_v15 = vadd.f32 %v345_v14, %v343_v13 }
 0x11e   : > { %348 = vst.msk [vmem:[#allocation3] sm:$0xff] %vm278_vm2, %v346_v15 }
 0x123   : > { %v352_v17 = vpop.xlane.xlu0 %351 }
 0x124   : > { %v353_v18 = vadd.f32 %v352_v17, %v349_v16 }
 0x126   : > { %354 = vst.msk [vmem:[#allocation4] sm:$0xff] %vm278_vm2, %v353_v18 }
 0x127 PF: > { %p519_p5 = scmp.ne.s32.totalorder %s571_s15, 1 }
 0x129   : > { %358 = sbr.rel (%p519_p5) target bundleno = 469 (0x1d5), region = 48 }
 0x12e   : > { %v363_v19 = vld [vmem:[#allocation3] sm:$0xff]  ;;  %v365_v20 = vld [vmem:[#allocation4] sm:$0xff]  ;;  %v582_v21 = vmov 0   ;;  %v370_v33 = vld [vmem:[%s668_s2] sm:$0xff]  ;;  %vm383_vm6 = vcmask 7168  }
 0x12f   : > { %554 = vset.pattern.permute.xlu0 %v582_v21  ;;  %v364_v22 = vmul.f32 0.0078125, %v363_v19  ;;  %v366_v23 = vmul.f32 0.0078125, %v365_v20  ;;  %v385_v37 = vld [vmem:[%s669_s3] sm:$0xff] }
 0x130   : > { %v392_v43 = vld [vmem:[#allocation2] sm:$0xff] }
 0x131   : > { %v367_v24 = vmul.f32 %v364_v22, %v364_v22 }
 0x133   : > { %v368_v25 = vsub.f32 %v366_v23, %v367_v24 }
 0x135   : > { %v369_v26 = vmax.f32 %v368_v25, 0.0 }
 0x137   : > { %v371_v27 = vadd.f32 1e-05, %v369_v26 }
 0x139   : > { %555 = vrsqrt.f32 %v371_v27  ;;  %vm378_vm3 = vweird.f32 %v371_v27 }
 0x13f   : > { %v556_v28 = vpop.eup %555 }
 0x140   : > { %v373_v29 = vmul.f32 %v556_v28, %v371_v27  ;;  %vm379_vm4 = vweird.f32 %v556_v28 }
 0x141   : > { %vm380_vm5 = vmor %vm378_vm3, %vm379_vm4 }
 0x142   : > { %v374_v30 = vmul.f32 %v556_v28, %v373_v29 }
 0x144   : > { %v375_v31 = vmul.f32 0.5, %v374_v30 }
 0x146   : > { %v376_v32 = vsub.f32 1.5, %v375_v31 }
 0x148   : > { %v377_v34 = vmul.f32 %v556_v28, %v376_v32 }
 0x14a   : > { %v381_v35 = vsel %vm380_vm5, %v556_v28, %v377_v34 }
 0x14b   : > { %v382_v36 = vmul.f32 %v381_v35, %v370_v33 }
 0x14d   : > { %384 = vst.msk [vmem:[#allocation5] sm:$0xff] %vm383_vm6, %v382_v36  ;;  %v386_v38 = vmul.f32 %v382_v36, %v364_v22 }
 0x14f   : > { %v387_v39 = vsub.f32 %v385_v37, %v386_v38 }
 0x151   : > { %388 = vst.msk [vmem:[#allocation6] sm:$0xff] %vm383_vm6, %v387_v39 }
 0x154   : > { %v393_v40 = vld [vmem:[#allocation5] sm:$0xff] }
 0x155   : > { %396 = vperm.xlu0 %554, %v393_v40  }
 0x158   : > { %v400_v41 = vld [vmem:[#allocation6] sm:$0xff] }
 0x15d   : > { %403 = vperm.xlu0 %554, %v400_v41  }
 0x1c7   : > { %v397_v42 = vpop.permute.xlu0 %396 }
 0x1c8   : > { %v399_v44 = vmul.f32 %v397_v42, %v392_v43 }
 0x1cf   : > { %v404_v45 = vpop.permute.xlu0 %403 }
 0x1d0   : > { %v406_v46 = vadd.f32 %v404_v45, %v399_v44 }
 0x1d2   : > { %v407_v47 = vpack.c.bf16 %v406_v46, %v406_v46 }
 0x1d4   : > { %408 = vst [vmem:[%s670_s4] sm:$0xf] %v407_v47 }
 0x1d5 PF: > { %s14_s17 = sadd.s32 1, %s579_s17   ;;  %s671_s15 = smov %s575_s16 }
 0x1d6   : > { %p11_p6 = scmp.ge.s32.totalorder %s14_s17, 4   ;;  %s672_s16 = smov %s674_s18 }
 0x1d8   :  { %13 = sbr.rel (!%p11_p6) target bundleno = 2 (0x2), region = 87 }

// kernel: test_gen_forward.14
= control target key start
LH: loop header
LB: loop body
LE: loop exit
PB: predicated region body
PF: predicated region fallthrough
CT: control target
= control target key end

     0   :  { %s623_s15 = smov 0   ;;  %s625_s16 = smov 0   ;;  %s706_s0 = inlined_call_operand.vmem [shape: bf16[32,128], index: 0, kind: input, shape index: {}]   ;;  %s707_s1 = inlined_call_operand.vmem [shape: bf16[4,4,32], index: 1, kind: input, shape index: {}]   ;;  %s708_s2 = inlined_call_operand.vmem [shape: f32[4,1], index: 2, kind: input, shape index: {}]   ;;  %s709_s3 = inlined_call_operand.vmem [shape: f32[4,1], index: 3, kind: input, shape index: {}]   ;;  %s710_s4 = inlined_call_operand.vmem [shape: bf16[4,512], index: 4, kind: output, shape index: {}]  }
   0x1   :  { %s627_s17 = smov 0   ;;  %s629_s18 = smov 0  }
   0x2   :  { %s631_s19 = smov 0  }
   0x3 LB: > { %s29_s20 = sadd.s32 1, %s586_s17  ;;  %s33_s21 = sadd.s32 1, %s590_s18  ;;  %s594_s19 = sphi %s631_s19, %s14_s19   ;;  %s590_s18 = sphi %s629_s18, %s714_s18   ;;  %s586_s17 = sphi %s627_s17, %s713_s17   ;;  %s582_s16 = sphi %s625_s16, %s712_s16   ;;  %s578_s15 = sphi %s623_s15, %s711_s15  }
   0x4   : > { %p31_p0 = scmp.ge.s32.totalorder %s29_s20, 4  ;;  %p488_p1 = scmp.ge.s32.totalorder %s594_s19, 1 }
   0x5   : > { %p209_p2 = scmp.lt.s32.totalorder %s594_s19, 9 }
   0x6   : > { %s716_s20 = smov (%p31_p0, %s29_s20), 0  ;;  %s718_s21 = smov (!%p31_p0, %s33_s21), %s590_s18 }
   0x7   : > { %p210_p3 = pnand %p488_p1, %p209_p2  ;;  %p35_p4 = scmp.ge.s32.totalorder %s718_s21, 2 }
   0x8   : > { %s251_s22 = ssub.s32 (!%p210_p3), 1, %s582_s16  ;;  %s260_s23 = smul.u32 (!%p210_p3), %s578_s15, %s582_s16 }
   0x9   : > { %s720_s21 = smov (%p35_p4, %s718_s21), 0  ;;  %213 = sbr.rel (%p210_p3) target bundleno = 474 (0x1da), region = 36 }
   0xa   : > { %s252_s24 = smul.u32 (!%p210_p3), %s578_s15, %s251_s22  ;;  %s491_s25 = sshll.u32 (!%p210_p3), %s578_s15, 7 }
   0xb   : > { %p261_p5 = scmp.lt.s32.totalorder (!%p210_p3), %s260_s23, 3  ;;  %p492_p7 = scmp.ne.s32.totalorder (!%p210_p3), %s582_s16, 0 }
   0xc   : > { %p253_p6 = scmp.lt.s32.totalorder (!%p210_p3), %s252_s24, 3 }
   0xe   : > { %s722_s23 = smov (!%p261_p5, %s260_s23), 3  ;;  %s724_s24 = smov (!%p253_p6, %s252_s24), 3 }
   0xf   : > { %s490_s26 = sshll.u32 %s722_s23, 1  ;;  %s489_s27 = sshll.u32 %s724_s24, 1 }
  0x10   : > { %s665_s30 = scalar_lea.vmem %s710_s4, %s490_s26  ;;  %s256_s7 = scalar_lea.vmem %s707_s1, %s489_s27 }
  0x11   : > { %273 = sbr.rel (%p492_p7) target bundleno = 292 (0x124), region = 40  ;;  %p493_p8 = scmp.ne.s32.totalorder (!%p492_p7), %s578_s15, 0 }
  0x16   : > { %277 = sbr.rel (%p493_p8) target bundleno = 30 (0x1e), region = 44 }
  0x1b   : > { %vm278_vm0 = vcmask 3072   ;;  %v596_v0 = vmov 0.0  }
  0x1c   : > { %279 = vst.msk [vmem:[#allocation3] sm:$0xf] %vm278_vm0, %v596_v0 }
  0x1d   : > { %280 = vst.msk [vmem:[#allocation4] sm:$0xf] %vm278_vm0, %v596_v0 }
  0x1e PF: > { %v510_v1 = vld [vmem:[%s706_s0 + $0x8] sm:$0xff]  ;;  %v509_v2 = vld [vmem:[%s706_s0] sm:$0xff]  ;;  %vm298_vm1 = vcmask 261120   ;;  %s315_s12 = sshra.s32 %s491_s25, 7  ;;  %vm321_vm2 = vcmask 1043456   ;;  %vm326_vm3 = vcmask 3072  }
  0x1f   : > { %308 = vmatpush.bf16.msra.mxu0 %v510_v1  ;;  %v281_v3 = vld [vmem:[%s256_s7] sm:$0x3]  ;;  %s503_s13 = sshll.u32 %s315_s12, 2 }
  0x20   : > { %s318_s14 = scalar_lea.vmem [#allocation2], %s503_s13 }
  0x23   : > { %309 = vmatpush.bf16.msra.mxu0 %v509_v2  ;;  %v320_v9 = vld [vmem:[#allocation3] sm:$0xf] }
  0x24   : > { %v328_v12 = vld [vmem:[#allocation4] sm:$0xf] }
  0x26   : > { %502 = vmatmul.msk.bf16.vlgmr.msra.gmra.mxu0 %vm298_vm1, %v281_v3 }
  0xa3   : > { %v311_v4 = vpop.f32.mrf.mxu0 }
  0xa4   : > { %319 = vst [vmem:[%s318_s14] sm:$0xf] %v311_v4  ;;  %v322_v5 = vsel %vm321_vm2, %v311_v4, 0.0  ;;  %v329_v6 = vmul.f32 %v311_v4, %v311_v4 }
  0xa5   : > { %323 = vadd.xlane.f32.xlu0 %v322_v5 }
  0xa6   : > { %v330_v8 = vsel %vm321_vm2, %v329_v6, 0.0 }
  0xab   : > { %v313_v7 = vpop.f32.mrf.mxu0 }
  0xad   : > { %331 = vadd.xlane.f32.xlu0 %v330_v8 }
 0x118   : > { %v324_v10 = vpop.xlane.xlu0 %323 }
 0x119   : > { %v325_v11 = vadd.f32 %v324_v10, %v320_v9 }
 0x11b   : > { %327 = vst.msk [vmem:[#allocation3] sm:$0xf] %vm326_vm3, %v325_v11 }
 0x120   : > { %v332_v13 = vpop.xlane.xlu0 %331 }
 0x121   : > { %v333_v14 = vadd.f32 %v332_v13, %v328_v12 }
 0x123   : > { %334 = vst.msk [vmem:[#allocation4] sm:$0xf] %vm326_vm3, %v333_v14 }
 0x124 PF: > { %p504_p9 = scmp.ne.s32.totalorder %s582_s16, 1 }
 0x125   : > { %p505_p10 = scmp.ne.s32.totalorder (!%p504_p9), %s578_s15, 0 }
 0x126   : > { %338 = sbr.rel (%p504_p9) target bundleno = 474 (0x1da), region = 48 }
 0x12b   : > { %342 = sbr.rel (%p505_p10) target bundleno = 340 (0x154), region = 52 }
 0x130   : > { %v343_v15 = vld [vmem:[#allocation3] sm:$0xf]  ;;  %v345_v16 = vld [vmem:[#allocation4] sm:$0xf]  ;;  %v350_v28 = vld [vmem:[%s708_s2] sm:$0xf] }
 0x131   : > { %v344_v17 = vmul.f32 0.001953125, %v343_v15  ;;  %v346_v18 = vmul.f32 0.001953125, %v345_v16  ;;  %vm363_vm7 = vcmask 3072   ;;  %v365_v32 = vld [vmem:[%s709_s3] sm:$0xf] }
 0x133   : > { %v347_v19 = vmul.f32 %v344_v17, %v344_v17 }
 0x135   : > { %v348_v20 = vsub.f32 %v346_v18, %v347_v19 }
 0x137   : > { %v349_v21 = vmax.f32 %v348_v20, 0.0 }
 0x139   : > { %v351_v22 = vadd.f32 1e-05, %v349_v21 }
 0x13b   : > { %553 = vrsqrt.f32 %v351_v22  ;;  %vm358_vm4 = vweird.f32 %v351_v22 }
 0x141   : > { %v554_v23 = vpop.eup %553 }
 0x142   : > { %v353_v24 = vmul.f32 %v554_v23, %v351_v22  ;;  %vm359_vm5 = vweird.f32 %v554_v23 }
 0x143   : > { %vm360_vm6 = vmor %vm358_vm4, %vm359_vm5 }
 0x144   : > { %v354_v25 = vmul.f32 %v554_v23, %v353_v24 }
 0x146   : > { %v355_v26 = vmul.f32 0.5, %v354_v25 }
 0x148   : > { %v356_v27 = vsub.f32 1.5, %v355_v26 }
 0x14a   : > { %v357_v29 = vmul.f32 %v554_v23, %v356_v27 }
 0x14c   : > { %v361_v30 = vsel %vm360_vm6, %v554_v23, %v357_v29 }
 0x14d   : > { %v362_v31 = vmul.f32 %v361_v30, %v350_v28 }
 0x14f   : > { %364 = vst.msk [vmem:[#allocation5] sm:$0xf] %vm363_vm7, %v362_v31  ;;  %v366_v33 = vmul.f32 %v362_v31, %v344_v17 }
 0x151   : > { %v367_v34 = vsub.f32 %v365_v32, %v366_v33 }
 0x153   : > { %368 = vst.msk [vmem:[#allocation6] sm:$0xf] %vm363_vm7, %v367_v34 }
 0x154 PF: > { %v597_v36 = vmov 0   ;;  %s369_s26 = sshra.s32 %s491_s25, 7 }
 0x155   : > { %555 = vset.pattern.permute.xlu0 %v597_v36  ;;  %s506_s27 = sshll.u32 %s369_s26, 2 }
 0x156   : > { %v374_v35 = vld [vmem:[#allocation5] sm:$0xf]  ;;  %s372_s28 = scalar_lea.vmem [#allocation2], %s506_s27 }
 0x157   : > { %377 = vperm.xlu0 %555, %v374_v35   ;;  %v373_v39 = vld [vmem:[%s372_s28] sm:$0xf] }
 0x15a   : > { %v381_v37 = vld [vmem:[#allocation6] sm:$0xf] }
 0x15f   : > { %384 = vperm.xlu0 %555, %v381_v37  }
 0x1c9   : > { %v378_v38 = vpop.permute.xlu0 %377 }
 0x1ca   : > { %v380_v40 = vmul.f32 %v378_v38, %v373_v39 }
 0x1d1   : > { %v385_v41 = vpop.permute.xlu0 %384 }
 0x1d2   : > { %v387_v42 = vadd.f32 %v385_v41, %v380_v40 }
 0x1d4   : > { %vm388_vm8 = vcmp.ge.f32.partialorder %v387_v42, 0.0  ;;  %v389_v43 = vmul.f32 0.2, %v387_v42 }
 0x1d6   : > { %v390_v44 = vsel %vm388_vm8, %v387_v42, %v389_v43 }
 0x1d7   : > { %v391_v45 = vpack.c.bf16 %v390_v44, %v390_v44 }
 0x1d9   : > { %392 = vst [vmem:[%s665_s30] sm:$0x3] %v391_v45 }
 0x1da PF: > { %s14_s19 = sadd.s32 1, %s594_s19   ;;  %s711_s15 = smov %s586_s17 }
 0x1db   : > { %p11_p11 = scmp.ge.s32.totalorder %s14_s19, 10   ;;  %s712_s16 = smov %s590_s18 }
 0x1dc   : > { %s713_s17 = smov %s716_s20  ;;  %s714_s18 = smov %s720_s21 }
 0x1dd   :  { %13 = sbr.rel (!%p11_p11) target bundleno = 3 (0x3), region = 87 }

// kernel: test_gen_forward.17
= control target key start
LH: loop header
LB: loop body
LE: loop exit
PB: predicated region body
PF: predicated region fallthrough
CT: control target
= control target key end

     0   :  { %v226_v2 = vmov 0   ;;  %vm86_vm0 = vcmask 1041408   ;;  %vm82_vm1 = vcmask 293888   ;;  %vm161_vm2 = vcmask 1043456   ;;  %s317_s0 = inlined_call_operand.vmem [shape: bf16[36,512], index: 0, kind: input, shape index: {}]   ;;  %s318_s2 = inlined_call_operand.vmem [shape: f32[3,1], index: 2, kind: input, shape index: {}]   ;;  %s319_s1 = inlined_call_operand.vmem [shape: bf16[3,36], index: 1, kind: input, shape index: {}]   ;;  %s320_s3 = inlined_call_operand.vmem [shape: f32[3,512], index: 3, kind: output, shape index: {}]  }
   0x1   :  { %v24_v0 = vld [vmem:[%s317_s0 + $0x40] sm:$0x33]  ;;  %v25_v1 = vld [vmem:[%s317_s0 + $0x48] sm:$0x33]  ;;  %217 = vset.pattern.permute.xlu0 %v226_v2  ;;  %v214_v8 = vld [vmem:[%s317_s0 + $0x2c] sm:$0xf0] }
   0x2   :  { %v58_v3 = vunpack.c.l.b16 %v24_v0  ;;  %v59_v4 = vunpack.c.h.b16 %v24_v0  ;;  %v60_v5 = vunpack.c.l.b16 %v25_v1  ;;  %v61_v6 = vunpack.c.h.b16 %v25_v1  ;;  %v190_v7 = vld [vmem:[%s317_s0 + $0x20] sm:$0xf]  ;;  %v212_v13 = vld [vmem:[%s317_s0 + $0x24] sm:$0xf]  ;;  %v192_v14 = vld [vmem:[%s317_s0 + $0x30] sm:$0xf0] }
   0x3   :  { %v198_v15 = vld [vmem:[%s317_s0 + $0x28] sm:$0xf]  ;;  %v215_v16 = vld [vmem:[%s317_s0 + $0x34] sm:$0xf0]  ;;  %v213_v17 = vld [vmem:[%s317_s0 + $0x2c] sm:$0xf]  ;;  %v191_v23 = vor.u32 %v214_v8, %v190_v7  ;;  %v195_v24 = vor.u32 %v212_v13, %v192_v14 }
   0x4   :  { %v70_v9 = vpack.c.b16 %v58_v3, %v58_v3  ;;  %v71_v10 = vpack.c.b16 %v59_v4, %v59_v4  ;;  %v72_v11 = vpack.c.b16 %v60_v5, %v60_v5  ;;  %v73_v12 = vpack.c.b16 %v61_v6, %v61_v6  ;;  %v200_v18 = vld [vmem:[%s317_s0 + $0x38] sm:$0xf0]  ;;  %v174_v25 = vld [vmem:[%s317_s0] sm:$0xf]  ;;  %v210_v26 = vld [vmem:[%s317_s0 + $0xc] sm:$0xf0] }
   0x5   :  { %v208_v27 = vld [vmem:[%s317_s0 + $0x4] sm:$0xf]  ;;  %v199_v28 = vor.u32 %v215_v16, %v198_v15  ;;  %v203_v29 = vor.u32 %v213_v17, %v200_v18  ;;  %v176_v30 = vld [vmem:[%s317_s0 + $0x10] sm:$0xf0]  ;;  %v182_v31 = vld [vmem:[%s317_s0 + $0x8] sm:$0xf]  ;;  %v175_v36 = vor.u32 %v210_v26, %v174_v25 }
   0x6   :  { %v88_v19 = vsel %vm86_vm0, %v70_v9, 0  ;;  %v91_v20 = vsel %vm86_vm0, %v71_v10, 0  ;;  %v94_v21 = vsel %vm86_vm0, %v72_v11, 0  ;;  %v97_v22 = vsel %vm86_vm0, %v73_v12, 0  ;;  %v26_v32 = vld [vmem:[%s318_s2] sm:$0x7] }
   0x7   :  { %104 = vmatpush.bf16.msra.mxu0 %v88_v19  ;;  %117 = vmatpush.bf16.msra.mxu1 %v91_v20  ;;  %v211_v33 = vld [vmem:[%s317_s0 + $0x14] sm:$0xf0]  ;;  %v209_v34 = vld [vmem:[%s317_s0 + $0xc] sm:$0xf]  ;;  %v184_v35 = vld [vmem:[%s317_s0 + $0x18] sm:$0xf0]  ;;  %v179_v37 = vor.u32 %v208_v27, %v176_v30 }
   0x8   :  { %130 = vmatpush.bf16.msra.mxu2 %v94_v21  ;;  %143 = vmatpush.bf16.msra.mxu3 %v97_v22  ;;  %v183_v38 = vor.u32 %v211_v33, %v182_v31  ;;  %v187_v39 = vor.u32 %v209_v34, %v184_v35  ;;  %v15_v40 = vld [vmem:[%s319_s1] sm:$0x3] }
   0x9   :  { %29 = vperm.xlu0 %217, %v26_v32  }
   0xb   :  { %105 = vmatpush.bf16.msra.mxu0 %v191_v23  ;;  %118 = vmatpush.bf16.msra.mxu1 %v195_v24 }
   0xc   :  { %131 = vmatpush.bf16.msra.mxu2 %v199_v28  ;;  %144 = vmatpush.bf16.msra.mxu3 %v203_v29 }
   0xf   :  { %106 = vmatpush.bf16.msra.mxu0 %v175_v36  ;;  %119 = vmatpush.bf16.msra.mxu1 %v179_v37 }
  0x10   :  { %132 = vmatpush.bf16.msra.mxu2 %v183_v38  ;;  %145 = vmatpush.bf16.msra.mxu3 %v187_v39 }
  0x12   :  { %204 = vmatmul.msk.bf16.vlgmr.msra.gmra.mxu0 %vm82_vm1, %v15_v40  ;;  %205 = vmatmul.msk.bf16.vlgmr.msra.gmra.mxu1 %vm82_vm1, %v15_v40 }
  0x13   :  { %206 = vmatmul.msk.bf16.vlgmr.msra.gmra.mxu2 %vm82_vm1, %v15_v40  ;;  %207 = vmatmul.msk.bf16.vlgmr.msra.gmra.mxu3 %vm82_vm1, %v15_v40 }
  0x7b   :  { %v30_v41 = vpop.permute.xlu0 %29 }
  0x8f   :  { %v108_v42 = vpop.f32.mrf.mxu0  ;;  %v121_v43 = vpop.f32.mrf.mxu1 }
  0x90   :  { %v109_v44 = vadd.f32 %v108_v42, %v30_v41  ;;  %v122_v45 = vadd.f32 %v121_v43, %v30_v41 }
  0x92   :  { %218 = vtanh.f32 %v109_v44 }
  0x93   :  { %220 = vtanh.f32 %v122_v45 }
  0x96   :  { %v134_v46 = vpop.f32.mrf.mxu2  ;;  %v147_v47 = vpop.f32.mrf.mxu3 }
  0x97   :  { %v148_v48 = vadd.f32 %v147_v47, %v30_v41  ;;  %v110_v49 = vpop.f32.mrf.mxu0  ;;  %v123_v50 = vpop.f32.mrf.mxu1  ;;  %v135_v52 = vadd.f32 %v134_v46, %v30_v41 }
  0x98   :  { %v219_v51 = vpop.eup %218 }
  0x99   :  { %v221_v53 = vpop.eup %220  ;;  %222 = vtanh.f32 %v148_v48 }
  0x9a   :  { %v159_v54 = vrot.slane %v221_v53, 4  ;;  %224 = vtanh.f32 %v135_v52 }
  0x9c   :  { %v162_v55 = vsel %vm161_vm2, %v219_v51, %v159_v54 }
  0x9d   :  { %166 = vst [vmem:[%s320_s3] sm:$0x77] %v162_v55 }
  0x9e   :  { %v136_v56 = vpop.f32.mrf.mxu2  ;;  %v149_v57 = vpop.f32.mrf.mxu3 }
  0x9f   :  { %v223_v58 = vpop.eup %222 }
  0xa0   :  { %v160_v59 = vrot.slane %v223_v58, 4  ;;  %v225_v60 = vpop.eup %224 }
  0xa2   :  { %v163_v61 = vsel %vm161_vm2, %v225_v60, %v160_v59 }
  0xa3   :  { %167 = vst [vmem:[%s320_s3 + $0x8] sm:$0x77] %v163_v61 }

// kernel: test_gen_forward.15
= control target key start
LH: loop header
LB: loop body
LE: loop exit
PB: predicated region body
PF: predicated region fallthrough
CT: control target
= control target key end

     0   :  { %s883_s15 = smov 0   ;;  %s885_s16 = smov 0   ;;  %s1042_s0 = inlined_call_operand.vmem [shape: bf16[72,512], index: 0, kind: input, shape index: {}]   ;;  %s1043_s1 = inlined_call_operand.vmem [shape: bf16[1,4,72], index: 1, kind: input, shape index: {}]   ;;  %s1044_s2 = inlined_call_operand.vmem [shape: f32[4,1], index: 2, kind: input, shape index: {}]   ;;  %s1045_s3 = inlined_call_operand.vmem [shape: f32[4,1], index: 3, kind: input, shape index: {}]   ;;  %s1046_s4 = inlined_call_operand.vmem [shape: bf16[4,512], index: 4, kind: output, shape index: {}]  }
   0x1   :  { %s887_s17 = smov 0  }
   0x2 LB: > { %s33_s18 = sadd.s32 1, %s849_s16  ;;  %p710_p0 = scmp.ge.s32.totalorder %s853_s17, 1  ;;  %s853_s17 = sphi %s887_s17, %s14_s17   ;;  %s849_s16 = sphi %s885_s16, %s1048_s16   ;;  %s845_s15 = sphi %s883_s15, %s1047_s15  }
   0x3   : > { %p35_p1 = scmp.ge.s32.totalorder %s33_s18, 2  ;;  %p211_p2 = scmp.lt.s32.totalorder %s853_s17, 3 }
   0x5   : > { %s1050_s18 = smov (%p35_p1, %s33_s18), 0  ;;  %p212_p3 = pnand %p710_p0, %p211_p2 }
   0x6   : > { %p711_p4 = scmp.ne.s32.totalorder (!%p212_p3), %s845_s15, 0 }
   0x7   : > { %215 = sbr.rel (%p212_p3) target bundleno = 499 (0x1f3), region = 36 }
   0xc   : > { %281 = sbr.rel (%p711_p4) target bundleno = 307 (0x133), region = 40 }
  0x11   : > { %v306_v0 = vld [vmem:[%s1042_s0 + $0x80] sm:$0xff]  ;;  %v307_v1 = vld [vmem:[%s1042_s0 + $0x88] sm:$0xff]  ;;  %vm402_vm0 = vcmask 1043456   ;;  %v799_v7 = vld [vmem:[%s1042_s0 + $0x6c] sm:$0xf0]  ;;  %vm398_vm1 = vcmask 588800  }
  0x12   : > { %v358_v2 = vunpack.c.l.b16 %v306_v0  ;;  %v359_v3 = vunpack.c.h.b16 %v306_v0  ;;  %v360_v4 = vunpack.c.l.b16 %v307_v1  ;;  %v361_v5 = vunpack.c.h.b16 %v307_v1  ;;  %v762_v6 = vld [vmem:[%s1042_s0 + $0x60] sm:$0xf]  ;;  %v797_v12 = vld [vmem:[%s1042_s0 + $0x64] sm:$0xf]  ;;  %v764_v13 = vld [vmem:[%s1042_s0 + $0x70] sm:$0xf0] }
  0x13   : > { %v770_v14 = vld [vmem:[%s1042_s0 + $0x68] sm:$0xf]  ;;  %v800_v15 = vld [vmem:[%s1042_s0 + $0x74] sm:$0xf0]  ;;  %v798_v16 = vld [vmem:[%s1042_s0 + $0x6c] sm:$0xf]  ;;  %v763_v22 = vor.u32 %v799_v7, %v762_v6  ;;  %v767_v23 = vor.u32 %v797_v12, %v764_v13 }
  0x14   : > { %v378_v8 = vpack.c.b16 %v358_v2, %v358_v2  ;;  %v379_v9 = vpack.c.b16 %v359_v3, %v359_v3  ;;  %v380_v10 = vpack.c.b16 %v360_v4, %v360_v4  ;;  %v381_v11 = vpack.c.b16 %v361_v5, %v361_v5  ;;  %v772_v17 = vld [vmem:[%s1042_s0 + $0x78] sm:$0xf0]  ;;  %v746_v24 = vld [vmem:[%s1042_s0 + $0x40] sm:$0xf]  ;;  %v795_v25 = vld [vmem:[%s1042_s0 + $0x4c] sm:$0xf0] }
  0x15   : > { %v771_v26 = vor.u32 %v800_v15, %v770_v14  ;;  %v775_v27 = vor.u32 %v798_v16, %v772_v17  ;;  %v793_v28 = vld [vmem:[%s1042_s0 + $0x44] sm:$0xf]  ;;  %v748_v29 = vld [vmem:[%s1042_s0 + $0x50] sm:$0xf0]  ;;  %v754_v30 = vld [vmem:[%s1042_s0 + $0x48] sm:$0xf]  ;;  %v747_v34 = vor.u32 %v795_v25, %v746_v24 }
  0x16   : > { %v404_v18 = vsel %vm402_vm0, %v378_v8, 0  ;;  %v407_v19 = vsel %vm402_vm0, %v379_v9, 0  ;;  %v410_v20 = vsel %vm402_vm0, %v380_v10, 0  ;;  %v413_v21 = vsel %vm402_vm0, %v381_v11, 0  ;;  %v796_v31 = vld [vmem:[%s1042_s0 + $0x54] sm:$0xf0] }
  0x17   : > { %418 = vmatpush.bf16.msra.mxu0 %v404_v18  ;;  %431 = vmatpush.bf16.msra.mxu1 %v407_v19  ;;  %v794_v32 = vld [vmem:[%s1042_s0 + $0x4c] sm:$0xf]  ;;  %v756_v33 = vld [vmem:[%s1042_s0 + $0x58] sm:$0xf0]  ;;  %v751_v35 = vor.u32 %v793_v28, %v748_v29  ;;  %v730_v36 = vld [vmem:[%s1042_s0 + $0x20] sm:$0xf]  ;;  %v755_v38 = vor.u32 %v796_v31, %v754_v30 }
  0x18   : > { %444 = vmatpush.bf16.msra.mxu2 %v410_v20  ;;  %457 = vmatpush.bf16.msra.mxu3 %v413_v21  ;;  %v791_v37 = vld [vmem:[%s1042_s0 + $0x2c] sm:$0xf0]  ;;  %v759_v39 = vor.u32 %v794_v32, %v756_v33  ;;  %v789_v40 = vld [vmem:[%s1042_s0 + $0x24] sm:$0xf]  ;;  %v732_v41 = vld [vmem:[%s1042_s0 + $0x30] sm:$0xf0] }
  0x19   : > { %v738_v42 = vld [vmem:[%s1042_s0 + $0x28] sm:$0xf]  ;;  %v792_v43 = vld [vmem:[%s1042_s0 + $0x34] sm:$0xf0]  ;;  %v790_v44 = vld [vmem:[%s1042_s0 + $0x2c] sm:$0xf]  ;;  %v731_v46 = vor.u32 %v791_v37, %v730_v36  ;;  %v735_v47 = vor.u32 %v789_v40, %v732_v41 }
  0x1a   : > { %v740_v45 = vld [vmem:[%s1042_s0 + $0x38] sm:$0xf0]  ;;  %v714_v48 = vld [vmem:[%s1042_s0] sm:$0xf]  ;;  %v787_v49 = vld [vmem:[%s1042_s0 + $0xc] sm:$0xf0]  ;;  %v739_v50 = vor.u32 %v792_v43, %v738_v42 }
  0x1b   : > { %419 = vmatpush.bf16.msra.mxu0 %v763_v22  ;;  %432 = vmatpush.bf16.msra.mxu1 %v767_v23  ;;  %v743_v51 = vor.u32 %v790_v44, %v740_v45  ;;  %v785_v52 = vld [vmem:[%s1042_s0 + $0x4] sm:$0xf]  ;;  %v716_v53 = vld [vmem:[%s1042_s0 + $0x10] sm:$0xf0]  ;;  %v722_v54 = vld [vmem:[%s1042_s0 + $0x8] sm:$0xf]  ;;  %v715_v58 = vor.u32 %v787_v49, %v714_v48 }
  0x1c   : > { %445 = vmatpush.bf16.msra.mxu2 %v771_v26  ;;  %458 = vmatpush.bf16.msra.mxu3 %v775_v27  ;;  %v788_v55 = vld [vmem:[%s1042_s0 + $0x14] sm:$0xf0]  ;;  %v786_v56 = vld [vmem:[%s1042_s0 + $0xc] sm:$0xf]  ;;  %v724_v57 = vld [vmem:[%s1042_s0 + $0x18] sm:$0xf0]  ;;  %v719_v59 = vor.u32 %v785_v52, %v716_v53 }
  0x1d   : > { %v723_v60 = vor.u32 %v788_v55, %v722_v54  ;;  %v727_v61 = vor.u32 %v786_v56, %v724_v57  ;;  %v289_v62 = vld [vmem:[%s1043_s1] sm:$0x3]  ;;  %vm286_vm2 = vcmask 3072   ;;  %v855_v29 = vmov 0.0  }
  0x1e   : > { %287 = vst.msk [vmem:[#allocation3] sm:$0xf] %vm286_vm2, %v855_v29 }
  0x1f   : > { %420 = vmatpush.bf16.msra.mxu0 %v747_v34  ;;  %433 = vmatpush.bf16.msra.mxu1 %v751_v35  ;;  %288 = vst.msk [vmem:[#allocation4] sm:$0xf] %vm286_vm2, %v855_v29 }
  0x20   : > { %446 = vmatpush.bf16.msra.mxu2 %v755_v38  ;;  %459 = vmatpush.bf16.msra.mxu3 %v759_v39 }
  0x23   : > { %421 = vmatpush.bf16.msra.mxu0 %v731_v46  ;;  %434 = vmatpush.bf16.msra.mxu1 %v735_v47 }
  0x24   : > { %447 = vmatpush.bf16.msra.mxu2 %v739_v50  ;;  %460 = vmatpush.bf16.msra.mxu3 %v743_v51 }
  0x25   : > { %v483_v30 = vld [vmem:[#allocation3] sm:$0xf] }
  0x26   : > { %v496_v33 = vld [vmem:[#allocation4] sm:$0xf] }
  0x27   : > { %422 = vmatpush.bf16.msra.mxu0 %v715_v58  ;;  %435 = vmatpush.bf16.msra.mxu1 %v719_v59 }
  0x28   : > { %448 = vmatpush.bf16.msra.mxu2 %v723_v60  ;;  %461 = vmatpush.bf16.msra.mxu3 %v727_v61 }
  0x2a   : > { %776 = vmatmul.msk.bf16.vlgmr.msra.gmra.mxu0 %vm398_vm1, %v289_v62  ;;  %777 = vmatmul.msk.bf16.vlgmr.msra.gmra.mxu1 %vm398_vm1, %v289_v62 }
  0x2b   : > { %778 = vmatmul.msk.bf16.vlgmr.msra.gmra.mxu2 %vm398_vm1, %v289_v62  ;;  %779 = vmatmul.msk.bf16.vlgmr.msra.gmra.mxu3 %vm398_vm1, %v289_v62 }
  0xa7   : > { %v424_v63 = vpop.f32.mrf.mxu0  ;;  %v437_v0 = vpop.f32.mrf.mxu1 }
  0xa8   : > { %v471_v1 = vrot.slane %v437_v0, 4  ;;  %v484_v2 = vsel %vm402_vm0, %v424_v63, 0.0  ;;  %v485_v3 = vsel %vm402_vm0, %v437_v0, 0.0  ;;  %v497_v4 = vmul.f32 %v424_v63, %v424_v63 }
  0xa9   : > { %v498_v6 = vmul.f32 %v437_v0, %v437_v0  ;;  %v486_v7 = vadd.f32 %v485_v3, %v484_v2 }
  0xaa   : > { %v473_v5 = vsel %vm402_vm0, %v424_v63, %v471_v1  ;;  %v501_v8 = vsel %vm402_vm0, %v497_v4, 0.0 }
  0xab   : > { %481 = vst [vmem:[#allocation2] sm:$0xff] %v473_v5  ;;  %v502_v11 = vsel %vm402_vm0, %v498_v6, 0.0 }
  0xac   : > { %v503_v21 = vadd.f32 %v502_v11, %v501_v8 }
  0xae   : > { %v450_v9 = vpop.f32.mrf.mxu2  ;;  %v463_v10 = vpop.f32.mrf.mxu3 }
  0xaf   : > { %v499_v12 = vmul.f32 %v450_v9, %v450_v9  ;;  %v472_v13 = vrot.slane %v463_v10, 4  ;;  %v426_v14 = vpop.f32.mrf.mxu0  ;;  %v439_v15 = vpop.f32.mrf.mxu1  ;;  %v487_v16 = vsel %vm402_vm0, %v450_v9, 0.0  ;;  %v489_v18 = vsel %vm402_vm0, %v463_v10, 0.0 }
  0xb0   : > { %v488_v17 = vadd.f32 %v487_v16, %v486_v7  ;;  %v500_v22 = vmul.f32 %v463_v10, %v463_v10 }
  0xb1   : > { %v474_v19 = vsel %vm402_vm0, %v450_v9, %v472_v13  ;;  %v504_v23 = vsel %vm402_vm0, %v499_v12, 0.0 }
  0xb2   : > { %482 = vst [vmem:[#allocation2 + $0x8] sm:$0xff] %v474_v19  ;;  %v490_v20 = vadd.f32 %v489_v18, %v488_v17  ;;  %v505_v26 = vadd.f32 %v504_v23, %v503_v21  ;;  %v506_v27 = vsel %vm402_vm0, %v500_v22, 0.0 }
  0xb4   : > { %491 = vadd.xlane.f32.xlu0 %v490_v20  ;;  %v507_v28 = vadd.f32 %v506_v27, %v505_v26 }
  0xb6   : > { %v452_v24 = vpop.f32.mrf.mxu2  ;;  %v465_v25 = vpop.f32.mrf.mxu3 }
  0xbc   : > { %508 = vadd.xlane.f32.xlu0 %v507_v28 }
 0x127   : > { %v492_v31 = vpop.xlane.xlu0 %491 }
 0x128   : > { %v493_v32 = vadd.f32 %v492_v31, %v483_v30 }
 0x12a   : > { %495 = vst.msk [vmem:[#allocation3] sm:$0xf] %vm286_vm2, %v493_v32 }
 0x12f   : > { %v509_v34 = vpop.xlane.xlu0 %508 }
 0x130   : > { %v510_v35 = vadd.f32 %v509_v34, %v496_v33 }
 0x132   : > { %511 = vst.msk [vmem:[#allocation4] sm:$0xf] %vm286_vm2, %v510_v35 }
 0x133 PF: > { %p780_p5 = scmp.ne.s32.totalorder %s845_s15, 1 }
 0x135   : > { %515 = sbr.rel (%p780_p5) target bundleno = 499 (0x1f3), region = 48 }
 0x13a   : > { %v520_v36 = vld [vmem:[#allocation3] sm:$0xf]  ;;  %v522_v37 = vld [vmem:[#allocation4] sm:$0xf]  ;;  %v856_v38 = vmov 0   ;;  %vm540_vm6 = vcmask 3072  }
 0x13b   : > { %828 = vset.pattern.permute.xlu0 %v856_v38  ;;  %v521_v39 = vmul.f32 0.001953125, %v520_v36  ;;  %v523_v40 = vmul.f32 0.001953125, %v522_v37  ;;  %v527_v50 = vld [vmem:[%s1044_s2] sm:$0xf]  ;;  %v857_v59 = vmov 839922192  }
 0x13c   : > { %v542_v54 = vld [vmem:[%s1045_s3] sm:$0xf]  ;;  %v558_v60 = vunpack.c.l.s4 %v857_v59  ;;  %v550_v0 = vld [vmem:[#allocation2] sm:$0xff]  ;;  %v551_v1 = vld [vmem:[#allocation2 + $0x8] sm:$0xff]  ;;  %vm602_vm9 = vcmask 1041408   ;;  %vm606_vm10 = vcmask 1045508  }
 0x13d   : > { %v524_v41 = vmul.f32 %v521_v39, %v521_v39  ;;  %vm610_vm11 = vcmask 1043456  }
 0x13e   : > { %v559_v62 = vunpack.c.0.s8 %v558_v60 }
 0x13f   : > { %v525_v42 = vsub.f32 %v523_v40, %v524_v41 }
 0x141   : > { %v526_v43 = vmax.f32 %v525_v42, 0.0 }
 0x143   : > { %v528_v44 = vadd.f32 1e-05, %v526_v43 }
 0x145   : > { %829 = vrsqrt.f32 %v528_v44  ;;  %vm535_vm3 = vweird.f32 %v528_v44 }
 0x14b   : > { %v830_v45 = vpop.eup %829 }
 0x14c   : > { %v530_v46 = vmul.f32 %v830_v45, %v528_v44  ;;  %vm536_vm4 = vweird.f32 %v830_v45 }
 0x14d   : > { %vm537_vm5 = vmor %vm535_vm3, %vm536_vm4 }
 0x14e   : > { %v531_v47 = vmul.f32 %v830_v45, %v530_v46 }
 0x150   : > { %v532_v48 = vmul.f32 0.5, %v531_v47 }
 0x152   : > { %v533_v49 = vsub.f32 1.5, %v532_v48 }
 0x154   : > { %v534_v51 = vmul.f32 %v830_v45, %v533_v49 }
 0x156   : > { %v538_v52 = vsel %vm537_vm5, %v830_v45, %v534_v51 }
 0x157   : > { %v539_v53 = vmul.f32 %v538_v52, %v527_v50 }
 0x159   : > { %541 = vst.msk [vmem:[#allocation5] sm:$0xf] %vm540_vm6, %v539_v53  ;;  %v543_v55 = vmul.f32 %v539_v53, %v521_v39 }
 0x15b   : > { %v544_v56 = vsub.f32 %v542_v54, %v543_v55 }
 0x15d   : > { %545 = vst.msk [vmem:[#allocation6] sm:$0xf] %vm540_vm6, %v544_v56 }
 0x160   : > { %v552_v57 = vld [vmem:[#allocation5] sm:$0xf] }
 0x161   : > { %555 = vperm.xlu0 %828, %v552_v57  }
 0x164   : > { %v564_v58 = vld [vmem:[#allocation6] sm:$0xf] }
 0x169   : > { %567 = vperm.xlu0 %828, %v564_v58  }
 0x1d3   : > { %v556_v61 = vpop.permute.xlu0 %555 }
 0x1d4   : > { %v560_v63 = vperm.slane %v556_v61, %v559_v62 }
 0x1d6   : > { %v562_v3 = vmul.f32 %v560_v63, %v550_v0  ;;  %v563_v4 = vmul.f32 %v560_v63, %v551_v1 }
 0x1db   : > { %v568_v2 = vpop.permute.xlu0 %567 }
 0x1dc   : > { %v572_v5 = vperm.slane %v568_v2, %v559_v62 }
 0x1de   : > { %v574_v6 = vadd.f32 %v572_v5, %v562_v3  ;;  %v575_v7 = vadd.f32 %v572_v5, %v563_v4 }
 0x1e0   : > { %vm576_vm7 = vcmp.ge.f32.partialorder %v574_v6, 0.0  ;;  %vm577_vm8 = vcmp.ge.f32.partialorder %v575_v7, 0.0  ;;  %v578_v8 = vmul.f32 0.2, %v574_v6  ;;  %v579_v9 = vmul.f32 0.2, %v575_v7 }
 0x1e2   : > { %v580_v10 = vsel %vm576_vm7, %v574_v6, %v578_v8  ;;  %v581_v11 = vsel %vm577_vm8, %v575_v7, %v579_v9 }
 0x1e3   : > { %584 = vst [vmem:[#allocation1] ss:$2 sm:$0xff] %v580_v10 }
 0x1e4   : > { %586 = vst [vmem:[#allocation1 + $0x10] ss:$2 sm:$0xff] %v581_v11 }
 0x1ea   : > { %v587_v12 = vld.sshfl [vmem:[#allocation1] sm:$0xff pattern:$0x75316420]  ;;  %v588_v13 = vld.sshfl [vmem:[#allocation1 + $0x8] sm:$0xff pattern:$0x75316420] }
 0x1eb   : > { %v589_v14 = vld.sshfl [vmem:[#allocation1 + $0x10] sm:$0xff pattern:$0x75316420]  ;;  %v590_v15 = vld.sshfl [vmem:[#allocation1 + $0x18] sm:$0xff pattern:$0x75316420]  ;;  %v595_v16 = vpack.c.bf16 %v588_v13, %v587_v12 }
 0x1ec   : > { %v596_v17 = vpack.c.bf16 %v590_v15, %v589_v14 }
 0x1ed   : > { %v599_v18 = vrot.slane %v595_v16, 2 }
 0x1ee   : > { %v600_v19 = vrot.slane %v596_v17, 4  ;;  %v601_v20 = vrot.slane %v596_v17, 6 }
 0x1ef   : > { %v605_v21 = vsel %vm602_vm9, %v595_v16, %v599_v18 }
 0x1f0   : > { %v609_v22 = vsel %vm606_vm10, %v600_v19, %v601_v20 }
 0x1f1   : > { %v611_v23 = vsel %vm610_vm11, %v605_v21, %v609_v22 }
 0x1f2   : > { %613 = vst [vmem:[%s1046_s4] sm:$0xff] %v611_v23 }
 0x1f3 PF: > { %s14_s17 = sadd.s32 1, %s853_s17   ;;  %s1047_s15 = smov %s849_s16 }
 0x1f4   : > { %p11_p6 = scmp.ge.s32.totalorder %s14_s17, 4   ;;  %s1048_s16 = smov %s1050_s18 }
 0x1f6   :  { %13 = sbr.rel (!%p11_p6) target bundleno = 2 (0x2), region = 88 }

</bundles_post_ra>
